<compile_context>
chip_gen: v6e
topology: v6e:2x2x1
jax: 0.10.0
libtpu: 0.0.40
codegen_flags: <defaults>
</compile_context>

<pallas_src>
import functools

import jax
import jax.numpy as jnp
from jax.experimental import pallas as pl
from jax.experimental.pallas import tpu as pltpu

# ------------------------- small synthetic shapes -------------------------
B = 8            # batch
CC = 3           # image channels (NCHW)
HW = 16          # spatial
P = CC * HW * HW # flattened image = 768
D = 128          # embedding dim (stand-in for CLIP 512)
NT = 64          # text memory size
NI = 64          # image memory size
NCLS = 16        # number of class prototypes
TK = 8           # args.tk
IK = 8           # args.ik
MULTEMP = 16.0   # args.multemp

NEG = -1e30      # additive masking bias (avoids -inf arithmetic hazards)


# ------------------------- in-kernel helpers -------------------------
def _dot(a, b):
    return jnp.dot(a, b, preferred_element_type=jnp.float32)


def _dot_nt(a, b):
    # einsum 'md,nd->mn' (contract last dims) on the MXU, f32 accumulation.
    return jax.lax.dot_general(
        a, b, (((1,), (1,)), ((), ())), preferred_element_type=jnp.float32)


def _ln_norm(x, eps=1e-5):
    # LayerNorm normalization only (affine folded into the next weight on host).
    mu = jnp.mean(x, axis=-1, keepdims=True)
    var = jnp.mean((x - mu) ** 2, axis=-1, keepdims=True)
    return (x - mu) / jnp.sqrt(var + eps)


def _l2_norm(x, eps=1e-12):
    n = jnp.sqrt(jnp.sum(x * x, axis=-1, keepdims=True))
    return x / jnp.maximum(n, eps)


def _softmax_rows(s):
    m = jnp.max(s, axis=-1, keepdims=True)
    p = jnp.exp(s - m)
    return p / jnp.sum(p, axis=-1, keepdims=True)


def _kth_largest(s, k):
    """k-th largest value per row: (k-1) running-max removals + one final max.
    Ties at the running max are removed together (fine for continuous data)."""
    rem = s
    for _ in range(k - 1):
        m = jnp.max(rem, axis=-1, keepdims=True)
        rem = jnp.where(rem >= m, NEG, rem)
    return jnp.max(rem, axis=-1, keepdims=True)


def _topk_bias(sim, n_txt, tk, ik):
    """Additive score bias: 0 for the per-row top-k of each half, -1e30 elsewhere."""
    s_t, s_i = sim[:, :n_txt], sim[:, n_txt:]
    b_t = jnp.where(s_t >= _kth_largest(s_t, tk), 0.0, NEG)
    b_i = jnp.where(s_i >= _kth_largest(s_i, ik), 0.0, NEG)
    return jnp.concatenate([b_t, b_i], axis=-1)


# ------------------------- the fused kernel -------------------------
def mmlearner_kernel(
    x_ref, wb_ref, bb_ref,
    mem_ref, inv_ref,
    wq_ref, bq_ref, wkv_ref, bv_ref,
    wo_ref, bo_ref, wfc_ref, bfc_ref, wpj_ref, bpj_ref,
    proto_ref,
    sim_ref,
    *, n_txt, tk, ik, multemp,
):
    f32, bf16 = jnp.float32, jnp.bfloat16
    d2 = wq_ref.shape[1]          # 2*D (txt lanes | img lanes)
    d = d2 // 2
    scale = 1.0 / float(d) ** 0.5

    # 1) frozen backbone stand-in: clipfeat = x_flat @ Wb + bb
    # TODO(synk): real model runs CLIP encode_image (pretrained ViT/RN); replaced
    # by a deterministic linear projection of the flattened image.
    feat = _dot(x_ref[...], wb_ref[...]) + bb_ref[...]            # (B, D) f32
    feat16 = feat.astype(bf16)
    feat_dup = jnp.concatenate([feat, feat], axis=-1)             # (B, 2D) f32
    feat_dup16 = jnp.concatenate([feat16, feat16], axis=-1)

    # 2) retrieve_knn similarities against the stacked, column-augmented memory
    #    ([m_t|0] rows then [0|m_i] rows).  Memory-row inverse norms are hoisted to
    #    the host; the query row-norm is dropped (a positive per-row scale cannot
    #    change the per-row top-k set).
    sims = _dot_nt(feat_dup16, mem_ref[...]) * inv_ref[...]       # (B, NT+NI) f32
    bias = _topk_bias(sims, n_txt, tk, ik)                        # (B, NT+NI) f32

    # 3) fused dual-branch residual cross-attention (txt lanes 0:D, img lanes D:2D)
    qn16 = _ln_norm(feat).astype(bf16)
    qp = _dot(qn16, wq_ref[...]) + bq_ref[...]                    # (B, 2D) [qp_t|qp_i]
    kv = _dot(mem_ref[...], wkv_ref[...])                         # (2N, 4D) f32
    k_pad16 = kv[:, :d2].astype(bf16)                             # txt rows [k_t|0]
    v_pad16 = kv[:, d2:].astype(bf16)                             # img rows [0|v_i]
    scores = _dot_nt(qp.astype(bf16), k_pad16) * scale + bias     # (B, 2N)
    probs = jnp.concatenate(
        [_softmax_rows(scores[:, :n_txt]), _softmax_rows(scores[:, n_txt:])],
        axis=-1)
    attn = _dot(probs.astype(bf16), v_pad16) + bv_ref[...]        # (B, 2D) [a_t|a_i]
    aproj = _dot(attn.astype(bf16), wo_ref[...]) + bo_ref[...]
    xres = feat_dup + aproj                                       # residual 1

    xn16 = jnp.concatenate(
        [_ln_norm(xres[:, :d]), _ln_norm(xres[:, d:])], axis=-1).astype(bf16)
    h = _dot(xn16, wfc_ref[...]) + bfc_ref[...]                   # (B, 8D)
    h = h * jax.nn.sigmoid(1.702 * h)                             # QuickGELU
    mlp = _dot(h.astype(bf16), wpj_ref[...]) + bpj_ref[...]       # (B, 2D)
    out = xres + mlp + feat_dup                                   # residual 2 + extra

    # 4) prototype matching, fused: [l2(out_t)|l2(out_i)] @ [P_txt|P_img]^T
    out_l2_16 = jnp.concatenate(
        [_l2_norm(out[:, :d]), _l2_norm(out[:, d:])], axis=-1).astype(bf16)
    sim_ref[...] = _dot_nt(out_l2_16, proto_ref[...]) * multemp


# ------------------------- host-side (per-stage, hoisted) packing -------------------------
def pack_inputs(params, mem_txt, mem_img, proto_txt, proto_img):
    f32, bf16 = jnp.float32, jnp.bfloat16
    d = params['wb'].shape[1]

    def branch(p):
        ln = p['ln'].astype(f32)
        g1, b1, g2, b2 = ln[0], ln[1], ln[2], ln[3]
        in_w = p['in_w'].astype(f32)
        in_b = p['in_b'].astype(f32)[0]
        wq, wk, wv = in_w[:, :d], in_w[:, d:2 * d], in_w[:, 2 * d:]
        bq, bv = in_b[:d], in_b[2 * d:]       # key bias dropped (softmax-shift invariant)
        fc_w = p['fc_w'].astype(f32)
        fc_b = p['fc_b'].astype(f32)[0]
        return dict(
            wq=g1[:, None] * wq, bq=b1 @ wq + bq,            # LN1 affine folded
            wk=wk, wv=wv, bv=bv,
            wo=p['out_w'].astype(f32), bo=p['out_b'].astype(f32)[0],
            wfc=g2[:, None] * fc_w, bfc=b2 @ fc_w + fc_b,    # LN2 affine folded
            wpj=p['pj_w'].astype(f32), bpj=p['pj_b'].astype(f32)[0])

    t, i = branch(params['txt']), branch(params['img'])
    z = jnp.zeros((d, d), f32)

    def bdiag(a, b):
        top = jnp.concatenate([a, jnp.zeros((a.shape[0], b.shape[1]), f32)], axis=1)
        bot = jnp.concatenate([jnp.zeros((b.shape[0], a.shape[1]), f32), b], axis=1)
        return jnp.concatenate([top, bot], axis=0)

    def cat(a, b):
        return jnp.concatenate([a, b])[None, :]

    wq_cat = jnp.concatenate([t['wq'], i['wq']], axis=1)                    # (D, 2D)
    wkv = jnp.concatenate(
        [jnp.concatenate([t['wk'], z, t['wv'], z], axis=1),
         jnp.concatenate([z, i['wk'], z, i['wv']], axis=1)], axis=0)        # (2D, 4D)

    mt, mi = mem_txt.astype(f32), mem_img.astype(f32)
    mem_aug = jnp.concatenate(
        [jnp.concatenate([mt, jnp.zeros_like(mt)], axis=1),
         jnp.concatenate([jnp.zeros_like(mi), mi], axis=1)], axis=0)        # (2N, 2D)
    mem_cat = jnp.concatenate([mt, mi], axis=0)
    inv_all = (1.0 / jnp.maximum(
        jnp.sqrt(jnp.sum(mem_cat * mem_cat, axis=-1)), 1e-12))[None, :]     # (1, 2N)

    proto_cat = jnp.concatenate(
        [proto_txt.astype(f32), proto_img.astype(f32)], axis=-1)            # (NCLS, 2D)

    return dict(
        wb=params['wb'].astype(bf16), bb=params['bb'].astype(f32),
        mem=mem_aug.astype(bf16), inv=inv_all.astype(f32),
        wq=wq_cat.astype(bf16), bq=cat(t['bq'], i['bq']),
        wkv=wkv.astype(bf16), bv=cat(t['bv'], i['bv']),
        wo=bdiag(t['wo'], i['wo']).astype(bf16), bo=cat(t['bo'], i['bo']),
        wfc=bdiag(t['wfc'], i['wfc']).astype(bf16), bfc=cat(t['bfc'], i['bfc']),
        wpj=bdiag(t['wpj'], i['wpj']).astype(bf16), bpj=cat(t['bpj'], i['bpj']),
        proto=proto_cat.astype(bf16),
        n_txt=int(mem_txt.shape[0]),
    )


def mmlearner_forward(x, packed, *, tk=TK, ik=IK, multemp=MULTEMP):
    bn = x.shape[0]
    x16 = x.reshape(bn, -1).astype(jnp.bfloat16)     # halves the activation DMA

    order = ['wb', 'bb', 'mem', 'inv', 'wq', 'bq', 'wkv', 'bv',
             'wo', 'bo', 'wfc', 'bfc', 'wpj', 'bpj', 'proto']
    inputs = [x16] + [packed[k] for k in order]
    ncls = packed['proto'].shape[0]

    kern = functools.partial(mmlearner_kernel, n_txt=packed['n_txt'],
                             tk=tk, ik=ik, multemp=multemp)
    return pl.pallas_call(
        kern,
        out_shape=jax.ShapeDtypeStruct((bn, ncls), jnp.float32),
        in_specs=[pl.BlockSpec(memory_space=pltpu.MemorySpace.VMEM)
                  for _ in inputs],
        out_specs=pl.BlockSpec(memory_space=pltpu.MemorySpace.VMEM),
    )(*inputs)


# ------------------------- plain-JAX reference -------------------------
def mmlearner_reference(x, params, mem_txt, mem_img, proto_txt, proto_img,
                        *, tk=TK, ik=IK, multemp=MULTEMP):
    """Per-branch, gather-based reference.  Matmul operands are rounded to bf16
    (mirroring the kernel's MXU operand dtype / quantized-inference dtype);
    accumulation and all pointwise math stay f32."""
    f32 = jnp.float32

    def q(a):
        return a.astype(jnp.bfloat16).astype(f32)

    def mm(a, b):
        return jnp.dot(q(a), q(b))

    params = jax.tree_util.tree_map(lambda a: jnp.asarray(a, f32), params)
    mem_txt, mem_img = mem_txt.astype(f32), mem_img.astype(f32)
    proto_txt, proto_img = proto_txt.astype(f32), proto_img.astype(f32)

    def l2(v):
        return v / jnp.maximum(jnp.linalg.norm(v, axis=-1, keepdims=True), 1e-12)

    def ln(v, g, b):
        mu = v.mean(-1, keepdims=True)
        var = ((v - mu) ** 2).mean(-1, keepdims=True)
        return (v - mu) / jnp.sqrt(var + 1e-5) * g + b

    def knn(feat, mem, k):
        # F.normalize of the query is a positive per-row scale -> identical top-k
        # set; memory-row norms applied as a column scale after the matmul.
        inv = 1.0 / jnp.maximum(jnp.sqrt(jnp.sum(mem * mem, axis=-1)), 1e-12)
        s = mm(feat, mem.T) * inv[None, :]
        _, idx = jax.lax.top_k(s, k)
        return mem[idx]                                  # (B, k, D) raw rows

    def block(qin, kv, p):
        d = qin.shape[-1]
        qn = ln(qin, p['ln'][0], p['ln'][1])
        wq, wk, wv = p['in_w'][:, :d], p['in_w'][:, d:2 * d], p['in_w'][:, 2 * d:]
        bq, bk, bv = p['in_b'][0, :d], p['in_b'][0, d:2 * d], p['in_b'][0, 2 * d:]
        qp = mm(qn, wq) + bq                              # (B, D)
        bsz, k, _ = kv.shape
        kp = (mm(kv.reshape(bsz * k, d), wk) + bk).reshape(bsz, k, d)
        vp = (mm(kv.reshape(bsz * k, d), wv) + bv).reshape(bsz, k, d)
        s = jnp.einsum('bd,bkd->bk', q(qp), q(kp)) / jnp.sqrt(jnp.float32(d))
        w = jax.nn.softmax(s, axis=-1)
        a = jnp.einsum('bk,bkd->bd', q(w), q(vp))
        a = mm(a, p['out_w']) + p['out_b'][0]
        xx = qin + a
        xn = ln(xx, p['ln'][2], p['ln'][3])
        h = mm(xn, p['fc_w']) + p['fc_b'][0]
        h = h * jax.nn.sigmoid(1.702 * h)
        h = mm(h, p['pj_w']) + p['pj_b'][0]
        return xx + h

    x_flat = x.reshape(x.shape[0], -1).astype(f32)
    clipfeat = mm(x_flat, params['wb']) + params['bb'][0]
    kv_txt = knn(clipfeat, mem_txt, tk)
    kv_img = knn(clipfeat, mem_img, ik)
    out_txt = block(clipfeat, kv_txt, params['txt']) + clipfeat
    out_img = block(clipfeat, kv_img, params['img']) + clipfeat
    sim_txt = mm(l2(out_txt), proto_txt.T) * multemp
    sim_img = mm(l2(out_img), proto_img.T) * multemp
    return sim_txt + sim_img


# ------------------------- deterministic parameter init -------------------------
def init_params(key, dim=D, pdim=P):
    def nrm(k, shape, scale=0.02):
        return (scale * jax.random.normal(k, shape)).astype(jnp.float32)

    def block_params(k):
        ks = jax.random.split(k, 8)
        lnp = jnp.concatenate(
            [jnp.ones((1, dim)), jnp.zeros((1, dim)),
             jnp.ones((1, dim)), jnp.zeros((1, dim))], axis=0).astype(jnp.float32)
        return dict(
            ln=lnp,
            in_w=nrm(ks[0], (dim, 3 * dim)),   # (in, out): [Wq | Wk | Wv] pre-transposed
            in_b=nrm(ks[1], (1, 3 * dim)),
            out_w=nrm(ks[2], (dim, dim)),
            out_b=nrm(ks[3], (1, dim)),
            fc_w=nrm(ks[4], (dim, 4 * dim)),
            fc_b=nrm(ks[5], (1, 4 * dim)),
            pj_w=nrm(ks[6], (4 * dim, dim)),
            pj_b=nrm(ks[7], (1, dim)),
        )

    k0, k1, k2, k3 = jax.random.split(key, 4)
    return dict(
        wb=nrm(k0, (pdim, dim)),
        bb=nrm(k1, (1, dim)),
        txt=block_params(k2),
        img=block_params(k3),
    )


def quantize_params(params):
    """Cast the large weight matrices to bf16; keep LN / bias params in f32."""
    qp = dict(params)
    qp['wb'] = params['wb'].astype(jnp.bfloat16)
    for blk in ('txt', 'img'):
        p = dict(params[blk])
        for name in ('in_w', 'out_w', 'fc_w', 'pj_w'):
            p[name] = p[name].astype(jnp.bfloat16)
        qp[blk] = p
    return qp


if __name__ == "__main__":
    root = jax.random.PRNGKey(0)
    kx, kmt, kmi, kpt, kpi, kp = jax.random.split(root, 6)

    x = jax.random.normal(kx, (B, CC, HW, HW), dtype=jnp.float32)    # NCHW image input
    # memories (self.txt_embed[stage] / self.img_embed[stage]) stored in bf16
    mem_txt = jax.random.normal(kmt, (NT, D), dtype=jnp.float32).astype(jnp.bfloat16)
    mem_img = jax.random.normal(kmi, (NI, D), dtype=jnp.float32).astype(jnp.bfloat16)

    def _l2_host(v):
        return v / jnp.maximum(jnp.linalg.norm(v, axis=-1, keepdims=True), 1e-12)

    # prototypes come out of _load_prototype already L2-normalized
    proto_txt = _l2_host(jax.random.normal(kpt, (NCLS, D), dtype=jnp.float32))
    proto_img = _l2_host(jax.random.normal(kpi, (NCLS, D), dtype=jnp.float32))

    params = quantize_params(init_params(kp))

    # hoisted once per stage (memories / prototypes / weights are constants)
    packed = pack_inputs(params, mem_txt, mem_img, proto_txt, proto_img)

    sim = mmlearner_forward(x, packed)
    sim = jax.block_until_ready(sim)

    ref = mmlearner_reference(x, params, mem_txt, mem_img, proto_txt, proto_img)
    ref = jax.block_until_ready(ref)

    assert sim.shape == (B, NCLS) and sim.dtype == jnp.float32
    assert bool(jnp.all(jnp.isfinite(sim)))
    assert bool(jnp.allclose(sim, ref, rtol=5e-3, atol=5e-3)), (
        f"mismatch: max abs err = {float(jnp.max(jnp.abs(sim - ref)))}")

    print("KERNEL_OK")
</pallas_src>

<mosaic_0001>
module attributes {stable_mosaic.version = 11 : i64} {
  func.func @mmlearner_kernel(%arg0: memref<8x768xbf16, #tpu.memory_space<vmem>>, %arg1: memref<768x128xbf16, #tpu.memory_space<vmem>>, %arg2: memref<1x128xf32, #tpu.memory_space<vmem>>, %arg3: memref<128x256xbf16, #tpu.memory_space<vmem>>, %arg4: memref<1x128xf32, #tpu.memory_space<vmem>>, %arg5: memref<128x256xbf16, #tpu.memory_space<vmem>>, %arg6: memref<1x256xf32, #tpu.memory_space<vmem>>, %arg7: memref<256x512xbf16, #tpu.memory_space<vmem>>, %arg8: memref<1x256xf32, #tpu.memory_space<vmem>>, %arg9: memref<256x256xbf16, #tpu.memory_space<vmem>>, %arg10: memref<1x256xf32, #tpu.memory_space<vmem>>, %arg11: memref<256x1024xbf16, #tpu.memory_space<vmem>>, %arg12: memref<1x1024xf32, #tpu.memory_space<vmem>>, %arg13: memref<1024x256xbf16, #tpu.memory_space<vmem>>, %arg14: memref<1x256xf32, #tpu.memory_space<vmem>>, %arg15: memref<16x256xbf16, #tpu.memory_space<vmem>>, %arg16: memref<8x16xf32, #tpu.memory_space<vmem>>) attributes {dimension_semantics = [], scalar_prefetch = 0 : i64, scratch_operands = 0 : i64, tpu.core_type = #tpu.core_type<tc>} {
    %c0 = arith.constant 0 : index
    %c0_0 = arith.constant 0 : index
    %0 = vector.load %arg0[%c0, %c0_0] : memref<8x768xbf16, #tpu.memory_space<vmem>>, vector<8x768xbf16>
    %c0_1 = arith.constant 0 : index
    %c0_2 = arith.constant 0 : index
    %1 = vector.load %arg1[%c0_1, %c0_2] : memref<768x128xbf16, #tpu.memory_space<vmem>>, vector<768x128xbf16>
    %cst = arith.constant dense<0.000000e+00> : vector<8x128xf32>
    %2 = tpu.matmul %0, %1, %cst {dimension_numbers = #tpu.dot_dimension_numbers<[1], [0], [0], [1], [0, 0, 1, 1], [], []>} : vector<8x768xbf16>, vector<768x128xbf16>, vector<8x128xf32> -> vector<8x128xf32>
    %c0_3 = arith.constant 0 : index
    %c0_4 = arith.constant 0 : index
    %3 = vector.load %arg2[%c0_3, %c0_4] : memref<1x128xf32, #tpu.memory_space<vmem>>, vector<1x128xf32>
    %4 = vector.broadcast %3 : vector<1x128xf32> to vector<8x128xf32>
    %5 = arith.addf %2, %4 : vector<8x128xf32>
    %6 = arith.truncf %5 : vector<8x128xf32> to vector<8x128xbf16>
    %7 = tpu.concatenate %5, %5 in 1 : vector<8x128xf32>, vector<8x128xf32> -> vector<8x256xf32>
    %8 = tpu.concatenate %6, %6 in 1 : vector<8x128xbf16>, vector<8x128xbf16> -> vector<8x256xbf16>
    %c0_5 = arith.constant 0 : index
    %c0_6 = arith.constant 0 : index
    %9 = vector.load %arg3[%c0_5, %c0_6] : memref<128x256xbf16, #tpu.memory_space<vmem>>, vector<128x256xbf16>
    %cst_7 = arith.constant dense<0.000000e+00> : vector<8x128xf32>
    %10 = tpu.matmul %8, %9, %cst_7 {dimension_numbers = #tpu.dot_dimension_numbers<[1], [1], [0], [0], [0, 0, 1, 0], [], []>} : vector<8x256xbf16>, vector<128x256xbf16>, vector<8x128xf32> -> vector<8x128xf32>
    %c0_8 = arith.constant 0 : index
    %c0_9 = arith.constant 0 : index
    %11 = vector.load %arg4[%c0_8, %c0_9] : memref<1x128xf32, #tpu.memory_space<vmem>>, vector<1x128xf32>
    %12 = vector.broadcast %11 : vector<1x128xf32> to vector<8x128xf32>
    %13 = arith.mulf %10, %12 : vector<8x128xf32>
    %14 = vector.extract_strided_slice %13 {offsets = [0, 0], sizes = [8, 64], strides = [1, 1]} : vector<8x128xf32> to vector<8x64xf32>
    %15 = vector.extract_strided_slice %13 {offsets = [0, 64], sizes = [8, 64], strides = [1, 1]} : vector<8x128xf32> to vector<8x64xf32>
    %cst_10 = arith.constant dense<0xFF800000> : vector<8xf32>
    %16 = vector.multi_reduction <maximumf>, %14, %cst_10 [1] : vector<8x64xf32> to vector<8xf32>
    %17 = vector.shape_cast %16 : vector<8xf32> to vector<8x1xf32>
    %18 = vector.broadcast %17 : vector<8x1xf32> to vector<8x64xf32>
    %19 = arith.cmpf oge, %14, %18 : vector<8x64xf32>
    %cst_11 = arith.constant -1.000000e+30 : f32
    %20 = vector.broadcast %cst_11 : f32 to vector<8x64xf32>
    %21 = arith.select %19, %20, %14 : vector<8x64xi1>, vector<8x64xf32>
    %cst_12 = arith.constant dense<0xFF800000> : vector<8xf32>
    %22 = vector.multi_reduction <maximumf>, %21, %cst_12 [1] : vector<8x64xf32> to vector<8xf32>
    %23 = vector.shape_cast %22 : vector<8xf32> to vector<8x1xf32>
    %24 = vector.broadcast %23 : vector<8x1xf32> to vector<8x64xf32>
    %25 = arith.cmpf oge, %21, %24 : vector<8x64xf32>
    %cst_13 = arith.constant -1.000000e+30 : f32
    %26 = vector.broadcast %cst_13 : f32 to vector<8x64xf32>
    %27 = arith.select %25, %26, %21 : vector<8x64xi1>, vector<8x64xf32>
    %cst_14 = arith.constant dense<0xFF800000> : vector<8xf32>
    %28 = vector.multi_reduction <maximumf>, %27, %cst_14 [1] : vector<8x64xf32> to vector<8xf32>
    %29 = vector.shape_cast %28 : vector<8xf32> to vector<8x1xf32>
    %30 = vector.broadcast %29 : vector<8x1xf32> to vector<8x64xf32>
    %31 = arith.cmpf oge, %27, %30 : vector<8x64xf32>
    %cst_15 = arith.constant -1.000000e+30 : f32
    %32 = vector.broadcast %cst_15 : f32 to vector<8x64xf32>
    %33 = arith.select %31, %32, %27 : vector<8x64xi1>, vector<8x64xf32>
    %cst_16 = arith.constant dense<0xFF800000> : vector<8xf32>
    %34 = vector.multi_reduction <maximumf>, %33, %cst_16 [1] : vector<8x64xf32> to vector<8xf32>
    %35 = vector.shape_cast %34 : vector<8xf32> to vector<8x1xf32>
    %36 = vector.broadcast %35 : vector<8x1xf32> to vector<8x64xf32>
    %37 = arith.cmpf oge, %33, %36 : vector<8x64xf32>
    %cst_17 = arith.constant -1.000000e+30 : f32
    %38 = vector.broadcast %cst_17 : f32 to vector<8x64xf32>
    %39 = arith.select %37, %38, %33 : vector<8x64xi1>, vector<8x64xf32>
    %cst_18 = arith.constant dense<0xFF800000> : vector<8xf32>
    %40 = vector.multi_reduction <maximumf>, %39, %cst_18 [1] : vector<8x64xf32> to vector<8xf32>
    %41 = vector.shape_cast %40 : vector<8xf32> to vector<8x1xf32>
    %42 = vector.broadcast %41 : vector<8x1xf32> to vector<8x64xf32>
    %43 = arith.cmpf oge, %39, %42 : vector<8x64xf32>
    %cst_19 = arith.constant -1.000000e+30 : f32
    %44 = vector.broadcast %cst_19 : f32 to vector<8x64xf32>
    %45 = arith.select %43, %44, %39 : vector<8x64xi1>, vector<8x64xf32>
    %cst_20 = arith.constant dense<0xFF800000> : vector<8xf32>
    %46 = vector.multi_reduction <maximumf>, %45, %cst_20 [1] : vector<8x64xf32> to vector<8xf32>
    %47 = vector.shape_cast %46 : vector<8xf32> to vector<8x1xf32>
    %48 = vector.broadcast %47 : vector<8x1xf32> to vector<8x64xf32>
    %49 = arith.cmpf oge, %45, %48 : vector<8x64xf32>
    %cst_21 = arith.constant -1.000000e+30 : f32
    %50 = vector.broadcast %cst_21 : f32 to vector<8x64xf32>
    %51 = arith.select %49, %50, %45 : vector<8x64xi1>, vector<8x64xf32>
    %cst_22 = arith.constant dense<0xFF800000> : vector<8xf32>
    %52 = vector.multi_reduction <maximumf>, %51, %cst_22 [1] : vector<8x64xf32> to vector<8xf32>
    %53 = vector.shape_cast %52 : vector<8xf32> to vector<8x1xf32>
    %54 = vector.broadcast %53 : vector<8x1xf32> to vector<8x64xf32>
    %55 = arith.cmpf oge, %51, %54 : vector<8x64xf32>
    %cst_23 = arith.constant -1.000000e+30 : f32
    %56 = vector.broadcast %cst_23 : f32 to vector<8x64xf32>
    %57 = arith.select %55, %56, %51 : vector<8x64xi1>, vector<8x64xf32>
    %cst_24 = arith.constant dense<0xFF800000> : vector<8xf32>
    %58 = vector.multi_reduction <maximumf>, %57, %cst_24 [1] : vector<8x64xf32> to vector<8xf32>
    %59 = vector.shape_cast %58 : vector<8xf32> to vector<8x1xf32>
    %60 = vector.broadcast %59 : vector<8x1xf32> to vector<8x64xf32>
    %61 = arith.cmpf oge, %14, %60 : vector<8x64xf32>
    %cst_25 = arith.constant 0.000000e+00 : f32
    %cst_26 = arith.constant -1.000000e+30 : f32
    %62 = vector.broadcast %cst_25 : f32 to vector<8x64xf32>
    %63 = vector.broadcast %cst_26 : f32 to vector<8x64xf32>
    %64 = arith.select %61, %62, %63 : vector<8x64xi1>, vector<8x64xf32>
    %cst_27 = arith.constant dense<0xFF800000> : vector<8xf32>
    %65 = vector.multi_reduction <maximumf>, %15, %cst_27 [1] : vector<8x64xf32> to vector<8xf32>
    %66 = vector.shape_cast %65 : vector<8xf32> to vector<8x1xf32>
    %67 = vector.broadcast %66 : vector<8x1xf32> to vector<8x64xf32>
    %68 = arith.cmpf oge, %15, %67 : vector<8x64xf32>
    %cst_28 = arith.constant -1.000000e+30 : f32
    %69 = vector.broadcast %cst_28 : f32 to vector<8x64xf32>
    %70 = arith.select %68, %69, %15 : vector<8x64xi1>, vector<8x64xf32>
    %cst_29 = arith.constant dense<0xFF800000> : vector<8xf32>
    %71 = vector.multi_reduction <maximumf>, %70, %cst_29 [1] : vector<8x64xf32> to vector<8xf32>
    %72 = vector.shape_cast %71 : vector<8xf32> to vector<8x1xf32>
    %73 = vector.broadcast %72 : vector<8x1xf32> to vector<8x64xf32>
    %74 = arith.cmpf oge, %70, %73 : vector<8x64xf32>
    %cst_30 = arith.constant -1.000000e+30 : f32
    %75 = vector.broadcast %cst_30 : f32 to vector<8x64xf32>
    %76 = arith.select %74, %75, %70 : vector<8x64xi1>, vector<8x64xf32>
    %cst_31 = arith.constant dense<0xFF800000> : vector<8xf32>
    %77 = vector.multi_reduction <maximumf>, %76, %cst_31 [1] : vector<8x64xf32> to vector<8xf32>
    %78 = vector.shape_cast %77 : vector<8xf32> to vector<8x1xf32>
    %79 = vector.broadcast %78 : vector<8x1xf32> to vector<8x64xf32>
    %80 = arith.cmpf oge, %76, %79 : vector<8x64xf32>
    %cst_32 = arith.constant -1.000000e+30 : f32
    %81 = vector.broadcast %cst_32 : f32 to vector<8x64xf32>
    %82 = arith.select %80, %81, %76 : vector<8x64xi1>, vector<8x64xf32>
    %cst_33 = arith.constant dense<0xFF800000> : vector<8xf32>
    %83 = vector.multi_reduction <maximumf>, %82, %cst_33 [1] : vector<8x64xf32> to vector<8xf32>
    %84 = vector.shape_cast %83 : vector<8xf32> to vector<8x1xf32>
    %85 = vector.broadcast %84 : vector<8x1xf32> to vector<8x64xf32>
    %86 = arith.cmpf oge, %82, %85 : vector<8x64xf32>
    %cst_34 = arith.constant -1.000000e+30 : f32
    %87 = vector.broadcast %cst_34 : f32 to vector<8x64xf32>
    %88 = arith.select %86, %87, %82 : vector<8x64xi1>, vector<8x64xf32>
    %cst_35 = arith.constant dense<0xFF800000> : vector<8xf32>
    %89 = vector.multi_reduction <maximumf>, %88, %cst_35 [1] : vector<8x64xf32> to vector<8xf32>
    %90 = vector.shape_cast %89 : vector<8xf32> to vector<8x1xf32>
    %91 = vector.broadcast %90 : vector<8x1xf32> to vector<8x64xf32>
    %92 = arith.cmpf oge, %88, %91 : vector<8x64xf32>
    %cst_36 = arith.constant -1.000000e+30 : f32
    %93 = vector.broadcast %cst_36 : f32 to vector<8x64xf32>
    %94 = arith.select %92, %93, %88 : vector<8x64xi1>, vector<8x64xf32>
    %cst_37 = arith.constant dense<0xFF800000> : vector<8xf32>
    %95 = vector.multi_reduction <maximumf>, %94, %cst_37 [1] : vector<8x64xf32> to vector<8xf32>
    %96 = vector.shape_cast %95 : vector<8xf32> to vector<8x1xf32>
    %97 = vector.broadcast %96 : vector<8x1xf32> to vector<8x64xf32>
    %98 = arith.cmpf oge, %94, %97 : vector<8x64xf32>
    %cst_38 = arith.constant -1.000000e+30 : f32
    %99 = vector.broadcast %cst_38 : f32 to vector<8x64xf32>
    %100 = arith.select %98, %99, %94 : vector<8x64xi1>, vector<8x64xf32>
    %cst_39 = arith.constant dense<0xFF800000> : vector<8xf32>
    %101 = vector.multi_reduction <maximumf>, %100, %cst_39 [1] : vector<8x64xf32> to vector<8xf32>
    %102 = vector.shape_cast %101 : vector<8xf32> to vector<8x1xf32>
    %103 = vector.broadcast %102 : vector<8x1xf32> to vector<8x64xf32>
    %104 = arith.cmpf oge, %100, %103 : vector<8x64xf32>
    %cst_40 = arith.constant -1.000000e+30 : f32
    %105 = vector.broadcast %cst_40 : f32 to vector<8x64xf32>
    %106 = arith.select %104, %105, %100 : vector<8x64xi1>, vector<8x64xf32>
    %cst_41 = arith.constant dense<0xFF800000> : vector<8xf32>
    %107 = vector.multi_reduction <maximumf>, %106, %cst_41 [1] : vector<8x64xf32> to vector<8xf32>
    %108 = vector.shape_cast %107 : vector<8xf32> to vector<8x1xf32>
    %109 = vector.broadcast %108 : vector<8x1xf32> to vector<8x64xf32>
    %110 = arith.cmpf oge, %15, %109 : vector<8x64xf32>
    %cst_42 = arith.constant 0.000000e+00 : f32
    %cst_43 = arith.constant -1.000000e+30 : f32
    %111 = vector.broadcast %cst_42 : f32 to vector<8x64xf32>
    %112 = vector.broadcast %cst_43 : f32 to vector<8x64xf32>
    %113 = arith.select %110, %111, %112 : vector<8x64xi1>, vector<8x64xf32>
    %114 = tpu.concatenate %64, %113 in 1 : vector<8x64xf32>, vector<8x64xf32> -> vector<8x128xf32>
    %cst_44 = arith.constant dense<0.000000e+00> : vector<8xf32>
    %115 = vector.multi_reduction <add>, %5, %cst_44 [1] : vector<8x128xf32> to vector<8xf32>
    %116 = vector.shape_cast %115 : vector<8xf32> to vector<8x1xf32>
    %cst_45 = arith.constant 1.280000e+02 : f32
    %117 = vector.broadcast %cst_45 : f32 to vector<8x1xf32>
    %118 = arith.divf %116, %117 : vector<8x1xf32>
    %119 = vector.broadcast %118 : vector<8x1xf32> to vector<8x128xf32>
    %120 = arith.subf %5, %119 : vector<8x128xf32>
    %121 = arith.mulf %120, %120 : vector<8x128xf32>
    %cst_46 = arith.constant dense<0.000000e+00> : vector<8xf32>
    %122 = vector.multi_reduction <add>, %121, %cst_46 [1] : vector<8x128xf32> to vector<8xf32>
    %123 = vector.shape_cast %122 : vector<8xf32> to vector<8x1xf32>
    %cst_47 = arith.constant 1.280000e+02 : f32
    %124 = vector.broadcast %cst_47 : f32 to vector<8x1xf32>
    %125 = arith.divf %123, %124 : vector<8x1xf32>
    %126 = vector.broadcast %118 : vector<8x1xf32> to vector<8x128xf32>
    %127 = arith.subf %5, %126 : vector<8x128xf32>
    %cst_48 = arith.constant 9.99999974E-6 : f32
    %128 = vector.broadcast %cst_48 : f32 to vector<8x1xf32>
    %129 = arith.addf %125, %128 : vector<8x1xf32>
    %130 = math.sqrt %129 : vector<8x1xf32>
    %131 = vector.broadcast %130 : vector<8x1xf32> to vector<8x128xf32>
    %132 = arith.divf %127, %131 : vector<8x128xf32>
    %133 = arith.truncf %132 : vector<8x128xf32> to vector<8x128xbf16>
    %c0_49 = arith.constant 0 : index
    %c0_50 = arith.constant 0 : index
    %134 = vector.load %arg5[%c0_49, %c0_50] : memref<128x256xbf16, #tpu.memory_space<vmem>>, vector<128x256xbf16>
    %cst_51 = arith.constant dense<0.000000e+00> : vector<8x256xf32>
    %135 = tpu.matmul %133, %134, %cst_51 {dimension_numbers = #tpu.dot_dimension_numbers<[1], [0], [0], [1], [0, 0, 1, 1], [], []>} : vector<8x128xbf16>, vector<128x256xbf16>, vector<8x256xf32> -> vector<8x256xf32>
    %c0_52 = arith.constant 0 : index
    %c0_53 = arith.constant 0 : index
    %136 = vector.load %arg6[%c0_52, %c0_53] : memref<1x256xf32, #tpu.memory_space<vmem>>, vector<1x256xf32>
    %137 = vector.broadcast %136 : vector<1x256xf32> to vector<8x256xf32>
    %138 = arith.addf %135, %137 : vector<8x256xf32>
    %c0_54 = arith.constant 0 : index
    %c0_55 = arith.constant 0 : index
    %139 = vector.load %arg3[%c0_54, %c0_55] : memref<128x256xbf16, #tpu.memory_space<vmem>>, vector<128x256xbf16>
    %c0_56 = arith.constant 0 : index
    %c0_57 = arith.constant 0 : index
    %140 = vector.load %arg7[%c0_56, %c0_57] : memref<256x512xbf16, #tpu.memory_space<vmem>>, vector<256x512xbf16>
    %cst_58 = arith.constant dense<0.000000e+00> : vector<128x512xf32>
    %141 = tpu.matmul %139, %140, %cst_58 {dimension_numbers = #tpu.dot_dimension_numbers<[1], [0], [0], [1], [0, 0, 1, 1], [], []>} : vector<128x256xbf16>, vector<256x512xbf16>, vector<128x512xf32> -> vector<128x512xf32>
    %142 = vector.extract_strided_slice %141 {offsets = [0, 0], sizes = [128, 256], strides = [1, 1]} : vector<128x512xf32> to vector<128x256xf32>
    %143 = arith.truncf %142 : vector<128x256xf32> to vector<128x256xbf16>
    %144 = vector.extract_strided_slice %141 {offsets = [0, 256], sizes = [128, 256], strides = [1, 1]} : vector<128x512xf32> to vector<128x256xf32>
    %145 = arith.truncf %144 : vector<128x256xf32> to vector<128x256xbf16>
    %146 = arith.truncf %138 : vector<8x256xf32> to vector<8x256xbf16>
    %cst_59 = arith.constant dense<0.000000e+00> : vector<8x128xf32>
    %147 = tpu.matmul %146, %143, %cst_59 {dimension_numbers = #tpu.dot_dimension_numbers<[1], [1], [0], [0], [0, 0, 1, 0], [], []>} : vector<8x256xbf16>, vector<128x256xbf16>, vector<8x128xf32> -> vector<8x128xf32>
    %cst_60 = arith.constant 0.0883883461 : f32
    %148 = vector.broadcast %cst_60 : f32 to vector<8x128xf32>
    %149 = arith.mulf %147, %148 : vector<8x128xf32>
    %150 = arith.addf %149, %114 : vector<8x128xf32>
    %151 = vector.extract_strided_slice %150 {offsets = [0, 0], sizes = [8, 64], strides = [1, 1]} : vector<8x128xf32> to vector<8x64xf32>
    %cst_61 = arith.constant dense<0xFF800000> : vector<8xf32>
    %152 = vector.multi_reduction <maximumf>, %151, %cst_61 [1] : vector<8x64xf32> to vector<8xf32>
    %153 = vector.shape_cast %152 : vector<8xf32> to vector<8x1xf32>
    %154 = vector.broadcast %153 : vector<8x1xf32> to vector<8x64xf32>
    %155 = arith.subf %151, %154 : vector<8x64xf32>
    %156 = math.exp %155 : vector<8x64xf32>
    %cst_62 = arith.constant dense<0.000000e+00> : vector<8xf32>
    %157 = vector.multi_reduction <add>, %156, %cst_62 [1] : vector<8x64xf32> to vector<8xf32>
    %158 = vector.shape_cast %157 : vector<8xf32> to vector<8x1xf32>
    %159 = vector.broadcast %158 : vector<8x1xf32> to vector<8x64xf32>
    %160 = arith.divf %156, %159 : vector<8x64xf32>
    %161 = vector.extract_strided_slice %150 {offsets = [0, 64], sizes = [8, 64], strides = [1, 1]} : vector<8x128xf32> to vector<8x64xf32>
    %cst_63 = arith.constant dense<0xFF800000> : vector<8xf32>
    %162 = vector.multi_reduction <maximumf>, %161, %cst_63 [1] : vector<8x64xf32> to vector<8xf32>
    %163 = vector.shape_cast %162 : vector<8xf32> to vector<8x1xf32>
    %164 = vector.broadcast %163 : vector<8x1xf32> to vector<8x64xf32>
    %165 = arith.subf %161, %164 : vector<8x64xf32>
    %166 = math.exp %165 : vector<8x64xf32>
    %cst_64 = arith.constant dense<0.000000e+00> : vector<8xf32>
    %167 = vector.multi_reduction <add>, %166, %cst_64 [1] : vector<8x64xf32> to vector<8xf32>
    %168 = vector.shape_cast %167 : vector<8xf32> to vector<8x1xf32>
    %169 = vector.broadcast %168 : vector<8x1xf32> to vector<8x64xf32>
    %170 = arith.divf %166, %169 : vector<8x64xf32>
    %171 = tpu.concatenate %160, %170 in 1 : vector<8x64xf32>, vector<8x64xf32> -> vector<8x128xf32>
    %172 = arith.truncf %171 : vector<8x128xf32> to vector<8x128xbf16>
    %cst_65 = arith.constant dense<0.000000e+00> : vector<8x256xf32>
    %173 = tpu.matmul %172, %145, %cst_65 {dimension_numbers = #tpu.dot_dimension_numbers<[1], [0], [0], [1], [0, 0, 1, 1], [], []>} : vector<8x128xbf16>, vector<128x256xbf16>, vector<8x256xf32> -> vector<8x256xf32>
    %c0_66 = arith.constant 0 : index
    %c0_67 = arith.constant 0 : index
    %174 = vector.load %arg8[%c0_66, %c0_67] : memref<1x256xf32, #tpu.memory_space<vmem>>, vector<1x256xf32>
    %175 = vector.broadcast %174 : vector<1x256xf32> to vector<8x256xf32>
    %176 = arith.addf %173, %175 : vector<8x256xf32>
    %177 = arith.truncf %176 : vector<8x256xf32> to vector<8x256xbf16>
    %c0_68 = arith.constant 0 : index
    %c0_69 = arith.constant 0 : index
    %178 = vector.load %arg9[%c0_68, %c0_69] : memref<256x256xbf16, #tpu.memory_space<vmem>>, vector<256x256xbf16>
    %cst_70 = arith.constant dense<0.000000e+00> : vector<8x256xf32>
    %179 = tpu.matmul %177, %178, %cst_70 {dimension_numbers = #tpu.dot_dimension_numbers<[1], [0], [0], [1], [0, 0, 1, 1], [], []>} : vector<8x256xbf16>, vector<256x256xbf16>, vector<8x256xf32> -> vector<8x256xf32>
    %c0_71 = arith.constant 0 : index
    %c0_72 = arith.constant 0 : index
    %180 = vector.load %arg10[%c0_71, %c0_72] : memref<1x256xf32, #tpu.memory_space<vmem>>, vector<1x256xf32>
    %181 = vector.broadcast %180 : vector<1x256xf32> to vector<8x256xf32>
    %182 = arith.addf %179, %181 : vector<8x256xf32>
    %183 = arith.addf %7, %182 : vector<8x256xf32>
    %184 = vector.extract_strided_slice %183 {offsets = [0, 0], sizes = [8, 128], strides = [1, 1]} : vector<8x256xf32> to vector<8x128xf32>
    %cst_73 = arith.constant dense<0.000000e+00> : vector<8xf32>
    %185 = vector.multi_reduction <add>, %184, %cst_73 [1] : vector<8x128xf32> to vector<8xf32>
    %186 = vector.shape_cast %185 : vector<8xf32> to vector<8x1xf32>
    %cst_74 = arith.constant 1.280000e+02 : f32
    %187 = vector.broadcast %cst_74 : f32 to vector<8x1xf32>
    %188 = arith.divf %186, %187 : vector<8x1xf32>
    %189 = vector.broadcast %188 : vector<8x1xf32> to vector<8x128xf32>
    %190 = arith.subf %184, %189 : vector<8x128xf32>
    %191 = arith.mulf %190, %190 : vector<8x128xf32>
    %cst_75 = arith.constant dense<0.000000e+00> : vector<8xf32>
    %192 = vector.multi_reduction <add>, %191, %cst_75 [1] : vector<8x128xf32> to vector<8xf32>
    %193 = vector.shape_cast %192 : vector<8xf32> to vector<8x1xf32>
    %cst_76 = arith.constant 1.280000e+02 : f32
    %194 = vector.broadcast %cst_76 : f32 to vector<8x1xf32>
    %195 = arith.divf %193, %194 : vector<8x1xf32>
    %196 = vector.broadcast %188 : vector<8x1xf32> to vector<8x128xf32>
    %197 = arith.subf %184, %196 : vector<8x128xf32>
    %cst_77 = arith.constant 9.99999974E-6 : f32
    %198 = vector.broadcast %cst_77 : f32 to vector<8x1xf32>
    %199 = arith.addf %195, %198 : vector<8x1xf32>
    %200 = math.sqrt %199 : vector<8x1xf32>
    %201 = vector.broadcast %200 : vector<8x1xf32> to vector<8x128xf32>
    %202 = arith.divf %197, %201 : vector<8x128xf32>
    %203 = vector.extract_strided_slice %183 {offsets = [0, 128], sizes = [8, 128], strides = [1, 1]} : vector<8x256xf32> to vector<8x128xf32>
    %cst_78 = arith.constant dense<0.000000e+00> : vector<8xf32>
    %204 = vector.multi_reduction <add>, %203, %cst_78 [1] : vector<8x128xf32> to vector<8xf32>
    %205 = vector.shape_cast %204 : vector<8xf32> to vector<8x1xf32>
    %cst_79 = arith.constant 1.280000e+02 : f32
    %206 = vector.broadcast %cst_79 : f32 to vector<8x1xf32>
    %207 = arith.divf %205, %206 : vector<8x1xf32>
    %208 = vector.broadcast %207 : vector<8x1xf32> to vector<8x128xf32>
    %209 = arith.subf %203, %208 : vector<8x128xf32>
    %210 = arith.mulf %209, %209 : vector<8x128xf32>
    %cst_80 = arith.constant dense<0.000000e+00> : vector<8xf32>
    %211 = vector.multi_reduction <add>, %210, %cst_80 [1] : vector<8x128xf32> to vector<8xf32>
    %212 = vector.shape_cast %211 : vector<8xf32> to vector<8x1xf32>
    %cst_81 = arith.constant 1.280000e+02 : f32
    %213 = vector.broadcast %cst_81 : f32 to vector<8x1xf32>
    %214 = arith.divf %212, %213 : vector<8x1xf32>
    %215 = vector.broadcast %207 : vector<8x1xf32> to vector<8x128xf32>
    %216 = arith.subf %203, %215 : vector<8x128xf32>
    %cst_82 = arith.constant 9.99999974E-6 : f32
    %217 = vector.broadcast %cst_82 : f32 to vector<8x1xf32>
    %218 = arith.addf %214, %217 : vector<8x1xf32>
    %219 = math.sqrt %218 : vector<8x1xf32>
    %220 = vector.broadcast %219 : vector<8x1xf32> to vector<8x128xf32>
    %221 = arith.divf %216, %220 : vector<8x128xf32>
    %222 = tpu.concatenate %202, %221 in 1 : vector<8x128xf32>, vector<8x128xf32> -> vector<8x256xf32>
    %223 = arith.truncf %222 : vector<8x256xf32> to vector<8x256xbf16>
    %c0_83 = arith.constant 0 : index
    %c0_84 = arith.constant 0 : index
    %224 = vector.load %arg11[%c0_83, %c0_84] : memref<256x1024xbf16, #tpu.memory_space<vmem>>, vector<256x1024xbf16>
    %cst_85 = arith.constant dense<0.000000e+00> : vector<8x1024xf32>
    %225 = tpu.matmul %223, %224, %cst_85 {dimension_numbers = #tpu.dot_dimension_numbers<[1], [0], [0], [1], [0, 0, 1, 1], [], []>} : vector<8x256xbf16>, vector<256x1024xbf16>, vector<8x1024xf32> -> vector<8x1024xf32>
    %c0_86 = arith.constant 0 : index
    %c0_87 = arith.constant 0 : index
    %226 = vector.load %arg12[%c0_86, %c0_87] : memref<1x1024xf32, #tpu.memory_space<vmem>>, vector<1x1024xf32>
    %227 = vector.broadcast %226 : vector<1x1024xf32> to vector<8x1024xf32>
    %228 = arith.addf %225, %227 : vector<8x1024xf32>
    %cst_88 = arith.constant 1.702000e+00 : f32
    %229 = vector.broadcast %cst_88 : f32 to vector<8x1024xf32>
    %230 = arith.mulf %229, %228 : vector<8x1024xf32>
    %231 = arith.negf %230 : vector<8x1024xf32>
    %232 = math.exp %231 : vector<8x1024xf32>
    %cst_89 = arith.constant 1.000000e+00 : f32
    %233 = vector.broadcast %cst_89 : f32 to vector<8x1024xf32>
    %234 = arith.addf %233, %232 : vector<8x1024xf32>
    %235 = arith.divf %233, %234 : vector<8x1024xf32>
    %236 = arith.mulf %228, %235 : vector<8x1024xf32>
    %237 = arith.truncf %236 : vector<8x1024xf32> to vector<8x1024xbf16>
    %c0_90 = arith.constant 0 : index
    %c0_91 = arith.constant 0 : index
    %238 = vector.load %arg13[%c0_90, %c0_91] : memref<1024x256xbf16, #tpu.memory_space<vmem>>, vector<1024x256xbf16>
    %cst_92 = arith.constant dense<0.000000e+00> : vector<8x256xf32>
    %239 = tpu.matmul %237, %238, %cst_92 {dimension_numbers = #tpu.dot_dimension_numbers<[1], [0], [0], [1], [0, 0, 1, 1], [], []>} : vector<8x1024xbf16>, vector<1024x256xbf16>, vector<8x256xf32> -> vector<8x256xf32>
    %c0_93 = arith.constant 0 : index
    %c0_94 = arith.constant 0 : index
    %240 = vector.load %arg14[%c0_93, %c0_94] : memref<1x256xf32, #tpu.memory_space<vmem>>, vector<1x256xf32>
    %241 = vector.broadcast %240 : vector<1x256xf32> to vector<8x256xf32>
    %242 = arith.addf %239, %241 : vector<8x256xf32>
    %243 = arith.addf %183, %242 : vector<8x256xf32>
    %244 = arith.addf %243, %7 : vector<8x256xf32>
    %245 = vector.extract_strided_slice %244 {offsets = [0, 0], sizes = [8, 128], strides = [1, 1]} : vector<8x256xf32> to vector<8x128xf32>
    %246 = arith.mulf %245, %245 : vector<8x128xf32>
    %cst_95 = arith.constant dense<0.000000e+00> : vector<8xf32>
    %247 = vector.multi_reduction <add>, %246, %cst_95 [1] : vector<8x128xf32> to vector<8xf32>
    %248 = vector.shape_cast %247 : vector<8xf32> to vector<8x1xf32>
    %249 = math.sqrt %248 : vector<8x1xf32>
    %cst_96 = arith.constant 9.99999996E-13 : f32
    %250 = vector.broadcast %cst_96 : f32 to vector<8x1xf32>
    %251 = arith.maximumf %249, %250 : vector<8x1xf32>
    %252 = vector.broadcast %251 : vector<8x1xf32> to vector<8x128xf32>
    %253 = arith.divf %245, %252 : vector<8x128xf32>
    %254 = vector.extract_strided_slice %244 {offsets = [0, 128], sizes = [8, 128], strides = [1, 1]} : vector<8x256xf32> to vector<8x128xf32>
    %255 = arith.mulf %254, %254 : vector<8x128xf32>
    %cst_97 = arith.constant dense<0.000000e+00> : vector<8xf32>
    %256 = vector.multi_reduction <add>, %255, %cst_97 [1] : vector<8x128xf32> to vector<8xf32>
    %257 = vector.shape_cast %256 : vector<8xf32> to vector<8x1xf32>
    %258 = math.sqrt %257 : vector<8x1xf32>
    %cst_98 = arith.constant 9.99999996E-13 : f32
    %259 = vector.broadcast %cst_98 : f32 to vector<8x1xf32>
    %260 = arith.maximumf %258, %259 : vector<8x1xf32>
    %261 = vector.broadcast %260 : vector<8x1xf32> to vector<8x128xf32>
    %262 = arith.divf %254, %261 : vector<8x128xf32>
    %263 = tpu.concatenate %253, %262 in 1 : vector<8x128xf32>, vector<8x128xf32> -> vector<8x256xf32>
    %264 = arith.truncf %263 : vector<8x256xf32> to vector<8x256xbf16>
    %c0_99 = arith.constant 0 : index
    %c0_100 = arith.constant 0 : index
    %265 = vector.load %arg15[%c0_99, %c0_100] : memref<16x256xbf16, #tpu.memory_space<vmem>>, vector<16x256xbf16>
    %cst_101 = arith.constant dense<0.000000e+00> : vector<8x16xf32>
    %266 = tpu.matmul %264, %265, %cst_101 {dimension_numbers = #tpu.dot_dimension_numbers<[1], [1], [0], [0], [0, 0, 1, 0], [], []>} : vector<8x256xbf16>, vector<16x256xbf16>, vector<8x16xf32> -> vector<8x16xf32>
    %cst_102 = arith.constant 1.600000e+01 : f32
    %267 = vector.broadcast %cst_102 : f32 to vector<8x16xf32>
    %268 = arith.mulf %266, %267 : vector<8x16xf32>
    %c0_103 = arith.constant 0 : index
    %c0_104 = arith.constant 0 : index
    %269 = vector.load %arg16[%c0_103, %c0_104] : memref<8x16xf32, #tpu.memory_space<vmem>>, vector<8x16xf32>
    tpu.vector_store %arg16[%c0_103, %c0_104], %268 {strides = array<i32>} : memref<8x16xf32, #tpu.memory_space<vmem>>, vector<8x16xf32>,
    return
  }
}

</mosaic_0001>

<bundles_post_ra>
// kernel: tpu_custom_call.1
= control target key start
LH: loop header
LB: loop body
LE: loop exit
PB: predicated region body
PF: predicated region fallthrough
CT: control target
= control target key end

     0   :  { %s6075_s0 = inlined_call_operand.hbm [shape: bf16[8,768], index: 0, kind: input, shape index: {}]   ;;  %s6076_s1 = inlined_call_operand.hbm [shape: bf16[768,128], index: 1, kind: input, shape index: {}]   ;;  %s6077_s2 = inlined_call_operand.vmem [shape: f32[1,128], index: 2, kind: input, shape index: {}]   ;;  %s6078_s3 = inlined_call_operand.hbm [shape: bf16[128,256], index: 3, kind: input, shape index: {}]   ;;  %s6079_s4 = inlined_call_operand.hbm [shape: f32[1,128], index: 4, kind: input, shape index: {}]   ;;  %s6080_s5 = inlined_call_operand.hbm [shape: bf16[128,256], index: 5, kind: input, shape index: {}]   ;;  %s6081_s6 = inlined_call_operand.vmem [shape: f32[1,256], index: 6, kind: input, shape index: {}]   ;;  %s6082_s7 = inlined_call_operand.hbm [shape: bf16[256,512], index: 7, kind: input, shape index: {}]   ;;  %s6083_s8 = inlined_call_operand.hbm [shape: f32[1,256], index: 8, kind: input, shape index: {}]   ;;  %s6084_s9 = inlined_call_operand.hbm [shape: bf16[256,256], index: 9, kind: input, shape index: {}]   ;;  %s6085_s10 = inlined_call_operand.hbm [shape: f32[1,256], index: 10, kind: input, shape index: {}]   ;;  %s6086_s11 = inlined_call_operand.hbm [shape: bf16[256,1024], index: 11, kind: input, shape index: {}]   ;;  %s6087_s12 = inlined_call_operand.vmem [shape: f32[1,1024], index: 12, kind: input, shape index: {}]   ;;  %s6088_s13 = inlined_call_operand.hbm [shape: bf16[1024,256], index: 13, kind: input, shape index: {}]   ;;  %s6089_s14 = inlined_call_operand.hbm [shape: f32[1,256], index: 14, kind: input, shape index: {}]   ;;  %s6090_s15 = inlined_call_operand.vmem [shape: bf16[16,256], index: 15, kind: input, shape index: {}]   ;;  %s6091_s16 = inlined_call_operand.hbm [shape: f32[8,16], index: 16, kind: output, shape index: {}]  }
   0x1   :  { %6092 = sst [smem:[#allocation31_spill]] %s6075_s0 }
   0x2   :  { %21 = vsyncpa [#allocation3], 0 }
   0x3   :  { %22 = vsyncpa [#allocation6], 0 }
   0x4   :  { %23 = vsyncpa [#allocation9], 0 }
   0x5   :  { %24 = vsyncpa [#allocation12], 0 }
   0x6   :  { %25 = vsyncpa [#allocation15], 0 }
   0x7   :  { %26 = vsyncpa [#allocation18], 0 }
   0x8   :  { %27 = vsyncpa [#allocation21], 0 }
   0x9   :  { %28 = vsyncpa [#allocation4], 0  ;;  %s5618_s21 = smov [#allocation5]  }
   0xa   :  { %s44_s22 = sshll.u32 %s5618_s21, 4  ;;  %s45_s22 = int_to_ptr.vmem [resolvable:$true] %s44_s22 }
   0xb   :  { %s5350_s23 = scalar_lea.vmem %s45_s22, 6144  ;;  %p5355_p1 = scmp.lt.s32.totalorder %s45_s22, %s45_s22 }
   0xc   :  { %p5351_p0 = scmp.ne.s32.totalorder %s45_s22, %s5350_s23  ;;  %p5356_p2 = scmp.lt.s32.totalorder %s5350_s23, %s5350_s23 }
   0xe   :  { %p5357_p3 = por %p5356_p2, %p5355_p1 }
  0x10   :  { %p5358_p4 = pnand %p5357_p3, %p5351_p0 }
  0x12   :  { %5361 = shalt.err (!%p5358_p4)
}
  0x13   :  { %s5619_s24 = smov 64   ;;  %s5620_s25 = smov 4  }
  0x14   :  { %50 = dma.hbm_to_vmem [thread:$0]  %s6076_s1, 6144, %s45_s22, [#allocation6], %s5619_s24, %s5619_s24, %s5620_s25  }
  0x15   :  { %s5621_s28 = smov [#allocation8]   ;;  %s5622_s30 = smov [#allocation11]  }
  0x16   :  { %s71_s29 = sshll.u32 %s5621_s28, 4  ;;  %s94_s0 = sshll.u32 %s5622_s30, 4  ;;  %s72_s29 = int_to_ptr.vmem [resolvable:$true] %s71_s29  ;;  %s95_s0 = int_to_ptr.vmem [resolvable:$true] %s94_s0 }
  0x17   :  { %s5370_s17 = scalar_lea.vmem %s72_s29, 16  ;;  %s5374_s18 = scalar_lea.vmem %s72_s29, 32 }
  0x18   :  { %p5371_p5 = scmp.ne.s32.totalorder %s72_s29, %s5370_s17  ;;  %p5375_p6 = scmp.lt.s32.totalorder %s72_s29, %s72_s29 }
  0x19   :  { %p5376_p7 = scmp.lt.s32.totalorder %s5374_s18, %s5370_s17 }
  0x1b   :  { %p5377_p8 = por %p5376_p7, %p5375_p6 }
  0x1d   :  { %p5378_p9 = pnand %p5377_p8, %p5371_p5 }
  0x1f   :  { %5381 = shalt.err (!%p5378_p9)
}
  0x20   :  { %74 = dma.hbm_to_vmem [thread:$0]  %s6079_s4, 16, %s72_s29, [#allocation9]  }
  0x21   :  { %s5390_s21 = scalar_lea.vmem %s95_s0, 8192  ;;  %p5395_p11 = scmp.lt.s32.totalorder %s95_s0, %s95_s0 }
  0x22   :  { %p5391_p10 = scmp.ne.s32.totalorder %s95_s0, %s5390_s21  ;;  %p5396_p12 = scmp.lt.s32.totalorder %s5390_s21, %s5390_s21 }
  0x24   :  { %p5397_p13 = por %p5396_p12, %p5395_p11 }
  0x26   :  { %p5398_p0 = pnand %p5397_p13, %p5391_p10 }
  0x28   :  { %5401 = shalt.err (!%p5398_p0)
}
  0x29   :  { %s5623_s1 = smov 256   ;;  %s5624_s22 = smov 16  }
  0x2a   :  { %100 = dma.hbm_to_vmem [thread:$0]  %s6082_s7, 8192, %s95_s0, [#allocation12], %s5623_s1, %s5623_s1, %s5624_s22  }
  0x2b   :  { %s5625_s26 = smov [#allocation14]   ;;  %s5626_s28 = smov [#allocation17]  }
  0x2c   :  { %s116_s27 = sshll.u32 %s5625_s26, 4  ;;  %s138_s30 = sshll.u32 %s5626_s28, 4  ;;  %s117_s27 = int_to_ptr.vmem [resolvable:$true] %s116_s27  ;;  %s139_s30 = int_to_ptr.vmem [resolvable:$true] %s138_s30 }
  0x2d   :  { %s5410_s4 = scalar_lea.vmem %s117_s27, 4096  ;;  %p5415_p2 = scmp.lt.s32.totalorder %s117_s27, %s117_s27 }
  0x2e   :  { %p5411_p1 = scmp.ne.s32.totalorder %s117_s27, %s5410_s4  ;;  %p5416_p3 = scmp.lt.s32.totalorder %s5410_s4, %s5410_s4 }
  0x30   :  { %p5417_p4 = por %p5416_p3, %p5415_p2 }
  0x32   :  { %p5418_p5 = pnand %p5417_p4, %p5411_p1 }
  0x34   :  { %5421 = shalt.err (!%p5418_p5)
}
  0x35   :  { %s5627_s29 = smov 128   ;;  %s5628_s17 = smov 8  }
  0x36   :  { %122 = dma.hbm_to_vmem [thread:$0]  %s6084_s9, 4096, %s117_s27, [#allocation15], %s5627_s29, %s5627_s29, %s5628_s17  }
  0x37   :  { %s5430_s7 = scalar_lea.vmem %s139_s30, 16384  ;;  %p5435_p7 = scmp.lt.s32.totalorder %s139_s30, %s139_s30 }
  0x38   :  { %p5431_p6 = scmp.ne.s32.totalorder %s139_s30, %s5430_s7  ;;  %p5436_p8 = scmp.lt.s32.totalorder %s5430_s7, %s5430_s7 }
  0x3a   :  { %p5437_p9 = por %p5436_p8, %p5435_p7 }
  0x3c   :  { %p5438_p10 = pnand %p5437_p9, %p5431_p6 }
  0x3e   :  { %5441 = shalt.err (!%p5438_p10)
}
  0x3f   :  { %s5629_s0 = smov 512   ;;  %s5630_s20 = smov 32  }
  0x40   :  { %144 = dma.hbm_to_vmem [thread:$0]  %s6086_s11, 16384, %s139_s30, [#allocation18], %s5629_s0, %s5629_s0, %s5630_s20  }
  0x41   :  { %s5631_s22 = smov [#allocation2]   ;;  %s5632_s25 = smov [#allocation7]  }
  0x42   :  { %s35_s23 = sshll.u32 %s5631_s22, 4  ;;  %s58_s26 = sshll.u32 %s5632_s25, 4  ;;  %s36_s23 = int_to_ptr.vmem [resolvable:$true] %s35_s23  ;;  %s59_s26 = int_to_ptr.vmem [resolvable:$true] %s58_s26 }
  0x43   :  { %s5450_s9 = scalar_lea.vmem %s36_s23, 384  ;;  %p5455_p12 = scmp.lt.s32.totalorder %s36_s23, %s36_s23 }
  0x44   :  { %p5451_p11 = scmp.ne.s32.totalorder %s36_s23, %s5450_s9  ;;  %p5456_p13 = scmp.lt.s32.totalorder %s5450_s9, %s5450_s9 }
  0x46   :  { %p5457_p0 = por %p5456_p13, %p5455_p12 }
  0x48   :  { %p5458_p1 = pnand %p5457_p0, %p5451_p11 }
  0x4a   :  { %5461 = shalt.err (!%p5458_p1)
}
  0x4b   :  { %s6093_s4 = sld [smem:[#allocation31_spill]]  ;;  %s5470_s18 = scalar_lea.vmem %s59_s26, 2048 }
  0x4c   :  { %p5471_p2 = scmp.ne.s32.totalorder %s59_s26, %s5470_s18  ;;  %p5475_p3 = scmp.lt.s32.totalorder %s59_s26, %s59_s26 }
  0x4d   :  { %p5476_p4 = scmp.lt.s32.totalorder %s5470_s18, %s5470_s18 }
  0x4f   :  { %p5477_p5 = por %p5476_p4, %p5475_p3 }
  0x51   :  { %38 = dma.hbm_to_vmem [thread:$0]  %s6093_s4, 384, %s36_s23, [#allocation3]  }
  0x52   :  { %p5478_p6 = pnand %p5477_p5, %p5471_p2 }
  0x54   :  { %5481 = shalt.err (!%p5478_p6)
}
  0x55   :  { %64 = dma.hbm_to_vmem [thread:$0]  %s6078_s3, 2048, %s59_s26, [#allocation6], %s5627_s29, %s5627_s29, %s5628_s17  }
  0x56   :  { %s5633_s19 = smov [#allocation10]   ;;  %s5634_s0 = smov [#allocation13]  }
  0x57   :  { %s80_s7 = sshll.u32 %s5633_s19, 4  ;;  %s107_s20 = sshll.u32 %s5634_s0, 4  ;;  %s81_s7 = int_to_ptr.vmem [resolvable:$true] %s80_s7  ;;  %s108_s20 = int_to_ptr.vmem [resolvable:$true] %s107_s20 }
  0x58   :  { %s5490_s21 = scalar_lea.vmem %s81_s7, 2048  ;;  %p5495_p8 = scmp.lt.s32.totalorder %s81_s7, %s81_s7 }
  0x59   :  { %p5491_p7 = scmp.ne.s32.totalorder %s81_s7, %s5490_s21  ;;  %p5496_p9 = scmp.lt.s32.totalorder %s5490_s21, %s5490_s21 }
  0x5b   :  { %p5497_p10 = por %p5496_p9, %p5495_p8 }
  0x5d   :  { %p5498_p11 = pnand %p5497_p10, %p5491_p7 }
  0x5f   :  { %5501 = shalt.err (!%p5498_p11)
}
  0x60   :  { %86 = dma.hbm_to_vmem [thread:$0]  %s6080_s5, 2048, %s81_s7, [#allocation9], %s5627_s29, %s5627_s29, %s5628_s17  }
  0x61   :  { %s5510_s3 = scalar_lea.vmem %s108_s20, 32  ;;  %p5515_p13 = scmp.lt.s32.totalorder %s108_s20, %s108_s20 }
  0x62   :  { %p5511_p12 = scmp.ne.s32.totalorder %s108_s20, %s5510_s3  ;;  %p5516_p0 = scmp.lt.s32.totalorder %s5510_s3, %s5510_s3 }
  0x64   :  { %p5517_p1 = por %p5516_p0, %p5515_p13 }
  0x66   :  { %p5518_p2 = pnand %p5517_p1, %p5511_p12 }
  0x68   :  { %5521 = shalt.err (!%p5518_p2)
}
  0x69   :  { %110 = dma.hbm_to_vmem [thread:$0]  %s6083_s8, 32, %s108_s20, [#allocation12]  }
  0x6a   :  { %s5635_s26 = smov [#allocation16]   ;;  %s5636_s27 = smov [#allocation19]  }
  0x6b   :  { %s129_s9 = sshll.u32 %s5635_s26, 4  ;;  %s152_s28 = sshll.u32 %s5636_s27, 4  ;;  %s130_s9 = int_to_ptr.vmem [resolvable:$true] %s129_s9  ;;  %s153_s28 = int_to_ptr.vmem [resolvable:$true] %s152_s28 }
  0x6c   :  { %s5530_s4 = scalar_lea.vmem %s130_s9, 32  ;;  %p5535_p4 = scmp.lt.s32.totalorder %s130_s9, %s130_s9 }
  0x6d   :  { %p5531_p3 = scmp.ne.s32.totalorder %s130_s9, %s5530_s4  ;;  %p5536_p5 = scmp.lt.s32.totalorder %s5530_s4, %s5530_s4 }
  0x6f   :  { %p5537_p6 = por %p5536_p5, %p5535_p4 }
  0x71   :  { %p5538_p7 = pnand %p5537_p6, %p5531_p3 }
  0x73   :  { %5541 = shalt.err (!%p5538_p7)
}
  0x74   :  { %132 = dma.hbm_to_vmem [thread:$0]  %s6085_s10, 32, %s130_s9, [#allocation15]  }
  0x75   :  { %s5550_s11 = scalar_lea.vmem %s153_s28, 16384  ;;  %p5555_p9 = scmp.lt.s32.totalorder %s153_s28, %s153_s28 }
  0x76   :  { %p5551_p8 = scmp.ne.s32.totalorder %s153_s28, %s5550_s11  ;;  %p5556_p10 = scmp.lt.s32.totalorder %s5550_s11, %s5550_s11 }
  0x78   :  { %p5557_p11 = por %p5556_p10, %p5555_p9 }
  0x7a   :  { %p5558_p12 = pnand %p5557_p11, %p5551_p8 }
  0x7c   :  { %5561 = shalt.err (!%p5558_p12)
}
  0x7d   :  { %158 = dma.hbm_to_vmem [thread:$0]  %s6088_s13, 16384, %s153_s28, [#allocation18], %s5627_s29, %s5627_s29, %s5628_s17  }
  0x7e   :  { %s5637_s19 = smov [#allocation20]  }
  0x7f   :  { %s165_s7 = sshll.u32 %s5637_s19, 4  ;;  %s166_s7 = int_to_ptr.vmem [resolvable:$true] %s165_s7 }
  0x80   :  { %s5570_s0 = scalar_lea.vmem %s166_s7, 32  ;;  %p5575_p0 = scmp.lt.s32.totalorder %s166_s7, %s166_s7 }
  0x81   :  { %p5571_p13 = scmp.ne.s32.totalorder %s166_s7, %s5570_s0  ;;  %p5576_p1 = scmp.lt.s32.totalorder %s5570_s0, %s5570_s0 }
  0x83   :  { %p5577_p2 = por %p5576_p1, %p5575_p0 }
  0x85   :  { %p5578_p3 = pnand %p5577_p2, %p5571_p13 }
  0x87   :  { %5581 = shalt.err (!%p5578_p3)
}
  0x88   :  { %168 = dma.hbm_to_vmem [thread:$0]  %s6089_s14, 32, %s166_s7, [#allocation21]  }
  0x89   :  { %5602 = dma.done.wait [#allocation3], 384  }
  0x8a   :  { %5603 = vsyncadd [#allocation3], 4294966912 }
  0x8b   :  { %5604 = dma.done.wait [#allocation6], 8192  }
  0x8c   :  { %5605 = vsyncadd [#allocation6], 4294959104 }
  0x8d   :  { %5606 = dma.done.wait [#allocation9], 2064  }
  0x8e   :  { %5607 = vsyncadd [#allocation9], 4294965232 }
  0x8f   :  { %5608 = dma.done.wait [#allocation12], 8224  }
  0x90   :  { %5609 = vsyncadd [#allocation12], 4294959072 }
  0x91   :  { %5610 = dma.done.wait [#allocation15], 4128  }
  0x92   :  { %5611 = vsyncadd [#allocation15], 4294963168 }
  0x93   :  { %5612 = dma.done.wait [#allocation18], 32768  }
  0x94   :  { %5613 = vsyncadd [#allocation18], 4294934528 }
  0x95   :  { %5614 = dma.done.wait [#allocation21], 32  }
  0x96   :  { %5615 = vsyncadd [#allocation21], 4294967264  ;;  %v4831_v0 = vld [vmem:[#allocation5 + $0x78] sm:$0xff]   ;;  %v4833_v2 = vld [vmem:[#allocation5 + $0x70] sm:$0xff]   ;;  %vm888_vm0 = vcmask 523264   ;;  %vm929_vm1 = vcmask 1048064  }
  0x97   :  { %v4832_v1 = vld [vmem:[#allocation5 + $0x38] sm:$0xff]   ;;  %4742 = vmatprep.subr.bf16.mxu1 %v4831_v0  ;;  %v4834_v3 = vld [vmem:[#allocation5 + $0x30] sm:$0xff]   ;;  %v4835_v4 = vld [vmem:[#allocation5 + $0x68] sm:$0xff]  }
  0x98   :  { %4743 = vmatpush3.bf16.msra.mxu1 %v4832_v1  ;;  %v4836_v5 = vld [vmem:[#allocation5 + $0x28] sm:$0xff]   ;;  %v4837_v6 = vld [vmem:[#allocation5 + $0x60] sm:$0xff]   ;;  %v4839_v8 = vld [vmem:[#allocation5 + $0x58] sm:$0xff]  }
  0x99   :  { %4744 = vmatprep.subr.bf16.mxu1 %v4833_v2  ;;  %v4838_v7 = vld [vmem:[#allocation5 + $0x20] sm:$0xff]   ;;  %v4840_v9 = vld [vmem:[#allocation5 + $0x18] sm:$0xff]   ;;  %v4841_v11 = vld [vmem:[#allocation5 + $0x50] sm:$0xff]  }
  0x9a   :  { %v4846_v10 = vld [vmem:[#allocation5 + $0x178] sm:$0xff]   ;;  %v4842_v12 = vld [vmem:[#allocation5 + $0x10] sm:$0xff]   ;;  %v208_v14 = vld [vmem:[#allocation2] sm:$0xff] }
  0x9b   :  { %4786 = vmatprep.subr.bf16.mxu0 %v4846_v10  ;;  %v4848_v13 = vld [vmem:[#allocation5 + $0x138] sm:$0xff]   ;;  %v4843_v15 = vld [vmem:[#allocation5 + $0x48] sm:$0xff]   ;;  %v4294_v16 = vcombine.high %v208_v14, %v208_v14  ;;  %v4852_v17 = vld [vmem:[#allocation5 + $0x170] sm:$0xff]   ;;  %v4293_v27 = vcombine.low %v208_v14, %v208_v14 }
  0x9c   :  { %4745 = vmatpush3.bf16.msra.mxu1 %v4834_v3  ;;  %4787 = vmatpush3.bf16.msra.mxu0 %v4848_v13  ;;  %v4844_v18 = vld [vmem:[#allocation5 + $0x8] sm:$0xff]   ;;  %v4854_v19 = vld [vmem:[#allocation5 + $0x130] sm:$0xff]   ;;  %v4845_v20 = vld [vmem:[#allocation5 + $0x40] sm:$0xff]  }
  0x9d   :  { %4746 = vmatprep.subr.bf16.mxu1 %v4835_v4  ;;  %655 = vmatprep.mubr.bf16.mxu1 %v4294_v16  ;;  %v4856_v21 = vld [vmem:[#allocation5 + $0x168] sm:$0xff]   ;;  %v4847_v22 = vld [vmem:[#allocation5] sm:$0xff]   ;;  %v4851_v24 = vld [vmem:[#allocation5 + $0xf8] sm:$0xff]  }
  0x9e   :  { %4788 = vmatprep.subr.bf16.mxu0 %v4852_v17  ;;  %v4858_v23 = vld [vmem:[#allocation5 + $0x128] sm:$0xff]   ;;  %v4860_v25 = vld [vmem:[#allocation5 + $0x160] sm:$0xff]   ;;  %v4853_v26 = vld [vmem:[#allocation5 + $0xb8] sm:$0xff]  }
  0x9f   :  { %v4862_v28 = vld [vmem:[#allocation5 + $0x120] sm:$0xff]   ;;  %v4855_v29 = vld [vmem:[#allocation5 + $0xf0] sm:$0xff]   ;;  %v4864_v30 = vld [vmem:[#allocation5 + $0x158] sm:$0xff]  }
  0xa0   :  { %4747 = vmatpush3.bf16.msra.mxu1 %v4836_v5  ;;  %4789 = vmatpush3.bf16.msra.mxu0 %v4854_v19  ;;  %v4857_v31 = vld [vmem:[#allocation5 + $0xb0] sm:$0xff]   ;;  %v4866_v32 = vld [vmem:[#allocation5 + $0x118] sm:$0xff]   ;;  %v4859_v33 = vld [vmem:[#allocation5 + $0xe8] sm:$0xff]  }
  0xa1   :  { %4748 = vmatprep.subr.bf16.mxu1 %v4837_v6  ;;  %4790 = vmatprep.subr.bf16.mxu0 %v4856_v21  ;;  %v4868_v34 = vld [vmem:[#allocation5 + $0x150] sm:$0xff]   ;;  %v4861_v35 = vld [vmem:[#allocation5 + $0xa8] sm:$0xff]   ;;  %v4863_v37 = vld [vmem:[#allocation5 + $0xe0] sm:$0xff]  }
  0xa2   :  { %v4870_v36 = vld [vmem:[#allocation5 + $0x110] sm:$0xff]   ;;  %v4872_v38 = vld [vmem:[#allocation5 + $0x148] sm:$0xff]   ;;  %v4865_v39 = vld [vmem:[#allocation5 + $0xa0] sm:$0xff]  }
  0xa3   :  { %v4874_v40 = vld [vmem:[#allocation5 + $0x108] sm:$0xff]   ;;  %v4867_v41 = vld [vmem:[#allocation5 + $0xd8] sm:$0xff]   ;;  %v4876_v42 = vld [vmem:[#allocation5 + $0x140] sm:$0xff]  }
  0xa4   :  { %4749 = vmatpush3.bf16.msra.mxu1 %v4838_v7  ;;  %4791 = vmatpush3.bf16.msra.mxu0 %v4858_v23  ;;  %v4878_v43 = vld [vmem:[#allocation5 + $0x100] sm:$0xff]   ;;  %v210_v44 = vld [vmem:[#allocation2 + $0x10] sm:$0xff]  ;;  %v4871_v48 = vld [vmem:[#allocation5 + $0xd0] sm:$0xff]  }
  0xa5   :  { %4750 = vmatprep.subr.bf16.mxu1 %v4839_v8  ;;  %4792 = vmatprep.subr.bf16.mxu0 %v4860_v25  ;;  %v4869_v45 = vld [vmem:[#allocation5 + $0x98] sm:$0xff]   ;;  %v4297_v46 = vcombine.low %v210_v44, %v210_v44  ;;  %v4298_v47 = vcombine.high %v210_v44, %v210_v44  ;;  %v209_v49 = vld [vmem:[#allocation2 + $0x8] sm:$0xff]  ;;  %v4875_v52 = vld [vmem:[#allocation5 + $0xc8] sm:$0xff]  }
  0xa6   :  { %v4296_v50 = vcombine.high %v209_v49, %v209_v49  ;;  %v4873_v51 = vld [vmem:[#allocation5 + $0x90] sm:$0xff]   ;;  %v4877_v53 = vld [vmem:[#allocation5 + $0x88] sm:$0xff]   ;;  %v4881_v54 = vld [vmem:[#allocation5 + $0xc0] sm:$0xff]   ;;  %v4295_v58 = vcombine.low %v209_v49, %v209_v49 }
  0xa7   :  { %735 = vmatprep.mubr.bf16.mxu0 %v4298_v47  ;;  %v4882_v55 = vld [vmem:[#allocation5 + $0x80] sm:$0xff]   ;;  %v5776_v56 = vld [vmem:[#allocation7 + $0x74] ss:$8 sps:$4 sm:$0xff]   ;;  %v5778_v57 = vld [vmem:[#allocation7 + $0x70] ss:$8 sps:$4 sm:$0xff]  }
  0xa8   :  { %4751 = vmatpush3.bf16.msra.mxu1 %v4840_v9  ;;  %4793 = vmatpush3.bf16.msra.mxu0 %v4862_v28  ;;  %v5780_v59 = vld [vmem:[#allocation7 + $0x64] ss:$8 sps:$4 sm:$0xff]   ;;  %v5785_v60 = vld [vmem:[#allocation7 + $0x60] ss:$8 sps:$4 sm:$0xff]   ;;  %v5787_v61 = vld [vmem:[#allocation7 + $0x54] ss:$8 sps:$4 sm:$0xff]  }
  0xa9   :  { %4752 = vmatprep.subr.bf16.mxu1 %v4841_v11  ;;  %4794 = vmatprep.subr.bf16.mxu0 %v4864_v30  ;;  %v5791_v62 = vld [vmem:[#allocation7 + $0x50] ss:$8 sps:$4 sm:$0xff]   ;;  %v5794_v63 = vld [vmem:[#allocation7 + $0x44] ss:$8 sps:$4 sm:$0xff]   ;;  %v5796_v0 = vld [vmem:[#allocation7 + $0x40] ss:$8 sps:$4 sm:$0xff]  }
  0xaa   :  { %v5800_v1 = vld [vmem:[#allocation7 + $0x34] ss:$8 sps:$4 sm:$0xff]   ;;  %v5802_v2 = vld [vmem:[#allocation7 + $0x30] ss:$8 sps:$4 sm:$0xff]   ;;  %v5805_v3 = vld [vmem:[#allocation7 + $0x24] ss:$8 sps:$4 sm:$0xff]  }
  0xab   :  { %v5809_v4 = vld [vmem:[#allocation7 + $0x20] ss:$8 sps:$4 sm:$0xff]   ;;  %v5811_v5 = vld [vmem:[#allocation7 + $0x14] ss:$8 sps:$4 sm:$0xff]   ;;  %v5815_v6 = vld [vmem:[#allocation7 + $0x10] ss:$8 sps:$4 sm:$0xff]  }
  0xac   :  { %4753 = vmatpush3.bf16.msra.mxu1 %v4842_v12  ;;  %4795 = vmatpush3.bf16.msra.mxu0 %v4866_v32  ;;  %v5818_v7 = vld [vmem:[#allocation7 + $0x4] ss:$8 sps:$4 sm:$0xff]   ;;  %v5820_v8 = vld [vmem:[#allocation7] ss:$8 sps:$4 sm:$0xff]   ;;  %v4927_v47 = vld [vmem:[#allocation10 + $0x10] ss:$8 sps:$4 sm:$0xff]  }
  0xad   :  { %4754 = vmatprep.subr.bf16.mxu1 %v4843_v15  ;;  %4796 = vmatprep.subr.bf16.mxu0 %v4868_v34  ;;  %v4909_v34 = vld [vmem:[#allocation10 + $0x70] ss:$8 sps:$4 sm:$0xff]   ;;  %v4924_v44 = vld [vmem:[#allocation10 + $0x20] ss:$8 sps:$4 sm:$0xff]  }
  0xae   :  { %v4930_v49 = vld [vmem:[#allocation10] ss:$8 sps:$4 sm:$0xff]  }
  0xb0   :  { %4755 = vmatpush3.bf16.msra.mxu1 %v4844_v18  ;;  %4797 = vmatpush3.bf16.msra.mxu0 %v4870_v36  ;;  %v4292_v18 = vld [vmem:[%s6077_s2] ss:$0 sm:$0xff]  ;;  %v4912_v36 = vld [vmem:[#allocation10 + $0x60] ss:$8 sps:$4 sm:$0xff]  }
  0xb1   :  { %4756 = vmatprep.subr.bf16.mxu1 %v4845_v20  ;;  %4798 = vmatprep.subr.bf16.mxu0 %v4872_v38  ;;  %v4915_v38 = vld [vmem:[#allocation10 + $0x50] ss:$8 sps:$4 sm:$0xff]  }
  0xb4   :  { %4757 = vmatpush3.bf16.msra.mxu1 %v4847_v22  ;;  %4799 = vmatpush3.bf16.msra.mxu0 %v4874_v40  ;;  %v4918_v40 = vld [vmem:[#allocation10 + $0x40] ss:$8 sps:$4 sm:$0xff]  }
  0xb5   :  { %4764 = vmatprep.subr.bf16.mxu1 %v4851_v24  ;;  %4800 = vmatprep.subr.bf16.mxu0 %v4876_v42  ;;  %v4921_v42 = vld [vmem:[#allocation10 + $0x30] ss:$8 sps:$4 sm:$0xff]  }
  0xb7   :  { %656 = vmatmul.mubr.bf16.vlgmr.msra.gmra.mxu1 %v4293_v27 }
  0xb8   :  { %4765 = vmatpush3.bf16.msra.mxu1 %v4853_v26  ;;  %4801 = vmatpush3.bf16.msra.mxu0 %v4878_v43  ;;  %v4926_v43 = vld [vmem:[#allocation10 + $0x24] ss:$8 sps:$4 sm:$0xff]  }
  0xb9   :  { %4766 = vmatprep.subr.bf16.mxu1 %v4855_v29  ;;  %695 = vmatprep.mubr.bf16.mxu1 %v4296_v50  ;;  %v4935_v50 = vld [vmem:[#allocation11 + $0xe4] ss:$16 sps:$4 sm:$0xff]  }
  0xbb   :  { %736 = vmatmul.mubr.bf16.vlgmr.msra.gmra.mxu0 %v4297_v46  ;;  %v5638_v46 = vmov 0  }
  0xbc   :  { %4767 = vmatpush3.bf16.msra.mxu1 %v4857_v31  ;;  %1131 = vmatprep.mubr.bf16.mxu0 %v5638_v46 }
  0xbd   :  { %4768 = vmatprep.subr.bf16.mxu1 %v4859_v33  ;;  %v4911_v33 = vld [vmem:[#allocation10 + $0x74] ss:$8 sps:$4 sm:$0xff]  }
  0xbe   :  { %1099 = vmatprep.subr.bf16.mxu0 %v4911_v33  ;;  %v4950_v33 = vld [vmem:[#allocation11 + $0x44] ss:$16 sps:$4 sm:$0xff]  }
  0xbf   :  { %1100 = vmatpush1.bf16.msra.mxu0 %v4909_v34 }
  0xc0   :  { %4769 = vmatpush3.bf16.msra.mxu1 %v4861_v35  ;;  %v4914_v35 = vld [vmem:[#allocation10 + $0x64] ss:$8 sps:$4 sm:$0xff]  }
  0xc1   :  { %4770 = vmatprep.subr.bf16.mxu1 %v4863_v37  ;;  %1101 = vmatprep.subr.bf16.mxu0 %v4914_v35  ;;  %v4917_v37 = vld [vmem:[#allocation10 + $0x54] ss:$8 sps:$4 sm:$0xff]   ;;  %v4948_v35 = vld [vmem:[#allocation11 + $0x40] ss:$16 sps:$4 sm:$0xff]  }
  0xc3   :  { %1102 = vmatpush1.bf16.msra.mxu0 %v4912_v36 }
  0xc4   :  { %4771 = vmatpush3.bf16.msra.mxu1 %v4865_v39  ;;  %1103 = vmatprep.subr.bf16.mxu0 %v4917_v37  ;;  %v4920_v39 = vld [vmem:[#allocation10 + $0x44] ss:$8 sps:$4 sm:$0xff]  }
  0xc5   :  { %4772 = vmatprep.subr.bf16.mxu1 %v4867_v41  ;;  %v4923_v41 = vld [vmem:[#allocation10 + $0x34] ss:$8 sps:$4 sm:$0xff]  }
  0xc6   :  { %v4953_v37 = vld [vmem:[#allocation11 + $0x24] ss:$16 sps:$4 sm:$0xff]  }
  0xc7   :  { %1104 = vmatpush1.bf16.msra.mxu0 %v4915_v38 }
  0xc8   :  { %4773 = vmatpush3.bf16.msra.mxu1 %v4869_v45  ;;  %1105 = vmatprep.subr.bf16.mxu0 %v4920_v39  ;;  %v4929_v45 = vld [vmem:[#allocation10 + $0x14] ss:$8 sps:$4 sm:$0xff]  }
  0xc9   :  { %4774 = vmatprep.subr.bf16.mxu1 %v4871_v48  ;;  %v4932_v48 = vld [vmem:[#allocation10 + $0x4] ss:$8 sps:$4 sm:$0xff]  }
  0xcb   :  { %1106 = vmatpush1.bf16.msra.mxu0 %v4918_v40  ;;  %v4951_v40 = vld [vmem:[#allocation11 + $0x20] ss:$16 sps:$4 sm:$0xff]  }
  0xcc   :  { %4775 = vmatpush3.bf16.msra.mxu1 %v4873_v51  ;;  %1107 = vmatprep.subr.bf16.mxu0 %v4923_v41  ;;  %v4363_v51 = vld [vmem:[#allocation8] ss:$0 sm:$0xff]  ;;  %v4956_v41 = vld [vmem:[#allocation11 + $0x4] ss:$16 sps:$4 sm:$0xff]  }
  0xcd   :  { %4776 = vmatprep.subr.bf16.mxu1 %v4875_v52 }
  0xcf   :  { %1108 = vmatpush1.bf16.msra.mxu0 %v4921_v42  ;;  %v4954_v42 = vld [vmem:[#allocation11] ss:$16 sps:$4 sm:$0xff]  }
  0xd0   :  { %4777 = vmatpush3.bf16.msra.mxu1 %v4877_v53  ;;  %1109 = vmatprep.subr.bf16.mxu0 %v4926_v43  ;;  %v4959_v43 = vld [vmem:[#allocation11 + $0x1e4] ss:$16 sps:$4 sm:$0xff]  }
  0xd1   :  { %4778 = vmatprep.subr.bf16.mxu1 %v4881_v54 }
  0xd3   :  { %1110 = vmatpush1.bf16.msra.mxu0 %v4924_v44  ;;  %v4957_v44 = vld [vmem:[#allocation11 + $0x1e0] ss:$16 sps:$4 sm:$0xff]  }
  0xd4   :  { %4779 = vmatpush3.bf16.msra.mxu1 %v4882_v55  ;;  %1111 = vmatprep.subr.bf16.mxu0 %v4929_v45  ;;  %v4962_v45 = vld [vmem:[#allocation11 + $0x1c4] ss:$16 sps:$4 sm:$0xff]  }
  0xd5   :  { %840 = vmatprep.subr.bf16.mxu1 %v5776_v56 }
  0xd7   :  { %696 = vmatmul.mubr.bf16.vlgmr.msra.gmra.mxu1 %v4295_v58  ;;  %1112 = vmatpush1.bf16.msra.mxu0 %v4927_v47  ;;  %v4960_v47 = vld [vmem:[#allocation11 + $0x1c0] ss:$16 sps:$4 sm:$0xff]  }
  0xd8   :  { %841 = vmatpush1.bf16.xpose.msra.mxu1 %v5778_v57  ;;  %1113 = vmatprep.subr.bf16.mxu0 %v4932_v48  ;;  %v4965_v48 = vld [vmem:[#allocation11 + $0x1a4] ss:$16 sps:$4 sm:$0xff]  }
  0xd9   :  { %842 = vmatprep.subr.bf16.mxu1 %v5780_v59 }
  0xdb   :  { %1114 = vmatpush1.bf16.msra.mxu0 %v4930_v49  ;;  %v4963_v49 = vld [vmem:[#allocation11 + $0x1a0] ss:$16 sps:$4 sm:$0xff]  }
  0xdc   :  { %1524 = vmatprep.subr.bf16.mxu0 %v4935_v50  ;;  %v4968_v50 = vld [vmem:[#allocation11 + $0x184] ss:$16 sps:$4 sm:$0xff]  }
  0xe0   :  { %843 = vmatpush1.bf16.xpose.msra.mxu1 %v5785_v60 }
  0xe1   :  { %844 = vmatprep.subr.bf16.mxu1 %v5787_v61 }
  0xe8   :  { %845 = vmatpush1.bf16.xpose.msra.mxu1 %v5791_v62 }
  0xe9   :  { %846 = vmatprep.subr.bf16.mxu1 %v5794_v63 }
  0xf0   :  { %847 = vmatpush1.bf16.xpose.msra.mxu1 %v5796_v0 }
  0xf1   :  { %848 = vmatprep.subr.bf16.mxu1 %v5800_v1 }
  0xf8   :  { %849 = vmatpush1.bf16.xpose.msra.mxu1 %v5802_v2 }
  0xf9   :  { %850 = vmatprep.subr.bf16.mxu1 %v5805_v3 }
 0x100   :  { %851 = vmatpush1.bf16.xpose.msra.mxu1 %v5809_v4 }
 0x101   :  { %852 = vmatprep.subr.bf16.mxu1 %v5811_v5 }
 0x108   :  { %853 = vmatpush1.bf16.xpose.msra.mxu1 %v5815_v6 }
 0x109   :  { %854 = vmatprep.subr.bf16.mxu1 %v5818_v7 }
 0x110   :  { %855 = vmatpush1.bf16.xpose.msra.mxu1 %v5820_v8 }
 0x177   :  { %v4758_v9 = vpop.f32.mrf.mxu1 }
 0x179   :  { %v4759_v10 = vpop.f32.mrf.mxu1 }
 0x17a   :  { %v4760_v17 = vadd.f32 %v4759_v10, %v4758_v9 }
 0x17b   :  { %v4761_v11 = vpop.f32.mrf.mxu1  ;;  %v4802_v13 = vpop.f32.mrf.mxu0 }
 0x17c   :  { %v658_v21 = vadd.f32 %v4760_v17, %v4292_v18 }
 0x17d   :  { %v4762_v12 = vpop.f32.mrf.mxu1  ;;  %v4803_v14 = vpop.f32.mrf.mxu0 }
 0x17e   :  { %v4804_v24 = vadd.f32 %v4803_v14, %v4802_v13 }
 0x17f   :  { %v4805_v15 = vpop.f32.mrf.mxu0 }
 0x181   :  { %v4806_v16 = vpop.f32.mrf.mxu0 }
 0x197   :  { %v4780_v19 = vpop.f32.mrf.mxu1 }
 0x199   :  { %v4781_v20 = vpop.f32.mrf.mxu1 }
 0x19a   :  { %v4782_v22 = vadd.f32 %v4781_v20, %v4780_v19 }
 0x19b   :  { %v4783_v23 = vpop.f32.mrf.mxu1 }
 0x19c   :  { %v698_v25 = vadd.f32 %v4782_v22, %v658_v21  ;;  %v4933_v21 = vld [vmem:[#allocation11 + $0xe0] ss:$16 sps:$4 sm:$0xff]   ;;  %v4938_v23 = vld [vmem:[#allocation11 + $0xc4] ss:$16 sps:$4 sm:$0xff]  }
 0x19d   :  { %v4784_v26 = vpop.f32.mrf.mxu1 }
 0x19e   :  { %v5827_v27 = vadd.f32 %v4804_v24, %v698_v25  ;;  %v4936_v24 = vld [vmem:[#allocation11 + $0xc0] ss:$16 sps:$4 sm:$0xff]   ;;  %v4941_v25 = vld [vmem:[#allocation11 + $0xa4] ss:$16 sps:$4 sm:$0xff]  }
 0x19f   :  { %v4939_v26 = vld [vmem:[#allocation11 + $0xa0] ss:$16 sps:$4 sm:$0xff]  }
 0x1a0   :  { %971 = vadd.xlane.f32.xlu0 %v5827_v27  ;;  %v743_v28 = vpack.c.bf16 %v5827_v27, %v5827_v27 }
 0x1a2   :  { %872 = vmatprep.mubr.bf16.mxu1 %v743_v28 }
 0x1a3   :  { %873 = vmatmul.mubr.bf16.vlgmr.msra.gmra.mxu1 %v743_v28  ;;  %v4944_v28 = vld [vmem:[#allocation11 + $0x84] ss:$16 sps:$4 sm:$0xff]  }
 0x1a4   :  { %1669 = vmatprep.mubr.bf16.mxu1 %v5818_v7 }
 0x229   :  { %v972_v29 = vpop.xlane.xlu0 %971 }
 0x22a   :  { %v974_v30 = vmul.f32 0.0078125, %v972_v29  ;;  %v4942_v29 = vld [vmem:[#allocation11 + $0x80] ss:$16 sps:$4 sm:$0xff]  }
 0x22c   :  { %v5834_v31 = vsub.f32 %v5827_v27, %v974_v30  ;;  %v4947_v30 = vld [vmem:[#allocation11 + $0x64] ss:$16 sps:$4 sm:$0xff]  }
 0x22e   :  { %v976_v32 = vmul.f32 %v5834_v31, %v5834_v31 }
 0x230   :  { %977 = vadd.xlane.f32.xlu0 %v976_v32 }
 0x263   :  { %v874_v52 = vpop.f32.mrf.mxu1 }
 0x264   :  { %v5839_v53 = vmul.f32 %v4363_v51, %v874_v52  ;;  %v4966_v51 = vld [vmem:[#allocation11 + $0x180] ss:$16 sps:$4 sm:$0xff]   ;;  %v4971_v52 = vld [vmem:[#allocation11 + $0x164] ss:$16 sps:$4 sm:$0xff]  }
 0x265   :  { %v876_v54 = vpop.f32.mrf.mxu1 }
 0x266   :  { %v889_v55 = vsel %vm888_vm0, %v5839_v53, -inf  ;;  %v930_v10 = vsel %vm929_vm1, %v5839_v53, -inf  ;;  %v4969_v54 = vld [vmem:[#allocation11 + $0x160] ss:$16 sps:$4 sm:$0xff]  }
 0x267   :  { %890 = vmax.xlane.f32.xlu1 %v889_v55  ;;  %v877_v58 = vpop.f32.mrf.mxu1  ;;  %v4974_v55 = vld [vmem:[#allocation11 + $0x144] ss:$16 sps:$4 sm:$0xff]  }
 0x268   :  { %v4972_v58 = vld [vmem:[#allocation11 + $0x140] ss:$16 sps:$4 sm:$0xff]  }
 0x269   :  { %v878_v9 = vpop.f32.mrf.mxu1 }
 0x26a   :  { %v4977_v9 = vld [vmem:[#allocation11 + $0x124] ss:$16 sps:$4 sm:$0xff]  }
 0x26b   :  { %931 = vmax.xlane.f32.xlu1 %v930_v10  ;;  %v4975_v10 = vld [vmem:[#allocation11 + $0x120] ss:$16 sps:$4 sm:$0xff]  }
 0x2b9   :  { %v978_v11 = vpop.xlane.xlu0 %977 }
 0x2ba   :  { %v979_v12 = vmul.f32 0.0078125, %v978_v11  ;;  %v4980_v11 = vld [vmem:[#allocation11 + $0x104] ss:$16 sps:$4 sm:$0xff]  }
 0x2bc   :  { %v980_v13 = vadd.f32 1e-05, %v979_v12  ;;  %v4978_v12 = vld [vmem:[#allocation11 + $0x100] ss:$16 sps:$4 sm:$0xff]  }
 0x2be   :  { %5272 = vrsqrt.f32 %v980_v13  ;;  %vm983_vm2 = vcmp.eq.f32.partialorder %v980_v13, inf  ;;  %v986_v16 = vand.u32 2147483648, %v980_v13  ;;  %vm985_vm3 = vcmp.eq.f32.partialorder %v980_v13, 0.0 }
 0x2cb   :  { %v5273_v14 = vpop.eup %5272 }
 0x2cc   :  { %v982_v15 = vmul.f32 %v5273_v14, %v980_v13 }
 0x2ce   :  { %v984_v17 = vsel %vm983_vm2, %v980_v13, %v982_v15 }
 0x2cf   :  { %v987_v18 = vsel %vm985_vm3, %v986_v16, %v984_v17 }
 0x2d0   :  { %5274 = vrcp.f32 %v987_v18 }
 0x2dd   :  { %v5275_v19 = vpop.eup %5274 }
 0x2de   :  { %v989_v20 = vmul.f32 %v5275_v19, %v5834_v31  ;;  %v4945_v31 = vld [vmem:[#allocation11 + $0x60] ss:$16 sps:$4 sm:$0xff]  }
 0x2e0   :  { %v990_v22 = vpack.c.bf16 %v989_v20, %v989_v20 }
 0x2e2   :  { %1132 = vmatmul.mubr.bf16.vlgmr.msra.gmra.mxu0 %v990_v22 }
 0x2e3   :  { %1525 = vmatpush1.bf16.msra.mxu0 %v4933_v21  ;;  %1556 = vmatprep.mubr.bf16.mxu0 %v5818_v7 }
 0x2e4   :  { %1526 = vmatprep.subr.bf16.mxu0 %v4938_v23 }
 0x2e7   :  { %1527 = vmatpush1.bf16.msra.mxu0 %v4936_v24 }
 0x2e8   :  { %1528 = vmatprep.subr.bf16.mxu0 %v4941_v25 }
 0x2eb   :  { %1529 = vmatpush1.bf16.msra.mxu0 %v4939_v26 }
 0x2ec   :  { %1530 = vmatprep.subr.bf16.mxu0 %v4944_v28 }
 0x2ef   :  { %1531 = vmatpush1.bf16.msra.mxu0 %v4942_v29 }
 0x2f0   :  { %v891_v32 = vpop.xlane.xlu1 %890  ;;  %1532 = vmatprep.subr.bf16.mxu0 %v4947_v30 }
 0x2f1   :  { %vm892_vm4 = vcmp.ge.f32.partialorder %v5839_v53, %v891_v32 }
 0x2f2   :  { %v5849_v34 = vsel %vm892_vm4, -1e+30, %v5839_v53 }
 0x2f3   :  { %1533 = vmatpush1.bf16.msra.mxu0 %v4945_v31  ;;  %v894_v7 = vsel %vm888_vm0, %v5849_v34, -inf }
 0x2f4   :  { %895 = vmax.xlane.f32.xlu0 %v894_v7  ;;  %v932_v36 = vpop.xlane.xlu1 %931  ;;  %1534 = vmatprep.subr.bf16.mxu0 %v4950_v33 }
 0x2f5   :  { %vm933_vm5 = vcmp.ge.f32.partialorder %v5839_v53, %v932_v36 }
 0x2f6   :  { %v5855_v38 = vsel %vm933_vm5, -1e+30, %v5839_v53 }
 0x2f7   :  { %1535 = vmatpush1.bf16.msra.mxu0 %v4948_v35  ;;  %v935_v39 = vsel %vm929_vm1, %v5855_v38, -inf }
 0x2f8   :  { %936 = vmax.xlane.f32.xlu1 %v935_v39  ;;  %1536 = vmatprep.subr.bf16.mxu0 %v4953_v37 }
 0x2fb   :  { %1537 = vmatpush1.bf16.msra.mxu0 %v4951_v40 }
 0x2fc   :  { %1538 = vmatprep.subr.bf16.mxu0 %v4956_v41 }
 0x2ff   :  { %1539 = vmatpush1.bf16.msra.mxu0 %v4954_v42 }
 0x300   :  { %1540 = vmatprep.subr.bf16.mxu0 %v4959_v43 }
 0x303   :  { %1541 = vmatpush2.bf16.msra.mxu0 %v4957_v44 }
 0x304   :  { %1542 = vmatprep.subr.bf16.mxu0 %v4962_v45 }
 0x307   :  { %1543 = vmatpush2.bf16.msra.mxu0 %v4960_v47 }
 0x308   :  { %1544 = vmatprep.subr.bf16.mxu0 %v4965_v48 }
 0x30b   :  { %1545 = vmatpush2.bf16.msra.mxu0 %v4963_v49 }
 0x30c   :  { %1546 = vmatprep.subr.bf16.mxu0 %v4968_v50 }
 0x30f   :  { %1547 = vmatpush2.bf16.msra.mxu0 %v4966_v51 }
 0x310   :  { %1548 = vmatprep.subr.bf16.mxu0 %v4971_v52 }
 0x313   :  { %1549 = vmatpush2.bf16.msra.mxu0 %v4969_v54 }
 0x314   :  { %1550 = vmatprep.subr.bf16.mxu0 %v4974_v55 }
 0x317   :  { %1551 = vmatpush2.bf16.msra.mxu0 %v4972_v58 }
 0x318   :  { %1552 = vmatprep.subr.bf16.mxu0 %v4977_v9 }
 0x31b   :  { %1553 = vmatpush2.bf16.msra.mxu0 %v4975_v10 }
 0x31c   :  { %1554 = vmatprep.subr.bf16.mxu0 %v4980_v11 }
 0x31f   :  { %1555 = vmatpush2.bf16.msra.mxu0 %v4978_v12 }
 0x322   :  { %1557 = vmatmul.mubr.bf16.vlgmr.msra.gmra.mxu0 %v5820_v8 }
 0x323   :  { %1566 = vmatprep.mubr.bf16.mxu0 %v5811_v5 }
 0x32a   :  { %1567 = vmatmul.mubr.bf16.gmra.mxu0 %v5815_v6 }
 0x32b   :  { %1576 = vmatprep.mubr.bf16.mxu0 %v5805_v3 }
 0x332   :  { %1577 = vmatmul.mubr.bf16.gmra.mxu0 %v5809_v4 }
 0x333   :  { %1586 = vmatprep.mubr.bf16.mxu0 %v5800_v1 }
 0x33a   :  { %1587 = vmatmul.mubr.bf16.gmra.mxu0 %v5802_v2 }
 0x33b   :  { %1596 = vmatprep.mubr.bf16.mxu0 %v5794_v63 }
 0x342   :  { %1597 = vmatmul.mubr.bf16.gmra.mxu0 %v5796_v0 }
 0x343   :  { %1606 = vmatprep.mubr.bf16.mxu0 %v5787_v61 }
 0x34a   :  { %1607 = vmatmul.mubr.bf16.gmra.mxu0 %v5791_v62  ;;  %v1007_v62 = vld [vmem:[%s6081_s6] sm:$0x3] }
 0x34b   :  { %1616 = vmatprep.mubr.bf16.mxu0 %v5780_v59 }
 0x352   :  { %1617 = vmatmul.mubr.bf16.gmra.mxu0 %v5785_v60  ;;  %v1009_v60 = vlaneseq }
 0x353   :  { %1626 = vmatprep.mubr.bf16.mxu0 %v5776_v56 }
 0x354   :  { %v5880_v56 = vshrl.u32 %v1009_v60, 7 }
 0x356   :  { %v5889_v2 = vsub.s32 1, %v5880_v56 }
 0x358   :  { %v1016_v15 = vrot.slane %v1007_v62, %v5889_v2 }
 0x35a   :  { %1627 = vmatmul.mubr.bf16.gmra.mxu0 %v5778_v57  ;;  %v5883_v57 = vsub.s32 0, %v5880_v56 }
 0x35c   :  { %v1012_v14 = vrot.slane %v1007_v62, %v5883_v57 }
 0x37d   :  { %v896_v13 = vpop.xlane.xlu0 %895 }
 0x37e   :  { %vm897_vm6 = vcmp.ge.f32.partialorder %v5849_v34, %v896_v13 }
 0x37f   :  { %v898_v1 = vsel %vm897_vm6, -1e+30, %v5849_v34 }
 0x380   :  { %v899_v63 = vsel %vm888_vm0, %v898_v1, -inf }
 0x381   :  { %900 = vmax.xlane.f32.xlu0 %v899_v63  ;;  %v937_v0 = vpop.xlane.xlu1 %936 }
 0x382   :  { %vm938_vm7 = vcmp.ge.f32.partialorder %v5855_v38, %v937_v0 }
 0x383   :  { %v939_v61 = vsel %vm938_vm7, -1e+30, %v5855_v38 }
 0x384   :  { %v940_v59 = vsel %vm929_vm1, %v939_v61, -inf }
 0x385   :  { %941 = vmax.xlane.f32.xlu1 %v940_v59 }
 0x3a2   :  { %v1133_v16 = vpop.f32.mrf.mxu0 }
 0x3a3   :  { %v5893_v17 = vadd.f32 %v1133_v16, %v1012_v14 }
 0x3a4   :  { %v1135_v18 = vpop.f32.mrf.mxu0 }
 0x3a5   :  { %v1136_v19 = vadd.f32 %v1135_v18, %v1016_v15 }
 0x3a6   :  { %v1137_v20 = vpop.f32.mrf.mxu0 }
 0x3a7   :  { %v1783_v21 = vpack.c.bf16 %v1136_v19, %v1136_v19 }
 0x3a8   :  { %v1138_v22 = vpop.f32.mrf.mxu0 }
 0x3a9   :  { %1816 = vmatprep.mubr.bf16.mxu0 %v1783_v21 }
 0x3e2   :  { %v5895_v23 = vpop.f32.mrf.mxu0 }
 0x3e4   :  { %v5897_v24 = vpop.f32.mrf.mxu0 }
 0x3e6   :  { %v5899_v25 = vpop.f32.mrf.mxu0 }
 0x3e7   :  { %v1750_v26 = vpack.c.bf16 %v5899_v25, %v5895_v23 }
 0x3e8   :  { %v5903_v28 = vpop.f32.mrf.mxu0 }
 0x3e9   :  { %v1751_v29 = vpack.c.bf16 %v5903_v28, %v5897_v24 }
 0x3ea   :  { %v5907_v30 = vpop.f32.mrf.mxu0 }
 0x3ec   :  { %v5909_v31 = vpop.f32.mrf.mxu0 }
 0x3ee   :  { %v5911_v32 = vpop.f32.mrf.mxu0 }
 0x3ef   :  { %v1752_v33 = vpack.c.bf16 %v5911_v32, %v5907_v30  ;;  %v1782_v32 = vpack.c.bf16 %v5893_v17, %v5893_v17 }
 0x3f0   :  { %v1574_v34 = vpop.f32.mrf.mxu0 }
 0x3f1   :  { %v1753_v7 = vpack.c.bf16 %v1574_v34, %v5909_v31 }
 0x3f2   :  { %v1578_v35 = vpop.f32.mrf.mxu0 }
 0x3f4   :  { %v1580_v36 = vpop.f32.mrf.mxu0 }
 0x3f6   :  { %v1582_v37 = vpop.f32.mrf.mxu0 }
 0x3f7   :  { %v1754_v38 = vpack.c.bf16 %v1582_v37, %v1578_v35 }
 0x3f8   :  { %v1584_v39 = vpop.f32.mrf.mxu0 }
 0x3f9   :  { %v1755_v40 = vpack.c.bf16 %v1584_v39, %v1580_v36 }
 0x3fa   :  { %v1588_v41 = vpop.f32.mrf.mxu0 }
 0x3fc   :  { %v1590_v42 = vpop.f32.mrf.mxu0 }
 0x3fe   :  { %v1592_v43 = vpop.f32.mrf.mxu0 }
 0x3ff   :  { %v1756_v44 = vpack.c.bf16 %v1592_v43, %v1588_v41 }
 0x400   :  { %v1594_v45 = vpop.f32.mrf.mxu0 }
 0x401   :  { %v1757_v31 = vpack.c.bf16 %v1594_v45, %v1590_v42 }
 0x402   :  { %v1598_v47 = vpop.f32.mrf.mxu0 }
 0x404   :  { %v1600_v48 = vpop.f32.mrf.mxu0 }
 0x406   :  { %v1602_v49 = vpop.f32.mrf.mxu0 }
 0x407   :  { %v1758_v30 = vpack.c.bf16 %v1602_v49, %v1598_v47  ;;  %v4983_v49 = vld [vmem:[#allocation11 + $0xec] ss:$16 sps:$4 sm:$0xff]  }
 0x408   :  { %v1604_v50 = vpop.f32.mrf.mxu0  ;;  %1637 = vmatprep.subr.bf16.mxu1 %v4983_v49 }
 0x409   :  { %v1759_v22 = vpack.c.bf16 %v1604_v50, %v1600_v48  ;;  %v4981_v48 = vld [vmem:[#allocation11 + $0xe8] ss:$16 sps:$4 sm:$0xff]   ;;  %v4986_v50 = vld [vmem:[#allocation11 + $0xcc] ss:$16 sps:$4 sm:$0xff]  }
 0x40a   :  { %v1608_v51 = vpop.f32.mrf.mxu0  ;;  %v901_v52 = vpop.xlane.xlu0 %900  ;;  %1638 = vmatpush1.bf16.msra.mxu1 %v4981_v48 }
 0x40b   :  { %vm902_vm8 = vcmp.ge.f32.partialorder %v898_v1, %v901_v52  ;;  %1639 = vmatprep.subr.bf16.mxu1 %v4986_v50  ;;  %v4989_v52 = vld [vmem:[#allocation11 + $0xac] ss:$16 sps:$4 sm:$0xff]  }
 0x40c   :  { %v903_v54 = vsel %vm902_vm8, -1e+30, %v898_v1  ;;  %v1610_v55 = vpop.f32.mrf.mxu0 }
 0x40d   :  { %v904_v58 = vsel %vm888_vm0, %v903_v54, -inf }
 0x40e   :  { %v1612_v9 = vpop.f32.mrf.mxu0  ;;  %905 = vmax.xlane.f32.xlu0 %v904_v58  ;;  %v942_v10 = vpop.xlane.xlu1 %941  ;;  %v4990_v58 = vld [vmem:[#allocation11 + $0x88] ss:$16 sps:$4 sm:$0xff]  }
 0x40f   :  { %vm943_vm9 = vcmp.ge.f32.partialorder %v939_v61, %v942_v10  ;;  %v1760_v21 = vpack.c.bf16 %v1612_v9, %v1608_v51  ;;  %v4984_v51 = vld [vmem:[#allocation11 + $0xc8] ss:$16 sps:$4 sm:$0xff]   ;;  %v4995_v9 = vld [vmem:[#allocation11 + $0x6c] ss:$16 sps:$4 sm:$0xff]  }
 0x410   :  { %v944_v11 = vsel %vm943_vm9, -1e+30, %v939_v61  ;;  %v1614_v12 = vpop.f32.mrf.mxu0  ;;  %1640 = vmatpush1.bf16.msra.mxu1 %v4984_v51  ;;  %v4993_v10 = vld [vmem:[#allocation11 + $0x68] ss:$16 sps:$4 sm:$0xff]  }
 0x411   :  { %v945_v13 = vsel %vm929_vm1, %v944_v11, -inf  ;;  %v1761_v61 = vpack.c.bf16 %v1614_v12, %v1610_v55  ;;  %1641 = vmatprep.subr.bf16.mxu1 %v4989_v52  ;;  %v4992_v55 = vld [vmem:[#allocation11 + $0x8c] ss:$16 sps:$4 sm:$0xff]   ;;  %v4996_v12 = vld [vmem:[#allocation11 + $0x48] ss:$16 sps:$4 sm:$0xff]  }
 0x412   :  { %v1618_v63 = vpop.f32.mrf.mxu0  ;;  %946 = vmax.xlane.f32.xlu1 %v945_v13  ;;  %v5001_v13 = vld [vmem:[#allocation11 + $0x2c] ss:$16 sps:$4 sm:$0xff]  }
 0x414   :  { %v1620_v0 = vpop.f32.mrf.mxu0 }
 0x416   :  { %v1622_v59 = vpop.f32.mrf.mxu0 }
 0x417   :  { %v1762_v20 = vpack.c.bf16 %v1622_v59, %v1618_v63  ;;  %v4999_v63 = vld [vmem:[#allocation11 + $0x28] ss:$16 sps:$4 sm:$0xff]  }
 0x418   :  { %v1624_v60 = vpop.f32.mrf.mxu0  ;;  %v5002_v59 = vld [vmem:[#allocation11 + $0x8] ss:$16 sps:$4 sm:$0xff]  }
 0x419   :  { %v1763_v18 = vpack.c.bf16 %v1624_v60, %v1620_v0  ;;  %v5004_v0 = vld [vmem:[#allocation11 + $0xc] ss:$16 sps:$4 sm:$0xff]  }
 0x41a   :  { %v1628_v62 = vpop.f32.mrf.mxu0  ;;  %v5007_v60 = vld [vmem:[#allocation11 + $0x1ec] ss:$16 sps:$4 sm:$0xff]  }
 0x41c   :  { %v1630_v14 = vpop.f32.mrf.mxu0 }
 0x41e   :  { %v1632_v15 = vpop.f32.mrf.mxu0 }
 0x41f   :  { %v1764_v1 = vpack.c.bf16 %v1632_v15, %v1628_v62  ;;  %v5005_v62 = vld [vmem:[#allocation11 + $0x1e8] ss:$16 sps:$4 sm:$0xff]  }
 0x420   :  { %v1634_v16 = vpop.f32.mrf.mxu0  ;;  %v5008_v15 = vld [vmem:[#allocation11 + $0x1c8] ss:$16 sps:$4 sm:$0xff]  }
 0x421   :  { %v1765_v19 = vpack.c.bf16 %v1634_v16, %v1630_v14  ;;  %v5010_v14 = vld [vmem:[#allocation11 + $0x1cc] ss:$16 sps:$4 sm:$0xff]  }
 0x423   :  { %1784 = vmatprep.subr.bf16.mxu0 %v1765_v19 }
 0x424   :  { %1785 = vmatpush1.bf16.xpose.msra.mxu0 %v1764_v1 }
 0x425   :  { %1786 = vmatprep.subr.bf16.mxu0 %v1763_v18 }
 0x42c   :  { %1787 = vmatpush1.bf16.xpose.msra.mxu0 %v1762_v20 }
 0x42d   :  { %1788 = vmatprep.subr.bf16.mxu0 %v1761_v61 }
 0x434   :  { %1789 = vmatpush1.bf16.xpose.msra.mxu0 %v1760_v21  ;;  %v5011_v21 = vld [vmem:[#allocation11 + $0x1a8] ss:$16 sps:$4 sm:$0xff]  }
 0x435   :  { %1790 = vmatprep.subr.bf16.mxu0 %v1759_v22  ;;  %v5013_v22 = vld [vmem:[#allocation11 + $0x1ac] ss:$16 sps:$4 sm:$0xff]  }
 0x43c   :  { %1791 = vmatpush1.bf16.xpose.msra.mxu0 %v1758_v30  ;;  %v5014_v30 = vld [vmem:[#allocation11 + $0x188] ss:$16 sps:$4 sm:$0xff]  }
 0x43d   :  { %1792 = vmatprep.subr.bf16.mxu0 %v1757_v31  ;;  %v5016_v31 = vld [vmem:[#allocation11 + $0x18c] ss:$16 sps:$4 sm:$0xff]  }
 0x444   :  { %1793 = vmatpush1.bf16.xpose.msra.mxu0 %v1756_v44 }
 0x445   :  { %1794 = vmatprep.subr.bf16.mxu0 %v1755_v40 }
 0x44c   :  { %1795 = vmatpush1.bf16.xpose.msra.mxu0 %v1754_v38 }
 0x44d   :  { %1796 = vmatprep.subr.bf16.mxu0 %v1753_v7 }
 0x454   :  { %1797 = vmatpush1.bf16.xpose.msra.mxu0 %v1752_v33 }
 0x455   :  { %1798 = vmatprep.subr.bf16.mxu0 %v1751_v29 }
 0x45c   :  { %1799 = vmatpush1.bf16.xpose.msra.mxu0 %v1750_v26 }
 0x463   :  { %1817 = vmatmul.mubr.bf16.vlgmr.msra.gmra.mxu0 %v1782_v32  ;;  %v5019_v32 = vld [vmem:[#allocation11 + $0x16c] ss:$16 sps:$4 sm:$0xff]  }
 0x497   :  { %v906_v34 = vpop.xlane.xlu0 %905 }
 0x498   :  { %vm907_vm10 = vcmp.ge.f32.partialorder %v903_v54, %v906_v34  ;;  %v5017_v34 = vld [vmem:[#allocation11 + $0x168] ss:$16 sps:$4 sm:$0xff]  }
 0x499   :  { %v908_v35 = vsel %vm907_vm10, -1e+30, %v903_v54  ;;  %v4987_v54 = vld [vmem:[#allocation11 + $0xa8] ss:$16 sps:$4 sm:$0xff]  }
 0x49a   :  { %v909_v36 = vsel %vm888_vm0, %v908_v35, -inf  ;;  %1642 = vmatpush1.bf16.msra.mxu1 %v4987_v54 }
 0x49b   :  { %910 = vmax.xlane.f32.xlu0 %v909_v36  ;;  %v947_v7 = vpop.xlane.xlu1 %946  ;;  %1643 = vmatprep.subr.bf16.mxu1 %v4992_v55  ;;  %v5020_v36 = vld [vmem:[#allocation11 + $0x148] ss:$16 sps:$4 sm:$0xff]  }
 0x49c   :  { %vm948_vm11 = vcmp.ge.f32.partialorder %v944_v11, %v947_v7  ;;  %v5025_v7 = vld [vmem:[#allocation11 + $0x12c] ss:$16 sps:$4 sm:$0xff]  }
 0x49d   :  { %v949_v33 = vsel %vm948_vm11, -1e+30, %v944_v11  ;;  %v4998_v11 = vld [vmem:[#allocation11 + $0x4c] ss:$16 sps:$4 sm:$0xff]  }
 0x49e   :  { %v950_v24 = vsel %vm929_vm1, %v949_v33, -inf  ;;  %1644 = vmatpush1.bf16.msra.mxu1 %v4990_v58 }
 0x49f   :  { %951 = vmax.xlane.f32.xlu1 %v950_v24  ;;  %1645 = vmatprep.subr.bf16.mxu1 %v4995_v9  ;;  %v5028_v24 = vld [vmem:[#allocation11 + $0x10c] ss:$16 sps:$4 sm:$0xff]  }
 0x4a2   :  { %1646 = vmatpush1.bf16.msra.mxu1 %v4993_v10 }
 0x4a3   :  { %1647 = vmatprep.subr.bf16.mxu1 %v4998_v11 }
 0x4a6   :  { %1648 = vmatpush1.bf16.msra.mxu1 %v4996_v12 }
 0x4a7   :  { %1649 = vmatprep.subr.bf16.mxu1 %v5001_v13 }
 0x4aa   :  { %1650 = vmatpush1.bf16.msra.mxu1 %v4999_v63 }
 0x4ab   :  { %1651 = vmatprep.subr.bf16.mxu1 %v5004_v0 }
 0x4ae   :  { %1652 = vmatpush1.bf16.msra.mxu1 %v5002_v59 }
 0x4af   :  { %1653 = vmatprep.subr.bf16.mxu1 %v5007_v60 }
 0x4b2   :  { %1654 = vmatpush2.bf16.msra.mxu1 %v5005_v62 }
 0x4b3   :  { %1655 = vmatprep.subr.bf16.mxu1 %v5010_v14 }
 0x4b6   :  { %1656 = vmatpush2.bf16.msra.mxu1 %v5008_v15 }
 0x4b7   :  { %1657 = vmatprep.subr.bf16.mxu1 %v5013_v22 }
 0x4ba   :  { %1658 = vmatpush2.bf16.msra.mxu1 %v5011_v21 }
 0x4bb   :  { %1659 = vmatprep.subr.bf16.mxu1 %v5016_v31 }
 0x4be   :  { %1660 = vmatpush2.bf16.msra.mxu1 %v5014_v30 }
 0x4bf   :  { %1661 = vmatprep.subr.bf16.mxu1 %v5019_v32 }
 0x4c2   :  { %1662 = vmatpush2.bf16.msra.mxu1 %v5017_v34 }
 0x523   :  { %v5928_v28 = vpop.f32.mrf.mxu0 }
 0x524   :  { %v911_v23 = vpop.xlane.xlu0 %910 }
 0x525   :  { %v1820_v25 = vpop.f32.mrf.mxu0  ;;  %vm912_vm12 = vcmp.ge.f32.partialorder %v908_v35, %v911_v23  ;;  %v5026_v23 = vld [vmem:[#allocation11 + $0x108] ss:$16 sps:$4 sm:$0xff]  }
 0x526   :  { %v913_v26 = vsel %vm912_vm12, -1e+30, %v908_v35  ;;  %v5022_v35 = vld [vmem:[#allocation11 + $0x14c] ss:$16 sps:$4 sm:$0xff]   ;;  %vm4269_vm12 = vcmask 130048  }
 0x527   :  { %v1821_v17 = vpop.f32.mrf.mxu0  ;;  %v914_v29 = vsel %vm888_vm0, %v913_v26, -inf  ;;  %1663 = vmatprep.subr.bf16.mxu1 %v5022_v35  ;;  %v5332_v25 = vld [vmem:[#allocation7 + $0x34] ss:$8 sps:$4 sm:$0xff]  }
 0x528   :  { %915 = vmax.xlane.f32.xlu0 %v914_v29  ;;  %v952_v37 = vpop.xlane.xlu1 %951  ;;  %1664 = vmatpush2.bf16.msra.mxu1 %v5020_v36  ;;  %v5334_v17 = vld [vmem:[#allocation7 + $0x44] ss:$8 sps:$4 sm:$0xff]   ;;  %v5335_v29 = vld [vmem:[#allocation7 + $0x40] ss:$8 sps:$4 sm:$0xff]  }
 0x529   :  { %v1822_v38 = vpop.f32.mrf.mxu0  ;;  %vm953_vm13 = vcmp.ge.f32.partialorder %v949_v33, %v952_v37  ;;  %1665 = vmatprep.subr.bf16.mxu1 %v5025_v7  ;;  %v5336_v37 = vld [vmem:[#allocation7 + $0x54] ss:$8 sps:$4 sm:$0xff]  }
 0x52a   :  { %v954_v39 = vsel %vm953_vm13, -1e+30, %v949_v33  ;;  %v5023_v33 = vld [vmem:[#allocation11 + $0x128] ss:$16 sps:$4 sm:$0xff]  }
 0x52b   :  { %v955_v40 = vsel %vm929_vm1, %v954_v39, -inf  ;;  %v5337_v38 = vld [vmem:[#allocation7 + $0x50] ss:$8 sps:$4 sm:$0xff]  }
 0x52c   :  { %956 = vmax.xlane.f32.xlu1 %v955_v40  ;;  %1666 = vmatpush2.bf16.msra.mxu1 %v5023_v33  ;;  %v1824_v40 = vmul.f32 0.088388346, %v5928_v28 }
 0x52d   :  { %1667 = vmatprep.subr.bf16.mxu1 %v5028_v24 }
 0x530   :  { %1668 = vmatpush2.bf16.msra.mxu1 %v5026_v23 }
 0x533   :  { %1670 = vmatmul.mubr.bf16.vlgmr.msra.gmra.mxu1 %v5820_v8  ;;  %v5338_v8 = vld [vmem:[#allocation7 + $0x64] ss:$8 sps:$4 sm:$0xff]  }
 0x534   :  { %1679 = vmatprep.mubr.bf16.mxu1 %v5811_v5  ;;  %v5339_v5 = vld [vmem:[#allocation7 + $0x60] ss:$8 sps:$4 sm:$0xff]  }
 0x53b   :  { %1680 = vmatmul.mubr.bf16.gmra.mxu1 %v5815_v6  ;;  %v5340_v6 = vld [vmem:[#allocation7 + $0x74] ss:$8 sps:$4 sm:$0xff]  }
 0x53c   :  { %1689 = vmatprep.mubr.bf16.mxu1 %v5805_v3  ;;  %v5341_v3 = vld [vmem:[#allocation7 + $0x70] ss:$8 sps:$4 sm:$0xff]  }
 0x543   :  { %1690 = vmatmul.mubr.bf16.gmra.mxu1 %v5809_v4 }
 0x544   :  { %1699 = vmatprep.mubr.bf16.mxu1 %v5332_v25 }
 0x5b1   :  { %v916_v41 = vpop.xlane.xlu0 %915 }
 0x5b2   :  { %vm917_vm14 = vcmp.ge.f32.partialorder %v913_v26, %v916_v41  ;;  %v5639_v41 = vmov -1e+30  }
 0x5b3   :  { %v918_v42 = vsel %vm917_vm14, -1e+30, %v913_v26  ;;  %v5333_v26 = vld [vmem:[#allocation7 + $0x30] ss:$8 sps:$4 sm:$0xff]  }
 0x5b4   :  { %v919_v43 = vsel %vm888_vm0, %v918_v42, -inf  ;;  %1700 = vmatmul.mubr.bf16.gmra.mxu1 %v5333_v26 }
 0x5b5   :  { %920 = vmax.xlane.f32.xlu0 %v919_v43  ;;  %v957_v44 = vpop.xlane.xlu1 %956  ;;  %1709 = vmatprep.mubr.bf16.mxu1 %v5334_v17 }
 0x5b6   :  { %vm958_vm15 = vcmp.ge.f32.partialorder %v954_v39, %v957_v44 }
 0x5b7   :  { %v959_v45 = vsel %vm958_vm15, -1e+30, %v954_v39 }
 0x5b8   :  { %v960_v47 = vsel %vm929_vm1, %v959_v45, -inf }
 0x5b9   :  { %961 = vmax.xlane.f32.xlu1 %v960_v47 }
 0x5bc   :  { %1710 = vmatmul.mubr.bf16.gmra.mxu1 %v5335_v29 }
 0x5bd   :  { %1719 = vmatprep.mubr.bf16.mxu1 %v5336_v37 }
 0x5c4   :  { %1720 = vmatmul.mubr.bf16.gmra.mxu1 %v5337_v38 }
 0x5c5   :  { %1729 = vmatprep.mubr.bf16.mxu1 %v5338_v8 }
 0x5cc   :  { %1730 = vmatmul.mubr.bf16.gmra.mxu1 %v5339_v5 }
 0x5cd   :  { %1739 = vmatprep.mubr.bf16.mxu1 %v5340_v6 }
 0x5d4   :  { %1740 = vmatmul.mubr.bf16.gmra.mxu1 %v5341_v3 }
 0x5d5   :  { %1898 = vmatprep.mubr.bf16.mxu1 %v5638_v46 }
 0x5f3   :  { %v5948_v46 = vpop.f32.mrf.mxu1 }
 0x5f5   :  { %v5950_v49 = vpop.f32.mrf.mxu1 }
 0x5f7   :  { %v5952_v50 = vpop.f32.mrf.mxu1 }
 0x5f9   :  { %v5956_v28 = vpop.f32.mrf.mxu1 }
 0x5fa   :  { %v1767_v51 = vpack.c.bf16 %v5956_v28, %v5950_v49  ;;  %v5040_v49 = vld [vmem:[#allocation14 + $0x44] ss:$8 sps:$4 sm:$0xff]   ;;  %v5038_v28 = vld [vmem:[#allocation14 + $0x40] ss:$8 sps:$4 sm:$0xff]  }
 0x5fb   :  { %v5960_v52 = vpop.f32.mrf.mxu1 }
 0x5fd   :  { %v5962_v54 = vpop.f32.mrf.mxu1 }
 0x5ff   :  { %v5964_v55 = vpop.f32.mrf.mxu1 }
 0x600   :  { %v1768_v58 = vpack.c.bf16 %v5964_v55, %v5960_v52  ;;  %v5037_v52 = vld [vmem:[#allocation14 + $0x54] ss:$8 sps:$4 sm:$0xff]   ;;  %v5035_v55 = vld [vmem:[#allocation14 + $0x50] ss:$8 sps:$4 sm:$0xff]  }
 0x601   :  { %v5968_v9 = vpop.f32.mrf.mxu1 }
 0x602   :  { %v1769_v10 = vpack.c.bf16 %v5968_v9, %v5962_v54  ;;  %v5031_v54 = vld [vmem:[#allocation14 + $0x74] ss:$8 sps:$4 sm:$0xff]   ;;  %v5034_v9 = vld [vmem:[#allocation14 + $0x64] ss:$8 sps:$4 sm:$0xff]  }
 0x603   :  { %v1691_v11 = vpop.f32.mrf.mxu1  ;;  %2113 = vmatprep.subr.bf16.mxu0 %v5031_v54 }
 0x605   :  { %v1693_v12 = vpop.f32.mrf.mxu1 }
 0x607   :  { %v1695_v13 = vpop.f32.mrf.mxu1 }
 0x609   :  { %v1697_v63 = vpop.f32.mrf.mxu1 }
 0x63e   :  { %v921_v1 = vpop.xlane.xlu0 %920 }
 0x63f   :  { %vm922_vm2 = vcmp.ge.f32.partialorder %v918_v42, %v921_v1 }
 0x640   :  { %v923_v16 = vsel %vm922_vm2, -1e+30, %v918_v42 }
 0x641   :  { %v924_v18 = vsel %vm888_vm0, %v923_v16, -inf }
 0x642   :  { %925 = vmax.xlane.f32.xlu0 %v924_v18  ;;  %v962_v19 = vpop.xlane.xlu1 %961 }
 0x643   :  { %vm963_vm3 = vcmp.ge.f32.partialorder %v959_v45, %v962_v19 }
 0x644   :  { %v964_v20 = vsel %vm963_vm3, -1e+30, %v959_v45 }
 0x645   :  { %v965_v61 = vsel %vm929_vm1, %v964_v20, -inf }
 0x646   :  { %966 = vmax.xlane.f32.xlu1 %v965_v61 }
 0x674   :  { %v1701_v0 = vpop.f32.mrf.mxu1 }
 0x676   :  { %v1703_v59 = vpop.f32.mrf.mxu1 }
 0x678   :  { %v1705_v60 = vpop.f32.mrf.mxu1 }
 0x67a   :  { %v1707_v62 = vpop.f32.mrf.mxu1 }
 0x67c   :  { %v1711_v14 = vpop.f32.mrf.mxu1 }
 0x67e   :  { %v1713_v15 = vpop.f32.mrf.mxu1 }
 0x680   :  { %v1715_v1 = vpop.f32.mrf.mxu1 }
 0x682   :  { %v1717_v16 = vpop.f32.mrf.mxu1 }
 0x683   :  { %v1775_v3 = vpack.c.bf16 %v1717_v16, %v1713_v15  ;;  %v5064_v15 = vld [vmem:[#allocation14 + $0xc4] ss:$8 sps:$4 sm:$0xff]   ;;  %v5067_v16 = vld [vmem:[#allocation14 + $0xb4] ss:$8 sps:$4 sm:$0xff]  }
 0x684   :  { %v1721_v18 = vpop.f32.mrf.mxu1 }
 0x686   :  { %v1723_v19 = vpop.f32.mrf.mxu1 }
 0x688   :  { %v1725_v20 = vpop.f32.mrf.mxu1 }
 0x689   :  { %v1776_v5 = vpack.c.bf16 %v1725_v20, %v1721_v18  ;;  %v5065_v18 = vld [vmem:[#allocation14 + $0xb0] ss:$8 sps:$4 sm:$0xff]   ;;  %v5068_v20 = vld [vmem:[#allocation14 + $0xa0] ss:$8 sps:$4 sm:$0xff]  }
 0x68a   :  { %v1727_v61 = vpop.f32.mrf.mxu1 }
 0x68b   :  { %v1777_v8 = vpack.c.bf16 %v1727_v61, %v1723_v19  ;;  %v5070_v19 = vld [vmem:[#allocation14 + $0xa4] ss:$8 sps:$4 sm:$0xff]  }
 0x68c   :  { %v1731_v21 = vpop.f32.mrf.mxu1 }
 0x68e   :  { %v1733_v22 = vpop.f32.mrf.mxu1 }
 0x690   :  { %v1735_v30 = vpop.f32.mrf.mxu1 }
 0x691   :  { %v1778_v38 = vpack.c.bf16 %v1735_v30, %v1731_v21 }
 0x692   :  { %v1737_v36 = vpop.f32.mrf.mxu1 }
 0x693   :  { %v1779_v29 = vpack.c.bf16 %v1737_v36, %v1733_v22  ;;  %v5073_v36 = vld [vmem:[#allocation14 + $0x94] ss:$8 sps:$4 sm:$0xff]  }
 0x694   :  { %v1741_v24 = vpop.f32.mrf.mxu1 }
 0x696   :  { %v1743_v23 = vpop.f32.mrf.mxu1 }
 0x698   :  { %v1745_v25 = vpop.f32.mrf.mxu1 }
 0x699   :  { %v1780_v26 = vpack.c.bf16 %v1745_v25, %v1741_v24  ;;  %v5074_v24 = vld [vmem:[#allocation14 + $0x80] ss:$8 sps:$4 sm:$0xff]  }
 0x69a   :  { %v1747_v17 = vpop.f32.mrf.mxu1 }
 0x69b   :  { %v1781_v37 = vpack.c.bf16 %v1747_v17, %v1743_v23  ;;  %v1854_v23 = vld [vmem:[#allocation13] sm:$0x3] }
 0x69c   :  { %v1859_v25 = vrot.slane %v1854_v23, %v5883_v57 }
 0x69d   :  { %1866 = vmatprep.subr.bf16.mxu1 %v1781_v37 }
 0x69e   :  { %1867 = vmatpush1.bf16.msra.mxu1 %v1780_v26  ;;  %v1863_v26 = vrot.slane %v1854_v23, %v5889_v2  ;;  %v2210_v23 = vld [vmem:[#allocation17 + $0x80] sm:$0xff] }
 0x69f   :  { %1868 = vmatprep.subr.bf16.mxu1 %v1779_v29 }
 0x6a2   :  { %1869 = vmatpush1.bf16.msra.mxu1 %v1778_v38 }
 0x6a3   :  { %1870 = vmatprep.subr.bf16.mxu1 %v1777_v8 }
 0x6a6   :  { %1871 = vmatpush1.bf16.msra.mxu1 %v1776_v5 }
 0x6a7   :  { %1872 = vmatprep.subr.bf16.mxu1 %v1775_v3 }
 0x6cb   :  { %v926_v4 = vpop.xlane.xlu0 %925 }
 0x6cc   :  { %vm927_vm4 = vcmp.ge.f32.partialorder %v5839_v53, %v926_v4 }
 0x6cd   :  { %v928_v42 = vsel %vm927_vm4, 0.0, %v5639_v41 }
 0x6cf   :  { %v967_v39 = vpop.xlane.xlu1 %966 }
 0x6d0   :  { %vm968_vm5 = vcmp.ge.f32.partialorder %v5839_v53, %v967_v39  ;;  %v1766_v53 = vpack.c.bf16 %v5952_v50, %v5948_v46  ;;  %v5043_v46 = vld [vmem:[#allocation14 + $0x34] ss:$8 sps:$4 sm:$0xff]   ;;  %v5041_v50 = vld [vmem:[#allocation14 + $0x30] ss:$8 sps:$4 sm:$0xff]  }
 0x6d1   :  { %v969_v43 = vsel %vm968_vm5, 0.0, %v5639_v41  ;;  %v1773_v41 = vpack.c.bf16 %v1707_v62, %v1703_v59  ;;  %v5058_v59 = vld [vmem:[#allocation14 + $0xe4] ss:$8 sps:$4 sm:$0xff]   ;;  %v5061_v62 = vld [vmem:[#allocation14 + $0xd4] ss:$8 sps:$4 sm:$0xff]  }
 0x6d2   :  { %v970_v44 = vsel %vm888_vm0, %v928_v42, %v969_v43  ;;  %v1772_v42 = vpack.c.bf16 %v1705_v60, %v1701_v0  ;;  %v1771_v43 = vpack.c.bf16 %v1697_v63, %v1693_v12  ;;  %v5052_v12 = vld [vmem:[#allocation14 + $0x4] ss:$8 sps:$4 sm:$0xff]   ;;  %v5055_v63 = vld [vmem:[#allocation14 + $0xf4] ss:$8 sps:$4 sm:$0xff]   ;;  %v5053_v0 = vld [vmem:[#allocation14 + $0xf0] ss:$8 sps:$4 sm:$0xff]  }
 0x6d3   :  { %v1825_v45 = vadd.f32 %v1824_v40, %v970_v44  ;;  %v1774_v40 = vpack.c.bf16 %v1715_v1, %v1711_v14  ;;  %v1770_v44 = vpack.c.bf16 %v1695_v13, %v1691_v11  ;;  %v5047_v11 = vld [vmem:[#allocation14 + $0x10] ss:$8 sps:$4 sm:$0xff]   ;;  %v5050_v13 = vld [vmem:[#allocation14] ss:$8 sps:$4 sm:$0xff]  }
 0x6d4   :  { %v5056_v60 = vld [vmem:[#allocation14 + $0xe0] ss:$8 sps:$4 sm:$0xff]   ;;  %v5059_v14 = vld [vmem:[#allocation14 + $0xd0] ss:$8 sps:$4 sm:$0xff]  }
 0x6d5   :  { %v1837_v47 = vsel %vm929_vm1, %v1825_v45, -inf  ;;  %v1826_v48 = vsel %vm888_vm0, %v1825_v45, -inf  ;;  %1873 = vmatpush1.bf16.msra.mxu1 %v1774_v40  ;;  %v5062_v1 = vld [vmem:[#allocation14 + $0xc0] ss:$8 sps:$4 sm:$0xff]  }
 0x6d6   :  { %1838 = vmax.xlane.f32.xlu0 %v1837_v47  ;;  %1827 = vmax.xlane.f32.xlu1 %v1826_v48  ;;  %v5029_v48 = vld [vmem:[#allocation14 + $0x70] ss:$8 sps:$4 sm:$0xff]  }
 0x6d7   :  { %1874 = vmatprep.subr.bf16.mxu1 %v1773_v41  ;;  %2114 = vmatpush1.bf16.msra.mxu0 %v5029_v48 }
 0x6d8   :  { %2115 = vmatprep.subr.bf16.mxu0 %v5034_v9  ;;  %v2250_v9 = vld [vmem:[#allocation17 + $0x1c0] sm:$0xff] }
 0x6d9   :  { %1875 = vmatpush1.bf16.msra.mxu1 %v1772_v42 }
 0x6da   :  { %1876 = vmatprep.subr.bf16.mxu1 %v1771_v43 }
 0x6dd   :  { %1877 = vmatpush1.bf16.msra.mxu1 %v1770_v44 }
 0x6de   :  { %1878 = vmatprep.subr.bf16.mxu1 %v1769_v10  ;;  %v5032_v10 = vld [vmem:[#allocation14 + $0x60] ss:$8 sps:$4 sm:$0xff]  }
 0x6df   :  { %2116 = vmatpush1.bf16.msra.mxu0 %v5032_v10  ;;  %v2254_v10 = vld [vmem:[#allocation17 + $0x1e0] sm:$0xff] }
 0x6e0   :  { %2117 = vmatprep.subr.bf16.mxu0 %v5037_v52  ;;  %v2251_v52 = vld [vmem:[#allocation17 + $0x1c8] sm:$0xff] }
 0x6e1   :  { %1879 = vmatpush1.bf16.msra.mxu1 %v1768_v58  ;;  %v5049_v58 = vld [vmem:[#allocation14 + $0x14] ss:$8 sps:$4 sm:$0xff]  }
 0x6e2   :  { %1880 = vmatprep.subr.bf16.mxu1 %v1767_v51  ;;  %v5044_v51 = vld [vmem:[#allocation14 + $0x20] ss:$8 sps:$4 sm:$0xff]  }
 0x6e3   :  { %2118 = vmatpush1.bf16.msra.mxu0 %v5035_v55  ;;  %v4532_v55 = vcombine.low %v2250_v9, %v2254_v10 }
 0x6e4   :  { %2119 = vmatprep.subr.bf16.mxu0 %v5040_v49  ;;  %v4533_v49 = vcombine.high %v2250_v9, %v2254_v10  ;;  %v2203_v9 = vld [vmem:[#allocation17 + $0x48] sm:$0xff] }
 0x6e5   :  { %1881 = vmatpush1.bf16.msra.mxu1 %v1766_v53  ;;  %v5046_v53 = vld [vmem:[#allocation14 + $0x24] ss:$8 sps:$4 sm:$0xff]  }
 0x6e6   :  { %3004 = vmatprep.subr.bf16.mxu1 %v4533_v49 }
 0x6e7   :  { %2120 = vmatpush1.bf16.msra.mxu0 %v5038_v28  ;;  %v2255_v28 = vld [vmem:[#allocation17 + $0x1e8] sm:$0xff] }
 0x6e8   :  { %2121 = vmatprep.subr.bf16.mxu0 %v5043_v46  ;;  %v2242_v46 = vld [vmem:[#allocation17 + $0x180] sm:$0xff] }
 0x6eb   :  { %2122 = vmatpush1.bf16.msra.mxu0 %v5041_v50  ;;  %v2246_v50 = vld [vmem:[#allocation17 + $0x1a0] sm:$0xff] }
 0x6ec   :  { %2123 = vmatprep.subr.bf16.mxu0 %v5046_v53  ;;  %v4534_v53 = vcombine.low %v2251_v52, %v2255_v28 }
 0x6ef   :  { %2124 = vmatpush1.bf16.msra.mxu0 %v5044_v51  ;;  %v4535_v51 = vcombine.high %v2251_v52, %v2255_v28  ;;  %v2207_v52 = vld [vmem:[#allocation17 + $0x68] sm:$0xff] }
 0x6f0   :  { %2125 = vmatprep.subr.bf16.mxu0 %v5049_v58  ;;  %v4525_v58 = vcombine.high %v2242_v46, %v2246_v50  ;;  %v4486_v49 = vcombine.low %v2203_v9, %v2207_v52  ;;  %v4487_v28 = vcombine.high %v2203_v9, %v2207_v52  ;;  %v2275_v9 = vld [vmem:[#allocation17 + $0x288] sm:$0xff] }
 0x6f1   :  { %v2279_v52 = vld [vmem:[#allocation17 + $0x2a8] sm:$0xff] }
 0x6f3   :  { %2126 = vmatpush1.bf16.msra.mxu0 %v5047_v11  ;;  %v2243_v11 = vld [vmem:[#allocation17 + $0x188] sm:$0xff] }
 0x6f4   :  { %2127 = vmatprep.subr.bf16.mxu0 %v5052_v12  ;;  %v2247_v12 = vld [vmem:[#allocation17 + $0x1a8] sm:$0xff] }
 0x6f7   :  { %2128 = vmatpush1.bf16.msra.mxu0 %v5050_v13  ;;  %v2234_v13 = vld [vmem:[#allocation17 + $0x140] sm:$0xff] }
 0x6f8   :  { %2129 = vmatprep.subr.bf16.mxu0 %v5055_v63  ;;  %v4527_v63 = vcombine.high %v2243_v11, %v2247_v12 }
 0x6fb   :  { %2130 = vmatpush2.bf16.msra.mxu0 %v5053_v0  ;;  %v2238_v0 = vld [vmem:[#allocation17 + $0x160] sm:$0xff] }
 0x6fc   :  { %2131 = vmatprep.subr.bf16.mxu0 %v5058_v59  ;;  %v2235_v59 = vld [vmem:[#allocation17 + $0x148] sm:$0xff] }
 0x6ff   :  { %2132 = vmatpush2.bf16.msra.mxu0 %v5056_v60  ;;  %v2239_v60 = vld [vmem:[#allocation17 + $0x168] sm:$0xff] }
 0x700   :  { %2133 = vmatprep.subr.bf16.mxu0 %v5061_v62  ;;  %v4524_v62 = vcombine.low %v2242_v46, %v2246_v50  ;;  %v2194_v46 = vld [vmem:[#allocation17] sm:$0xff] }
 0x701   :  { %v2198_v50 = vld [vmem:[#allocation17 + $0x20] sm:$0xff] }
 0x703   :  { %2134 = vmatpush2.bf16.msra.mxu0 %v5059_v14  ;;  %v4526_v14 = vcombine.low %v2243_v11, %v2247_v12  ;;  %v4476_v11 = vcombine.low %v2194_v46, %v2198_v50 }
 0x704   :  { %2135 = vmatprep.subr.bf16.mxu0 %v5064_v15  ;;  %v4517_v15 = vcombine.high %v2234_v13, %v2238_v0 }
 0x707   :  { %2136 = vmatpush2.bf16.msra.mxu0 %v5062_v1  ;;  %v4519_v1 = vcombine.high %v2235_v59, %v2239_v60 }
 0x708   :  { %2137 = vmatprep.subr.bf16.mxu0 %v5067_v16  ;;  %v2226_v16 = vld [vmem:[#allocation17 + $0x100] sm:$0xff] }
 0x70b   :  { %2138 = vmatpush2.bf16.msra.mxu0 %v5065_v18  ;;  %v2230_v18 = vld [vmem:[#allocation17 + $0x120] sm:$0xff] }
 0x70c   :  { %2139 = vmatprep.subr.bf16.mxu0 %v5070_v19  ;;  %v2227_v19 = vld [vmem:[#allocation17 + $0x108] sm:$0xff] }
 0x70f   :  { %2140 = vmatpush2.bf16.msra.mxu0 %v5068_v20  ;;  %v2231_v20 = vld [vmem:[#allocation17 + $0x128] sm:$0xff] }
 0x710   :  { %2141 = vmatprep.subr.bf16.mxu0 %v5073_v36  ;;  %v4508_v36 = vcombine.low %v2226_v16, %v2230_v18 }
 0x75f   :  { %v1839_v31 = vpop.xlane.xlu0 %1838  ;;  %v1828_v32 = vpop.xlane.xlu1 %1827 }
 0x760   :  { %v1840_v34 = vsub.f32 %v1825_v45, %v1839_v31  ;;  %v1829_v35 = vsub.f32 %v1825_v45, %v1828_v32 }
 0x762   :  { %v1841_v7 = vmul.f32 1.442695, %v1840_v34  ;;  %v1830_v33 = vmul.f32 1.442695, %v1829_v35 }
 0x764   :  { %5276 = vpow2.f32 %v1841_v7  ;;  %v5071_v7 = vld [vmem:[#allocation14 + $0x90] ss:$8 sps:$4 sm:$0xff]  }
 0x765   :  { %5278 = vpow2.f32 %v1830_v33  ;;  %2142 = vmatpush2.bf16.msra.mxu0 %v5071_v7  ;;  %v5076_v33 = vld [vmem:[#allocation14 + $0x84] ss:$8 sps:$4 sm:$0xff]   ;;  %v4510_v7 = vcombine.low %v2227_v19, %v2231_v20 }
 0x766   :  { %2143 = vmatprep.subr.bf16.mxu0 %v5076_v33 }
 0x769   :  { %2144 = vmatpush2.bf16.msra.mxu0 %v5074_v24 }
 0x76a   :  { %3045 = vmatprep.subr.bf16.mxu0 %v4535_v51  ;;  %v4477_v51 = vcombine.high %v2194_v46, %v2198_v50  ;;  %v4559_v46 = vcombine.high %v2275_v9, %v2279_v52  ;;  %v2267_v50 = vld [vmem:[#allocation17 + $0x248] sm:$0xff] }
 0x771   :  { %v5972_v6 = vpop.eup %5276 }
 0x772   :  { %v5974_v4 = vpop.eup %5278  ;;  %1844 = vrot.lane.b32.xlu0 %v5972_v6, %s5619_s24 }
 0x773   :  { %v1832_v39 = vsel %vm888_vm0, %v5974_v4, 0.0 }
 0x774   :  { %1833 = vadd.xlane.f32.xlu1 %v1832_v39 }
 0x7e4   :  { %v1845_v45 = vpop.permute.xlu0 %1844 }
 0x7e5   :  { %v1847_v47 = vsel %vm888_vm0, %v1845_v45, 0.0 }
 0x7e6   :  { %1848 = vadd.xlane.f32.xlu1 %v1847_v47 }
 0x7fd   :  { %v1834_v61 = vpop.xlane.xlu1 %1833 }
 0x7fe   :  { %5280 = vrcp.f32 %v1834_v61  ;;  %v4516_v61 = vcombine.low %v2234_v13, %v2238_v0  ;;  %v2318_v0 = vld [vmem:[#allocation17 + $0x3e0] sm:$0xff] }
 0x80b   :  { %v5281_v22 = vpop.eup %5280 }
 0x80c   :  { %v1836_v31 = vmul.f32 %v5281_v22, %v5974_v4  ;;  %v1941_v4 = vld [vmem:[#allocation16] sm:$0x3]  ;;  %v4509_v22 = vcombine.high %v2226_v16, %v2230_v18  ;;  %v2306_v16 = vld [vmem:[#allocation17 + $0x380] sm:$0xff] }
 0x80d   :  { %v1950_v39 = vrot.slane %v1941_v4, %v5889_v2  ;;  %v1946_v41 = vrot.slane %v1941_v4, %v5883_v57  ;;  %v2310_v18 = vld [vmem:[#allocation17 + $0x3a0] sm:$0xff] }
 0x86f   :  { %v1849_v21 = vpop.xlane.xlu1 %1848 }
 0x870   :  { %5282 = vrcp.f32 %v1849_v21  ;;  %v4518_v21 = vcombine.low %v2235_v59, %v2239_v60  ;;  %v2315_v59 = vld [vmem:[#allocation17 + $0x3c8] sm:$0xff] }
 0x87d   :  { %v5283_v30 = vpop.eup %5282 }
 0x87e   :  { %v1851_v32 = vmul.f32 %v5283_v30, %v5972_v6  ;;  %v4511_v30 = vcombine.high %v2227_v19, %v2231_v20  ;;  %v2307_v19 = vld [vmem:[#allocation17 + $0x388] sm:$0xff]  ;;  %v4589_v20 = vcombine.high %v2306_v16, %v2310_v18 }
 0x880   :  { %v1852_v34 = vsel %vm888_vm0, %v1836_v31, %v1851_v32  ;;  %v2218_v31 = vld [vmem:[#allocation17 + $0xc0] sm:$0xff] }
 0x881   :  { %v1853_v35 = vpack.c.bf16 %v1852_v34, %v1852_v34  ;;  %v2222_v32 = vld [vmem:[#allocation17 + $0xe0] sm:$0xff]  ;;  %v2219_v34 = vld [vmem:[#allocation17 + $0xc8] sm:$0xff] }
 0x882   :  { %v4501_v33 = vcombine.high %v2218_v31, %v2222_v32 }
 0x883   :  { %1899 = vmatmul.mubr.bf16.vlgmr.msra.gmra.mxu1 %v1853_v35  ;;  %v2223_v35 = vld [vmem:[#allocation17 + $0xe8] sm:$0xff] }
 0x884   :  { %3005 = vmatpush1.bf16.msra.mxu1 %v4532_v55  ;;  %v4503_v24 = vcombine.high %v2219_v34, %v2223_v35 }
 0x885   :  { %3006 = vmatprep.subr.bf16.mxu1 %v4525_v58  ;;  %v2199_v58 = vld [vmem:[#allocation17 + $0x28] sm:$0xff] }
 0x888   :  { %3007 = vmatpush1.bf16.msra.mxu1 %v4524_v62  ;;  %v2319_v62 = vld [vmem:[#allocation17 + $0x3e8] sm:$0xff] }
 0x889   :  { %3008 = vmatprep.subr.bf16.mxu1 %v4517_v15  ;;  %v4598_v15 = vcombine.low %v2315_v59, %v2319_v62 }
 0x88c   :  { %3009 = vmatpush1.bf16.msra.mxu1 %v4516_v61  ;;  %v2311_v61 = vld [vmem:[#allocation17 + $0x3a8] sm:$0xff] }
 0x88d   :  { %3010 = vmatprep.subr.bf16.mxu1 %v4509_v22  ;;  %v4590_v22 = vcombine.low %v2307_v19, %v2311_v61 }
 0x890   :  { %3011 = vmatpush1.bf16.msra.mxu1 %v4508_v36  ;;  %v2303_v36 = vld [vmem:[#allocation17 + $0x368] sm:$0xff] }
 0x891   :  { %3012 = vmatprep.subr.bf16.mxu1 %v4501_v33 }
 0x943   :  { %v1900_v17 = vpop.f32.mrf.mxu1 }
 0x944   :  { %v1901_v29 = vadd.f32 %v1900_v17, %v1859_v25  ;;  %v2214_v25 = vld [vmem:[#allocation17 + $0xa0] sm:$0xff]  ;;  %v2215_v17 = vld [vmem:[#allocation17 + $0xa8] sm:$0xff] }
 0x945   :  { %v1902_v37 = vpop.f32.mrf.mxu1 }
 0x946   :  { %v1903_v38 = vadd.f32 %v1902_v37, %v1863_v26  ;;  %v1907_v6 = vpack.c.bf16 %v1901_v29, %v1901_v29  ;;  %v2211_v26 = vld [vmem:[#allocation17 + $0x88] sm:$0xff]  ;;  %v4500_v29 = vcombine.low %v2218_v31, %v2222_v32  ;;  %v4502_v37 = vcombine.low %v2219_v34, %v2223_v35  ;;  %v2298_v31 = vld [vmem:[#allocation17 + $0x340] sm:$0xff] }
 0x947   :  { %v1904_v8 = vpop.f32.mrf.mxu1  ;;  %v2302_v32 = vld [vmem:[#allocation17 + $0x360] sm:$0xff]  ;;  %v2299_v34 = vld [vmem:[#allocation17 + $0x348] sm:$0xff] }
 0x948   :  { %v1908_v5 = vpack.c.bf16 %v1903_v38, %v1903_v38  ;;  %v4493_v38 = vcombine.high %v2210_v23, %v2214_v25  ;;  %v4495_v8 = vcombine.high %v2211_v26, %v2215_v17  ;;  %3013 = vmatpush1.bf16.msra.mxu1 %v4500_v29  ;;  %v4581_v35 = vcombine.high %v2298_v31, %v2302_v32  ;;  %v2295_v29 = vld [vmem:[#allocation17 + $0x328] sm:$0xff] }
 0x949   :  { %v1905_v3 = vpop.f32.mrf.mxu1  ;;  %v4582_v33 = vcombine.low %v2299_v34, %v2303_v36 }
 0x94a   :  { %2145 = vmatprep.mubr.bf16.mxu0 %v1908_v5  ;;  %v4492_v5 = vcombine.low %v2210_v23, %v2214_v25  ;;  %3014 = vmatprep.subr.bf16.mxu1 %v4493_v38  ;;  %v2290_v23 = vld [vmem:[#allocation17 + $0x300] sm:$0xff] }
 0x94b   :  { %2146 = vmatmul.mubr.bf16.vlgmr.msra.gmra.mxu0 %v1907_v6  ;;  %v4494_v6 = vcombine.low %v2211_v26, %v2215_v17  ;;  %v2294_v25 = vld [vmem:[#allocation17 + $0x320] sm:$0xff]  ;;  %v2291_v26 = vld [vmem:[#allocation17 + $0x308] sm:$0xff] }
 0x94c   :  { %3046 = vmatpush1.bf16.msra.mxu0 %v4534_v53  ;;  %3015 = vmatpush1.bf16.msra.mxu1 %v4492_v5  ;;  %v2195_v53 = vld [vmem:[#allocation17 + $0x8] sm:$0xff]  ;;  %v4573_v17 = vcombine.high %v2290_v23, %v2294_v25  ;;  %v4574_v38 = vcombine.low %v2291_v26, %v2295_v29  ;;  %v2282_v5 = vld [vmem:[#allocation17 + $0x2c0] sm:$0xff] }
 0x94d   :  { %3047 = vmatprep.subr.bf16.mxu0 %v4527_v63  ;;  %v4478_v12 = vcombine.low %v2195_v53, %v2199_v58  ;;  %v4479_v13 = vcombine.high %v2195_v53, %v2199_v58  ;;  %v2314_v63 = vld [vmem:[#allocation17 + $0x3c0] sm:$0xff]  ;;  %v2271_v53 = vld [vmem:[#allocation17 + $0x268] sm:$0xff] }
 0x94e   :  { %v4597_v60 = vcombine.high %v2314_v63, %v2318_v0 }
 0x950   :  { %3048 = vmatpush1.bf16.msra.mxu0 %v4526_v14  ;;  %v4596_v14 = vcombine.low %v2314_v63, %v2318_v0  ;;  %v2259_v63 = vld [vmem:[#allocation17 + $0x208] sm:$0xff] }
 0x951   :  { %3049 = vmatprep.subr.bf16.mxu0 %v4519_v1  ;;  %v4599_v1 = vcombine.high %v2315_v59, %v2319_v62  ;;  %v2263_v0 = vld [vmem:[#allocation17 + $0x228] sm:$0xff] }
 0x954   :  { %3050 = vmatpush1.bf16.msra.mxu0 %v4518_v21  ;;  %v4588_v21 = vcombine.low %v2306_v16, %v2310_v18  ;;  %v2252_v16 = vld [vmem:[#allocation17 + $0x1d0] sm:$0xff] }
 0x955   :  { %3051 = vmatprep.subr.bf16.mxu0 %v4511_v30  ;;  %v4591_v30 = vcombine.high %v2307_v19, %v2311_v61  ;;  %v2256_v18 = vld [vmem:[#allocation17 + $0x1f0] sm:$0xff]  ;;  %v2253_v19 = vld [vmem:[#allocation17 + $0x1d8] sm:$0xff] }
 0x956   :  { %v4537_v61 = vcombine.high %v2252_v16, %v2256_v18 }
 0x958   :  { %3052 = vmatpush1.bf16.msra.mxu0 %v4510_v7  ;;  %v4580_v7 = vcombine.low %v2298_v31, %v2302_v32 }
 0x959   :  { %3053 = vmatprep.subr.bf16.mxu0 %v4503_v24  ;;  %v4583_v24 = vcombine.high %v2299_v34, %v2303_v36 }
 0x95c   :  { %3054 = vmatpush1.bf16.msra.mxu0 %v4502_v37  ;;  %v4572_v37 = vcombine.low %v2290_v23, %v2294_v25 }
 0x95d   :  { %3055 = vmatprep.subr.bf16.mxu0 %v4495_v8  ;;  %v4575_v8 = vcombine.high %v2291_v26, %v2295_v29 }
 0x960   :  { %3056 = vmatpush1.bf16.msra.mxu0 %v4494_v6  ;;  %v2286_v6 = vld [vmem:[#allocation17 + $0x2e0] sm:$0xff] }
 0x961   :  { %3057 = vmatprep.subr.bf16.mxu0 %v4487_v28 }
 0x964   :  { %3058 = vmatpush1.bf16.msra.mxu0 %v4486_v49  ;;  %v2270_v49 = vld [vmem:[#allocation17 + $0x260] sm:$0xff] }
 0x965   :  { %3059 = vmatprep.subr.bf16.mxu0 %v4479_v13  ;;  %v2262_v13 = vld [vmem:[#allocation17 + $0x220] sm:$0xff] }
 0x968   :  { %3060 = vmatpush1.bf16.msra.mxu0 %v4478_v12  ;;  %v2258_v12 = vld [vmem:[#allocation17 + $0x200] sm:$0xff] }
 0x969   :  { %3061 = vmatprep.subr.bf16.mxu0 %v4599_v1  ;;  %v4541_v62 = vcombine.high %v2258_v12, %v2262_v13  ;;  %v4542_v1 = vcombine.low %v2259_v63, %v2263_v0 }
 0x96c   :  { %3062 = vmatpush2.bf16.msra.mxu0 %v4598_v15  ;;  %v4540_v15 = vcombine.low %v2258_v12, %v2262_v13 }
 0x96d   :  { %3063 = vmatprep.subr.bf16.mxu0 %v4591_v30 }
 0x970   :  { %3064 = vmatpush2.bf16.msra.mxu0 %v4590_v22 }
 0x971   :  { %3065 = vmatprep.subr.bf16.mxu0 %v4583_v24 }
 0x974   :  { %3066 = vmatpush2.bf16.msra.mxu0 %v4582_v33 }
 0x975   :  { %3067 = vmatprep.subr.bf16.mxu0 %v4575_v8 }
 0x978   :  { %3068 = vmatpush2.bf16.msra.mxu0 %v4574_v38 }
 0xa0b   :  { %v2147_v40 = vpop.f32.mrf.mxu0 }
 0xa0c   :  { %v2148_v45 = vadd.f32 %v2147_v40, %v1946_v41 }
 0xa0d   :  { %v2149_v42 = vpop.f32.mrf.mxu0 }
 0xa0e   :  { %v2150_v43 = vadd.f32 %v2149_v42, %v1950_v39  ;;  %v6002_v54 = vadd.f32 %v2148_v45, %v5827_v27  ;;  %v2202_v45 = vld [vmem:[#allocation17 + $0x40] sm:$0xff] }
 0xa0f   :  { %v2151_v44 = vpop.f32.mrf.mxu0 }
 0xa10   :  { %v5998_v47 = vadd.f32 %v2150_v43, %v5827_v27 }
 0xa11   :  { %v2152_v48 = vpop.f32.mrf.mxu0 }
 0xa12   :  { %2174 = vadd.xlane.f32.xlu1 %v5998_v47  ;;  %v2206_v48 = vld [vmem:[#allocation17 + $0x60] sm:$0xff] }
 0xa13   :  { %v4485_v10 = vcombine.high %v2202_v45, %v2206_v48  ;;  %v4484_v55 = vcombine.low %v2202_v45, %v2206_v48  ;;  %v2274_v45 = vld [vmem:[#allocation17 + $0x280] sm:$0xff] }
 0xa14   :  { %v2278_v48 = vld [vmem:[#allocation17 + $0x2a0] sm:$0xff] }
 0xa15   :  { %3016 = vmatprep.subr.bf16.mxu1 %v4485_v10  ;;  %v4557_v10 = vcombine.high %v2274_v45, %v2278_v48  ;;  %v4556_v28 = vcombine.low %v2274_v45, %v2278_v48  ;;  %v2249_v45 = vld [vmem:[#allocation17 + $0x1b8] sm:$0xff] }
 0xa16   :  { %2156 = vadd.xlane.f32.xlu1 %v6002_v54  ;;  %3017 = vmatpush1.bf16.msra.mxu1 %v4484_v55  ;;  %v2266_v55 = vld [vmem:[#allocation17 + $0x240] sm:$0xff] }
 0xa17   :  { %3018 = vmatprep.subr.bf16.mxu1 %v4477_v51  ;;  %v4558_v51 = vcombine.low %v2275_v9, %v2279_v52  ;;  %v4549_v58 = vcombine.high %v2266_v55, %v2270_v49  ;;  %v4548_v59 = vcombine.low %v2266_v55, %v2270_v49  ;;  %v2236_v9 = vld [vmem:[#allocation17 + $0x150] sm:$0xff]  ;;  %v2237_v49 = vld [vmem:[#allocation17 + $0x158] sm:$0xff] }
 0xa18   :  { %v2240_v55 = vld [vmem:[#allocation17 + $0x170] sm:$0xff] }
 0xa19   :  { %v4520_v12 = vcombine.low %v2236_v9, %v2240_v55 }
 0xa1a   :  { %3019 = vmatpush1.bf16.msra.mxu1 %v4476_v11  ;;  %v4551_v11 = vcombine.high %v2267_v50, %v2271_v53 }
 0xa1b   :  { %3020 = vmatprep.subr.bf16.mxu1 %v4597_v60  ;;  %v4550_v60 = vcombine.low %v2267_v50, %v2271_v53  ;;  %v2228_v53 = vld [vmem:[#allocation17 + $0x110] sm:$0xff] }
 0xa1e   :  { %3021 = vmatpush2.bf16.msra.mxu1 %v4596_v14  ;;  %v4543_v14 = vcombine.high %v2259_v63, %v2263_v0 }
 0xa1f   :  { %3022 = vmatprep.subr.bf16.mxu1 %v4589_v20  ;;  %v4536_v20 = vcombine.low %v2252_v16, %v2256_v18 }
 0xa22   :  { %3023 = vmatpush2.bf16.msra.mxu1 %v4588_v21  ;;  %v2257_v21 = vld [vmem:[#allocation17 + $0x1f8] sm:$0xff] }
 0xa23   :  { %3024 = vmatprep.subr.bf16.mxu1 %v4581_v35  ;;  %v4538_v22 = vcombine.low %v2253_v19, %v2257_v21  ;;  %v4539_v30 = vcombine.high %v2253_v19, %v2257_v21  ;;  %v2212_v19 = vld [vmem:[#allocation17 + $0x90] sm:$0xff]  ;;  %v2217_v21 = vld [vmem:[#allocation17 + $0xb8] sm:$0xff] }
 0xa26   :  { %3025 = vmatpush2.bf16.msra.mxu1 %v4580_v7 }
 0xa27   :  { %3026 = vmatprep.subr.bf16.mxu1 %v4573_v17 }
 0xa2a   :  { %3027 = vmatpush2.bf16.msra.mxu1 %v4572_v37 }
 0xa9b   :  { %v2175_v3 = vpop.xlane.xlu1 %2174 }
 0xa9c   :  { %v2176_v4 = vmul.f32 0.0078125, %v2175_v3  ;;  %v2283_v3 = vld [vmem:[#allocation17 + $0x2c8] sm:$0xff] }
 0xa9e   :  { %v6006_v39 = vsub.f32 %v5998_v47, %v2176_v4  ;;  %v4565_v4 = vcombine.high %v2282_v5, %v2286_v6 }
 0xa9f   :  { %v2157_v40 = vpop.xlane.xlu1 %2156 }
 0xaa0   :  { %v2158_v41 = vmul.f32 0.0078125, %v2157_v40  ;;  %v2178_v42 = vmul.f32 %v6006_v39, %v6006_v39  ;;  %v2287_v40 = vld [vmem:[#allocation17 + $0x2e8] sm:$0xff]  ;;  %3028 = vmatprep.subr.bf16.mxu1 %v4565_v4 }
 0xaa2   :  { %v6011_v43 = vsub.f32 %v6002_v54, %v2158_v41  ;;  %2179 = vadd.xlane.f32.xlu1 %v2178_v42  ;;  %v4564_v41 = vcombine.low %v2282_v5, %v2286_v6  ;;  %v4566_v42 = vcombine.low %v2283_v3, %v2287_v40 }
 0xaa4   :  { %v2160_v44 = vmul.f32 %v6011_v43, %v6011_v43  ;;  %3029 = vmatpush2.bf16.msra.mxu1 %v4564_v41 }
 0xaa5   :  { %3030 = vmatprep.subr.bf16.mxu1 %v4557_v10 }
 0xaa6   :  { %2161 = vadd.xlane.f32.xlu1 %v2160_v44  ;;  %v4567_v44 = vcombine.high %v2283_v3, %v2287_v40  ;;  %v2244_v40 = vld [vmem:[#allocation17 + $0x190] sm:$0xff] }
 0xaa8   :  { %3069 = vmatprep.subr.bf16.mxu0 %v4567_v44  ;;  %3031 = vmatpush2.bf16.msra.mxu1 %v4556_v28  ;;  %v2245_v44 = vld [vmem:[#allocation17 + $0x198] sm:$0xff] }
 0xaa9   :  { %3070 = vmatpush2.bf16.msra.mxu0 %v4566_v42  ;;  %3032 = vmatprep.subr.bf16.mxu1 %v4549_v58  ;;  %v2248_v42 = vld [vmem:[#allocation17 + $0x1b0] sm:$0xff]  ;;  %v4531_v52 = vcombine.high %v2245_v44, %v2249_v45  ;;  %v2241_v28 = vld [vmem:[#allocation17 + $0x178] sm:$0xff] }
 0xaaa   :  { %3071 = vmatprep.subr.bf16.mxu0 %v4559_v46  ;;  %v4529_v10 = vcombine.high %v2244_v40, %v2248_v42  ;;  %v4530_v46 = vcombine.low %v2245_v44, %v2249_v45  ;;  %v4523_v50 = vcombine.high %v2237_v49, %v2241_v28  ;;  %v2229_v58 = vld [vmem:[#allocation17 + $0x118] sm:$0xff]  ;;  %v4522_v13 = vcombine.low %v2237_v49, %v2241_v28 }
 0xaab   :  { %v2313_v49 = vld [vmem:[#allocation17 + $0x3b8] sm:$0xff] }
 0xaac   :  { %3033 = vmatpush2.bf16.msra.mxu1 %v4548_v59  ;;  %v2220_v59 = vld [vmem:[#allocation17 + $0xd0] sm:$0xff] }
 0xaad   :  { %3072 = vmatpush2.bf16.msra.mxu0 %v4558_v51  ;;  %3034 = vmatprep.subr.bf16.mxu1 %v4541_v62  ;;  %v2232_v51 = vld [vmem:[#allocation17 + $0x130] sm:$0xff]  ;;  %v2221_v62 = vld [vmem:[#allocation17 + $0xd8] sm:$0xff] }
 0xaae   :  { %3073 = vmatprep.subr.bf16.mxu0 %v4551_v11  ;;  %v2233_v11 = vld [vmem:[#allocation17 + $0x138] sm:$0xff]  ;;  %v4513_v63 = vcombine.high %v2228_v53, %v2232_v51 }
 0xaaf   :  { %v4515_v0 = vcombine.high %v2229_v58, %v2233_v11 }
 0xab0   :  { %3035 = vmatpush2.bf16.msra.mxu1 %v4540_v15  ;;  %v4512_v15 = vcombine.low %v2228_v53, %v2232_v51  ;;  %v2304_v53 = vld [vmem:[#allocation17 + $0x370] sm:$0xff]  ;;  %v2301_v51 = vld [vmem:[#allocation17 + $0x358] sm:$0xff] }
 0xab1   :  { %3074 = vmatpush2.bf16.msra.mxu0 %v4550_v60  ;;  %3086 = vmatprep.subr.bf16.mxu1 %v4537_v61  ;;  %v2224_v60 = vld [vmem:[#allocation17 + $0xf0] sm:$0xff]  ;;  %v2213_v61 = vld [vmem:[#allocation17 + $0x98] sm:$0xff] }
 0xab2   :  { %3075 = vmatprep.subr.bf16.mxu0 %v4543_v14  ;;  %v2225_v14 = vld [vmem:[#allocation17 + $0xf8] sm:$0xff]  ;;  %v4505_v16 = vcombine.high %v2220_v59, %v2224_v60 }
 0xab3   :  { %v4507_v18 = vcombine.high %v2221_v62, %v2225_v14 }
 0xab5   :  { %3076 = vmatpush2.bf16.msra.mxu0 %v4542_v1  ;;  %v4514_v1 = vcombine.low %v2229_v58, %v2233_v11  ;;  %v2305_v58 = vld [vmem:[#allocation17 + $0x378] sm:$0xff] }
 0xab6   :  { %3127 = vmatprep.subr.bf16.mxu0 %v4539_v30  ;;  %v4506_v30 = vcombine.low %v2221_v62, %v2225_v14  ;;  %v2297_v62 = vld [vmem:[#allocation17 + $0x338] sm:$0xff] }
 0xb2b   :  { %v2180_v31 = vpop.xlane.xlu1 %2179 }
 0xb2c   :  { %v2181_v32 = vmul.f32 0.0078125, %v2180_v31 }
 0xb2e   :  { %v2182_v34 = vadd.f32 1e-05, %v2181_v32  ;;  %v4499_v32 = vcombine.high %v2213_v61, %v2217_v21 }
 0xb2f   :  { %v2162_v35 = vpop.xlane.xlu1 %2161 }
 0xb30   :  { %5284 = vrsqrt.f32 %v2182_v34  ;;  %v2163_v36 = vmul.f32 0.0078125, %v2162_v35  ;;  %vm2185_vm0 = vcmp.eq.f32.partialorder %v2182_v34, inf  ;;  %v2188_v23 = vand.u32 2147483648, %v2182_v34  ;;  %v2208_v35 = vld [vmem:[#allocation17 + $0x70] sm:$0xff] }
 0xb31   :  { %vm2187_vm1 = vcmp.eq.f32.partialorder %v2182_v34, 0.0 }
 0xb32   :  { %v2164_v7 = vadd.f32 1e-05, %v2163_v36  ;;  %v2205_v36 = vld [vmem:[#allocation17 + $0x58] sm:$0xff] }
 0xb34   :  { %5286 = vrsqrt.f32 %v2164_v7  ;;  %vm2167_vm6 = vcmp.eq.f32.partialorder %v2164_v7, inf  ;;  %v2170_v37 = vand.u32 2147483648, %v2164_v7  ;;  %vm2169_vm7 = vcmp.eq.f32.partialorder %v2164_v7, 0.0 }
 0xb3d   :  { %v5285_v33 = vpop.eup %5284 }
 0xb3e   :  { %v2184_v24 = vmul.f32 %v5285_v33, %v2182_v34 }
 0xb40   :  { %v2186_v25 = vsel %vm2185_vm0, %v2182_v34, %v2184_v24  ;;  %v2204_v34 = vld [vmem:[#allocation17 + $0x50] sm:$0xff]  ;;  %v4498_v24 = vcombine.low %v2213_v61, %v2217_v21  ;;  %v2289_v61 = vld [vmem:[#allocation17 + $0x2f8] sm:$0xff] }
 0xb41   :  { %v2189_v26 = vsel %vm2187_vm1, %v2188_v23, %v2186_v25  ;;  %v5287_v17 = vpop.eup %5286  ;;  %v4489_v23 = vcombine.high %v2204_v34, %v2208_v35 }
 0xb42   :  { %5288 = vrcp.f32 %v2189_v26  ;;  %v2166_v29 = vmul.f32 %v5287_v17, %v2164_v7  ;;  %v2196_v26 = vld [vmem:[#allocation17 + $0x10] sm:$0xff] }
 0xb43   :  { %v2200_v17 = vld [vmem:[#allocation17 + $0x30] sm:$0xff] }
 0xb44   :  { %v2168_v38 = vsel %vm2167_vm6, %v2164_v7, %v2166_v29  ;;  %v2209_v7 = vld [vmem:[#allocation17 + $0x78] sm:$0xff] }
 0xb45   :  { %v2171_v8 = vsel %vm2169_vm7, %v2170_v37, %v2168_v38  ;;  %v4491_v25 = vcombine.high %v2205_v36, %v2209_v7  ;;  %v2197_v29 = vld [vmem:[#allocation17 + $0x18] sm:$0xff]  ;;  %v4488_v38 = vcombine.low %v2204_v34, %v2208_v35  ;;  %v2280_v34 = vld [vmem:[#allocation17 + $0x2b0] sm:$0xff] }
 0xb46   :  { %5290 = vrcp.f32 %v2171_v8  ;;  %v2201_v37 = vld [vmem:[#allocation17 + $0x38] sm:$0xff]  ;;  %v4490_v8 = vcombine.low %v2205_v36, %v2209_v7 }
 0xb47   :  { %v4482_v44 = vcombine.low %v2197_v29, %v2201_v37  ;;  %v2277_v35 = vld [vmem:[#allocation17 + $0x298] sm:$0xff] }
 0xb48   :  { %v2281_v36 = vld [vmem:[#allocation17 + $0x2b8] sm:$0xff] }
 0xb4f   :  { %v5289_v5 = vpop.eup %5288 }
 0xb50   :  { %v2191_v6 = vmul.f32 %v5289_v5, %v6006_v39  ;;  %v4528_v39 = vcombine.low %v2244_v40, %v2248_v42  ;;  %v4481_v5 = vcombine.high %v2196_v26, %v2200_v17  ;;  %v2317_v40 = vld [vmem:[#allocation17 + $0x3d8] sm:$0xff]  ;;  %v4480_v42 = vcombine.low %v2196_v26, %v2200_v17  ;;  %v2272_v26 = vld [vmem:[#allocation17 + $0x270] sm:$0xff] }
 0xb51   :  { %v2269_v17 = vld [vmem:[#allocation17 + $0x258] sm:$0xff] }
 0xb52   :  { %v2193_v3 = vpack.c.bf16 %v2191_v6, %v2191_v6  ;;  %v4483_v6 = vcombine.high %v2197_v29, %v2201_v37  ;;  %v2273_v29 = vld [vmem:[#allocation17 + $0x278] sm:$0xff] }
 0xb53   :  { %v5291_v4 = vpop.eup %5290 }
 0xb54   :  { %3036 = vmatprep.mubr.bf16.mxu1 %v2193_v3  ;;  %3077 = vmatprep.mubr.bf16.mxu0 %v2193_v3  ;;  %v2173_v41 = vmul.f32 %v5291_v4, %v6011_v43  ;;  %v4521_v43 = vcombine.high %v2236_v9, %v2240_v55  ;;  %v2320_v4 = vld [vmem:[#allocation17 + $0x3f0] sm:$0xff]  ;;  %v2309_v55 = vld [vmem:[#allocation17 + $0x398] sm:$0xff] }
 0xb56   :  { %v6017_v48 = vpack.c.bf16 %v2173_v41, %v2173_v41  ;;  %v2321_v41 = vld [vmem:[#allocation17 + $0x3f8] sm:$0xff] }
 0xb57   :  { %v4603_v9 = vcombine.high %v2317_v40, %v2321_v41 }
 0xb58   :  { %3037 = vmatmul.mubr.bf16.vlgmr.msra.gmra.mxu1 %v6017_v48  ;;  %3078 = vmatmul.mubr.bf16.vlgmr.msra.gmra.mxu0 %v6017_v48 }
 0xb59   :  { %3087 = vmatpush1.bf16.msra.mxu1 %v4536_v20  ;;  %3128 = vmatpush1.bf16.msra.mxu0 %v4538_v22  ;;  %v2216_v20 = vld [vmem:[#allocation17 + $0xb0] sm:$0xff]  ;;  %v4504_v22 = vcombine.low %v2220_v59, %v2224_v60  ;;  %v2293_v60 = vld [vmem:[#allocation17 + $0x318] sm:$0xff] }
 0xb5a   :  { %3118 = vmatprep.mubr.bf16.mxu1 %v2193_v3  ;;  %3159 = vmatprep.mubr.bf16.mxu0 %v2193_v3  ;;  %v4497_v31 = vcombine.high %v2212_v19, %v2216_v20  ;;  %v4496_v33 = vcombine.low %v2212_v19, %v2216_v20  ;;  %v2316_v3 = vld [vmem:[#allocation17 + $0x3d0] sm:$0xff]  ;;  %v2285_v20 = vld [vmem:[#allocation17 + $0x2d8] sm:$0xff] }
 0xb5b   :  { %3088 = vmatprep.subr.bf16.mxu1 %v4529_v10  ;;  %3129 = vmatprep.subr.bf16.mxu0 %v4531_v52  ;;  %v4601_v45 = vcombine.high %v2316_v3, %v2320_v4  ;;  %v2308_v10 = vld [vmem:[#allocation17 + $0x390] sm:$0xff]  ;;  %v4600_v28 = vcombine.low %v2316_v3, %v2320_v4  ;;  %v2261_v4 = vld [vmem:[#allocation17 + $0x218] sm:$0xff] }
 0xb5c   :  { %v2312_v52 = vld [vmem:[#allocation17 + $0x3b0] sm:$0xff] }
 0xb5d   :  { %3089 = vmatpush1.bf16.msra.mxu1 %v4528_v39  ;;  %3130 = vmatpush1.bf16.msra.mxu0 %v4530_v46  ;;  %v4602_v39 = vcombine.low %v2317_v40, %v2321_v41  ;;  %v4593_v46 = vcombine.high %v2308_v10, %v2312_v52  ;;  %v4592_v11 = vcombine.low %v2308_v10, %v2312_v52  ;;  %v2296_v59 = vld [vmem:[#allocation17 + $0x330] sm:$0xff]  ;;  %v2265_v40 = vld [vmem:[#allocation17 + $0x238] sm:$0xff] }
 0xb5e   :  { %3090 = vmatprep.subr.bf16.mxu1 %v4521_v43  ;;  %3131 = vmatprep.subr.bf16.mxu0 %v4523_v50  ;;  %v4595_v43 = vcombine.high %v2309_v55, %v2313_v49  ;;  %v2300_v50 = vld [vmem:[#allocation17 + $0x350] sm:$0xff]  ;;  %v4546_v10 = vcombine.low %v2261_v4, %v2265_v40 }
 0xb5f   :  { %v4584_v14 = vcombine.low %v2300_v50, %v2304_v53  ;;  %v2288_v19 = vld [vmem:[#allocation17 + $0x2f0] sm:$0xff] }
 0xb60   :  { %v2264_v3 = vld [vmem:[#allocation17 + $0x230] sm:$0xff] }
 0xb61   :  { %3091 = vmatpush1.bf16.msra.mxu1 %v4520_v12  ;;  %3132 = vmatpush1.bf16.msra.mxu0 %v4522_v13  ;;  %v4594_v12 = vcombine.low %v2309_v55, %v2313_v49  ;;  %v4585_v13 = vcombine.high %v2300_v50, %v2304_v53  ;;  %v5079_v52 = vld [vmem:[#allocation19 + $0x74] ss:$8 sps:$4 sm:$0xff]   ;;  %v5077_v49 = vld [vmem:[#allocation19 + $0x70] ss:$8 sps:$4 sm:$0xff]   ;;  %v5086_v50 = vld [vmem:[#allocation19 + $0x160] ss:$8 sps:$4 sm:$0xff]  }
 0xb62   :  { %3092 = vmatprep.subr.bf16.mxu1 %v4513_v63  ;;  %3133 = vmatprep.subr.bf16.mxu0 %v4515_v0  ;;  %v4587_v63 = vcombine.high %v2301_v51, %v2305_v58  ;;  %v2292_v0 = vld [vmem:[#allocation17 + $0x310] sm:$0xff] }
 0xb63   :  { %v4576_v21 = vcombine.low %v2292_v0, %v2296_v59  ;;  %v5082_v55 = vld [vmem:[#allocation19 + $0x174] ss:$8 sps:$4 sm:$0xff]  }
 0xb64   :  { %v5091_v53 = vld [vmem:[#allocation19 + $0x54] ss:$8 sps:$4 sm:$0xff]  }
 0xb65   :  { %3093 = vmatpush1.bf16.msra.mxu1 %v4512_v15  ;;  %3134 = vmatpush1.bf16.msra.mxu0 %v4514_v1  ;;  %v4586_v15 = vcombine.low %v2301_v51, %v2305_v58  ;;  %v4577_v1 = vcombine.high %v2292_v0, %v2296_v59  ;;  %v5094_v51 = vld [vmem:[#allocation19 + $0x154] ss:$8 sps:$4 sm:$0xff]   ;;  %v5089_v58 = vld [vmem:[#allocation19 + $0x50] ss:$8 sps:$4 sm:$0xff]  }
 0xb66   :  { %3094 = vmatprep.subr.bf16.mxu1 %v4505_v16  ;;  %3135 = vmatprep.subr.bf16.mxu0 %v4507_v18  ;;  %v4579_v16 = vcombine.high %v2293_v60, %v2297_v62  ;;  %v2284_v18 = vld [vmem:[#allocation17 + $0x2d0] sm:$0xff] }
 0xb67   :  { %v4568_v7 = vcombine.low %v2284_v18, %v2288_v19  ;;  %v5103_v0 = vld [vmem:[#allocation19 + $0x34] ss:$8 sps:$4 sm:$0xff]  }
 0xb68   :  { %v5106_v59 = vld [vmem:[#allocation19 + $0x134] ss:$8 sps:$4 sm:$0xff]  }
 0xb69   :  { %3095 = vmatpush1.bf16.msra.mxu1 %v4504_v22  ;;  %3136 = vmatpush1.bf16.msra.mxu0 %v4506_v30  ;;  %v4578_v22 = vcombine.low %v2293_v60, %v2297_v62  ;;  %v4569_v30 = vcombine.high %v2284_v18, %v2288_v19  ;;  %v5101_v60 = vld [vmem:[#allocation19 + $0x30] ss:$8 sps:$4 sm:$0xff]   ;;  %v5115_v18 = vld [vmem:[#allocation19 + $0x14] ss:$8 sps:$4 sm:$0xff]  }
 0xb6a   :  { %3096 = vmatprep.subr.bf16.mxu1 %v4497_v31  ;;  %3137 = vmatprep.subr.bf16.mxu0 %v4499_v32  ;;  %v4571_v31 = vcombine.high %v2285_v20, %v2289_v61  ;;  %v2276_v32 = vld [vmem:[#allocation17 + $0x290] sm:$0xff] }
 0xb6b   :  { %v4560_v37 = vcombine.low %v2276_v32, %v2280_v34  ;;  %v5104_v62 = vld [vmem:[#allocation19 + $0x130] ss:$8 sps:$4 sm:$0xff]   ;;  %v5118_v19 = vld [vmem:[#allocation19 + $0x114] ss:$8 sps:$4 sm:$0xff]  }
 0xb6d   :  { %3097 = vmatpush1.bf16.msra.mxu1 %v4496_v33  ;;  %3138 = vmatpush1.bf16.msra.mxu0 %v4498_v24  ;;  %v4570_v33 = vcombine.low %v2285_v20, %v2289_v61  ;;  %v4561_v24 = vcombine.high %v2276_v32, %v2280_v34  ;;  %v5113_v20 = vld [vmem:[#allocation19 + $0x10] ss:$8 sps:$4 sm:$0xff]   ;;  %v5127_v32 = vld [vmem:[#allocation19 + $0xf4] ss:$8 sps:$4 sm:$0xff]  }
 0xb6e   :  { %3098 = vmatprep.subr.bf16.mxu1 %v4489_v23  ;;  %3139 = vmatprep.subr.bf16.mxu0 %v4491_v25  ;;  %v4563_v23 = vcombine.high %v2277_v35, %v2281_v36  ;;  %v2268_v25 = vld [vmem:[#allocation17 + $0x250] sm:$0xff] }
 0xb6f   :  { %v4552_v41 = vcombine.low %v2268_v25, %v2272_v26  ;;  %v5116_v61 = vld [vmem:[#allocation19 + $0x110] ss:$8 sps:$4 sm:$0xff]   ;;  %v5130_v34 = vld [vmem:[#allocation19 + $0x1f4] ss:$8 sps:$4 sm:$0xff]  }
 0xb71   :  { %3099 = vmatpush1.bf16.msra.mxu1 %v4488_v38  ;;  %3140 = vmatpush1.bf16.msra.mxu0 %v4490_v8  ;;  %v4562_v38 = vcombine.low %v2277_v35, %v2281_v36  ;;  %v4553_v8 = vcombine.high %v2268_v25, %v2272_v26  ;;  %v5125_v35 = vld [vmem:[#allocation19 + $0xf0] ss:$8 sps:$4 sm:$0xff]   ;;  %v5139_v25 = vld [vmem:[#allocation19 + $0xd4] ss:$8 sps:$4 sm:$0xff]  }
 0xb72   :  { %3100 = vmatprep.subr.bf16.mxu1 %v4481_v5  ;;  %3141 = vmatprep.subr.bf16.mxu0 %v4483_v6  ;;  %v4555_v5 = vcombine.high %v2269_v17, %v2273_v29  ;;  %v2260_v6 = vld [vmem:[#allocation17 + $0x210] sm:$0xff] }
 0xb73   :  { %v5128_v36 = vld [vmem:[#allocation19 + $0x1f0] ss:$8 sps:$4 sm:$0xff]   ;;  %v5142_v26 = vld [vmem:[#allocation19 + $0x1d4] ss:$8 sps:$4 sm:$0xff]  }
 0xb75   :  { %3101 = vmatpush1.bf16.msra.mxu1 %v4480_v42  ;;  %3142 = vmatpush1.bf16.msra.mxu0 %v4482_v44  ;;  %v4554_v42 = vcombine.low %v2269_v17, %v2273_v29  ;;  %v4545_v44 = vcombine.high %v2260_v6, %v2264_v3  ;;  %v5137_v17 = vld [vmem:[#allocation19 + $0xd0] ss:$8 sps:$4 sm:$0xff]  }
 0xb76   :  { %3102 = vmatprep.subr.bf16.mxu1 %v4601_v45  ;;  %3143 = vmatprep.subr.bf16.mxu0 %v4603_v9  ;;  %v4547_v45 = vcombine.high %v2261_v4, %v2265_v40  ;;  %v4544_v9 = vcombine.low %v2260_v6, %v2264_v3  ;;  %v5140_v29 = vld [vmem:[#allocation19 + $0x1d0] ss:$8 sps:$4 sm:$0xff]   ;;  %v5151_v6 = vld [vmem:[#allocation19 + $0xb4] ss:$8 sps:$4 sm:$0xff]  }
 0xb77   :  { %v5154_v3 = vld [vmem:[#allocation19 + $0x1b4] ss:$8 sps:$4 sm:$0xff]   ;;  %v5149_v4 = vld [vmem:[#allocation19 + $0xb0] ss:$8 sps:$4 sm:$0xff]  }
 0xb78   :  { %v5152_v40 = vld [vmem:[#allocation19 + $0x1b0] ss:$8 sps:$4 sm:$0xff]  }
 0xb79   :  { %3103 = vmatpush2.bf16.msra.mxu1 %v4600_v28  ;;  %3144 = vmatpush2.bf16.msra.mxu0 %v4602_v39  ;;  %v5080_v28 = vld [vmem:[#allocation19 + $0x170] ss:$8 sps:$4 sm:$0xff]   ;;  %v5085_v39 = vld [vmem:[#allocation19 + $0x64] ss:$8 sps:$4 sm:$0xff]  }
 0xb7a   :  { %3104 = vmatprep.subr.bf16.mxu1 %v4593_v46  ;;  %3145 = vmatprep.subr.bf16.mxu0 %v4595_v43  ;;  %v5088_v46 = vld [vmem:[#allocation19 + $0x164] ss:$8 sps:$4 sm:$0xff]   ;;  %v5083_v43 = vld [vmem:[#allocation19 + $0x60] ss:$8 sps:$4 sm:$0xff]  }
 0xb7d   :  { %3105 = vmatpush2.bf16.msra.mxu1 %v4592_v11  ;;  %3146 = vmatpush2.bf16.msra.mxu0 %v4594_v12  ;;  %v5092_v11 = vld [vmem:[#allocation19 + $0x150] ss:$8 sps:$4 sm:$0xff]   ;;  %v5097_v12 = vld [vmem:[#allocation19 + $0x44] ss:$8 sps:$4 sm:$0xff]  }
 0xb7e   :  { %3106 = vmatprep.subr.bf16.mxu1 %v4585_v13  ;;  %3147 = vmatprep.subr.bf16.mxu0 %v4587_v63  ;;  %v5100_v13 = vld [vmem:[#allocation19 + $0x144] ss:$8 sps:$4 sm:$0xff]   ;;  %v5095_v63 = vld [vmem:[#allocation19 + $0x40] ss:$8 sps:$4 sm:$0xff]  }
 0xb81   :  { %3107 = vmatpush2.bf16.msra.mxu1 %v4584_v14  ;;  %3148 = vmatpush2.bf16.msra.mxu0 %v4586_v15  ;;  %v5109_v14 = vld [vmem:[#allocation19 + $0x24] ss:$8 sps:$4 sm:$0xff]  }
 0xb82   :  { %3108 = vmatprep.subr.bf16.mxu1 %v4577_v1  ;;  %3149 = vmatprep.subr.bf16.mxu0 %v4579_v16  ;;  %v5112_v15 = vld [vmem:[#allocation19 + $0x124] ss:$8 sps:$4 sm:$0xff]   ;;  %v5107_v1 = vld [vmem:[#allocation19 + $0x20] ss:$8 sps:$4 sm:$0xff]  }
 0xb83   :  { %v5110_v16 = vld [vmem:[#allocation19 + $0x120] ss:$8 sps:$4 sm:$0xff]  }
 0xb85   :  { %3109 = vmatpush2.bf16.msra.mxu1 %v4576_v21  ;;  %3150 = vmatpush2.bf16.msra.mxu0 %v4578_v22  ;;  %v5121_v21 = vld [vmem:[#allocation19 + $0x4] ss:$8 sps:$4 sm:$0xff]  }
 0xb86   :  { %3110 = vmatprep.subr.bf16.mxu1 %v4569_v30  ;;  %3151 = vmatprep.subr.bf16.mxu0 %v4571_v31  ;;  %v5124_v22 = vld [vmem:[#allocation19 + $0x104] ss:$8 sps:$4 sm:$0xff]   ;;  %v5119_v30 = vld [vmem:[#allocation19] ss:$8 sps:$4 sm:$0xff]  }
 0xb87   :  { %v5122_v31 = vld [vmem:[#allocation19 + $0x100] ss:$8 sps:$4 sm:$0xff]  }
 0xb89   :  { %3111 = vmatpush2.bf16.msra.mxu1 %v4568_v7  ;;  %3152 = vmatpush2.bf16.msra.mxu0 %v4570_v33  ;;  %v5133_v7 = vld [vmem:[#allocation19 + $0xe4] ss:$8 sps:$4 sm:$0xff]  }
 0xb8a   :  { %3112 = vmatprep.subr.bf16.mxu1 %v4561_v24  ;;  %3153 = vmatprep.subr.bf16.mxu0 %v4563_v23  ;;  %v5136_v33 = vld [vmem:[#allocation19 + $0x1e4] ss:$8 sps:$4 sm:$0xff]   ;;  %v5131_v24 = vld [vmem:[#allocation19 + $0xe0] ss:$8 sps:$4 sm:$0xff]  }
 0xb8b   :  { %v5134_v23 = vld [vmem:[#allocation19 + $0x1e0] ss:$8 sps:$4 sm:$0xff]  }
 0xb8d   :  { %3113 = vmatpush2.bf16.msra.mxu1 %v4560_v37  ;;  %3154 = vmatpush2.bf16.msra.mxu0 %v4562_v38  ;;  %v5145_v37 = vld [vmem:[#allocation19 + $0xc4] ss:$8 sps:$4 sm:$0xff]  }
 0xb8e   :  { %3114 = vmatprep.subr.bf16.mxu1 %v4553_v8  ;;  %3155 = vmatprep.subr.bf16.mxu0 %v4555_v5  ;;  %v5148_v38 = vld [vmem:[#allocation19 + $0x1c4] ss:$8 sps:$4 sm:$0xff]   ;;  %v5143_v8 = vld [vmem:[#allocation19 + $0xc0] ss:$8 sps:$4 sm:$0xff]  }
 0xb8f   :  { %v5146_v5 = vld [vmem:[#allocation19 + $0x1c0] ss:$8 sps:$4 sm:$0xff]  }
 0xb91   :  { %3115 = vmatpush2.bf16.msra.mxu1 %v4552_v41  ;;  %3156 = vmatpush2.bf16.msra.mxu0 %v4554_v42  ;;  %v5157_v41 = vld [vmem:[#allocation19 + $0xa4] ss:$8 sps:$4 sm:$0xff]  }
 0xb92   :  { %3116 = vmatprep.subr.bf16.mxu1 %v4545_v44  ;;  %3157 = vmatprep.subr.bf16.mxu0 %v4547_v45  ;;  %v5160_v42 = vld [vmem:[#allocation19 + $0x1a4] ss:$8 sps:$4 sm:$0xff]   ;;  %v5155_v44 = vld [vmem:[#allocation19 + $0xa0] ss:$8 sps:$4 sm:$0xff]  }
 0xb93   :  { %v5158_v45 = vld [vmem:[#allocation19 + $0x1a0] ss:$8 sps:$4 sm:$0xff]  }
 0xb95   :  { %3117 = vmatpush2.bf16.msra.mxu1 %v4544_v9  ;;  %3158 = vmatpush2.bf16.msra.mxu0 %v4546_v10  ;;  %v5163_v9 = vld [vmem:[#allocation19 + $0x94] ss:$8 sps:$4 sm:$0xff]  }
 0xb96   :  { %4020 = vmatprep.subr.bf16.mxu1 %v5079_v52  ;;  %4061 = vmatprep.subr.bf16.mxu0 %v5082_v55  ;;  %v5166_v10 = vld [vmem:[#allocation19 + $0x194] ss:$8 sps:$4 sm:$0xff]   ;;  %v5161_v52 = vld [vmem:[#allocation19 + $0x90] ss:$8 sps:$4 sm:$0xff]  }
 0xb97   :  { %v5164_v55 = vld [vmem:[#allocation19 + $0x190] ss:$8 sps:$4 sm:$0xff]  }
 0xb98   :  { %3119 = vmatmul.mubr.bf16.vlgmr.msra.gmra.mxu1 %v6017_v48  ;;  %3160 = vmatmul.mubr.bf16.vlgmr.msra.gmra.mxu0 %v6017_v48  ;;  %v5098_v48 = vld [vmem:[#allocation19 + $0x140] ss:$8 sps:$4 sm:$0xff]  }
 0xb99   :  { %4021 = vmatpush1.bf16.msra.mxu1 %v5077_v49  ;;  %4062 = vmatpush1.bf16.msra.mxu0 %v5080_v28  ;;  %v5169_v49 = vld [vmem:[#allocation19 + $0x84] ss:$8 sps:$4 sm:$0xff]  }
 0xb9a   :  { %4022 = vmatprep.subr.bf16.mxu1 %v5085_v39  ;;  %4063 = vmatprep.subr.bf16.mxu0 %v5088_v46  ;;  %v5172_v28 = vld [vmem:[#allocation19 + $0x184] ss:$8 sps:$4 sm:$0xff]   ;;  %v5167_v39 = vld [vmem:[#allocation19 + $0x80] ss:$8 sps:$4 sm:$0xff]  }
 0xb9b   :  { %v5170_v46 = vld [vmem:[#allocation19 + $0x180] ss:$8 sps:$4 sm:$0xff]  }
 0xb9d   :  { %4023 = vmatpush1.bf16.msra.mxu1 %v5083_v43  ;;  %4064 = vmatpush1.bf16.msra.mxu0 %v5086_v50  ;;  %v5175_v43 = vld [vmem:[#allocation19 + $0x274] ss:$8 sps:$4 sm:$0xff]  }
 0xb9e   :  { %4024 = vmatprep.subr.bf16.mxu1 %v5091_v53  ;;  %4065 = vmatprep.subr.bf16.mxu0 %v5094_v51  ;;  %v5178_v50 = vld [vmem:[#allocation19 + $0x374] ss:$8 sps:$4 sm:$0xff]   ;;  %v2334_v53 = vsub.s32 2, %v5880_v56  ;;  %v6027_v51 = vld [vmem:[%s6087_s12] sm:$0xff] }
 0xba1   :  { %4025 = vmatpush1.bf16.msra.mxu1 %v5089_v58  ;;  %4066 = vmatpush1.bf16.msra.mxu0 %v5092_v11  ;;  %v2338_v58 = vsub.s32 3, %v5880_v56  ;;  %v2327_v11 = vrot.slane %v6027_v51, %v5883_v57 }
 0xba2   :  { %4026 = vmatprep.subr.bf16.mxu1 %v5097_v12  ;;  %4067 = vmatprep.subr.bf16.mxu0 %v5100_v13  ;;  %v2335_v12 = vrot.slane %v6027_v51, %v2334_v53  ;;  %v2331_v13 = vrot.slane %v6027_v51, %v5889_v2  ;;  %v5196_v53 = vld [vmem:[#allocation19 + $0x344] ss:$8 sps:$4 sm:$0xff]  }
 0xba5   :  { %4027 = vmatpush1.bf16.msra.mxu1 %v5095_v63  ;;  %4068 = vmatpush1.bf16.msra.mxu0 %v5098_v48  ;;  %v2339_v63 = vrot.slane %v6027_v51, %v2338_v58  ;;  %v5191_v58 = vld [vmem:[#allocation19 + $0x240] ss:$8 sps:$4 sm:$0xff]  }
 0xba6   :  { %4028 = vmatprep.subr.bf16.mxu1 %v5103_v0  ;;  %4069 = vmatprep.subr.bf16.mxu0 %v5106_v59 }
 0xba9   :  { %4029 = vmatpush1.bf16.msra.mxu1 %v5101_v60  ;;  %4070 = vmatpush1.bf16.msra.mxu0 %v5104_v62 }
 0xbaa   :  { %4030 = vmatprep.subr.bf16.mxu1 %v5109_v14  ;;  %4071 = vmatprep.subr.bf16.mxu0 %v5112_v15 }
 0xbad   :  { %4031 = vmatpush1.bf16.msra.mxu1 %v5107_v1  ;;  %4072 = vmatpush1.bf16.msra.mxu0 %v5110_v16 }
 0xbae   :  { %4032 = vmatprep.subr.bf16.mxu1 %v5115_v18  ;;  %4073 = vmatprep.subr.bf16.mxu0 %v5118_v19 }
 0xbb1   :  { %4033 = vmatpush1.bf16.msra.mxu1 %v5113_v20  ;;  %4074 = vmatpush1.bf16.msra.mxu0 %v5116_v61 }
 0xbb2   :  { %4034 = vmatprep.subr.bf16.mxu1 %v5121_v21  ;;  %4075 = vmatprep.subr.bf16.mxu0 %v5124_v22 }
 0xbb5   :  { %4035 = vmatpush1.bf16.msra.mxu1 %v5119_v30  ;;  %4076 = vmatpush1.bf16.msra.mxu0 %v5122_v31 }
 0xbb6   :  { %4036 = vmatprep.subr.bf16.mxu1 %v5127_v32  ;;  %4077 = vmatprep.subr.bf16.mxu0 %v5130_v34 }
 0xbb9   :  { %4037 = vmatpush2.bf16.msra.mxu1 %v5125_v35  ;;  %4078 = vmatpush2.bf16.msra.mxu0 %v5128_v36 }
 0xbba   :  { %4038 = vmatprep.subr.bf16.mxu1 %v5133_v7  ;;  %4079 = vmatprep.subr.bf16.mxu0 %v5136_v33 }
 0xbbd   :  { %4039 = vmatpush2.bf16.msra.mxu1 %v5131_v24  ;;  %4080 = vmatpush2.bf16.msra.mxu0 %v5134_v23 }
 0xbbe   :  { %4040 = vmatprep.subr.bf16.mxu1 %v5139_v25  ;;  %4081 = vmatprep.subr.bf16.mxu0 %v5142_v26 }
 0xbc1   :  { %4041 = vmatpush2.bf16.msra.mxu1 %v5137_v17  ;;  %4082 = vmatpush2.bf16.msra.mxu0 %v5140_v29 }
 0xbc2   :  { %4042 = vmatprep.subr.bf16.mxu1 %v5145_v37  ;;  %4083 = vmatprep.subr.bf16.mxu0 %v5148_v38 }
 0xbc5   :  { %4043 = vmatpush2.bf16.msra.mxu1 %v5143_v8  ;;  %4084 = vmatpush2.bf16.msra.mxu0 %v5146_v5 }
 0xbc6   :  { %4044 = vmatprep.subr.bf16.mxu1 %v5151_v6  ;;  %4085 = vmatprep.subr.bf16.mxu0 %v5154_v3 }
 0xbc9   :  { %4045 = vmatpush2.bf16.msra.mxu1 %v5149_v4  ;;  %4086 = vmatpush2.bf16.msra.mxu0 %v5152_v40 }
 0xbca   :  { %4046 = vmatprep.subr.bf16.mxu1 %v5157_v41  ;;  %4087 = vmatprep.subr.bf16.mxu0 %v5160_v42  ;;  %v5173_v41 = vld [vmem:[#allocation19 + $0x270] ss:$8 sps:$4 sm:$0xff]  }
 0xbcd   :  { %4047 = vmatpush2.bf16.msra.mxu1 %v5155_v44  ;;  %4088 = vmatpush2.bf16.msra.mxu0 %v5158_v45  ;;  %v5176_v45 = vld [vmem:[#allocation19 + $0x370] ss:$8 sps:$4 sm:$0xff]  }
 0xbce   :  { %4048 = vmatprep.subr.bf16.mxu1 %v5163_v9  ;;  %4089 = vmatprep.subr.bf16.mxu0 %v5166_v10  ;;  %v5181_v9 = vld [vmem:[#allocation19 + $0x264] ss:$8 sps:$4 sm:$0xff]  }
 0xbd1   :  { %4049 = vmatpush2.bf16.msra.mxu1 %v5161_v52  ;;  %4090 = vmatpush2.bf16.msra.mxu0 %v5164_v55  ;;  %v5184_v52 = vld [vmem:[#allocation19 + $0x364] ss:$8 sps:$4 sm:$0xff]   ;;  %v5179_v55 = vld [vmem:[#allocation19 + $0x260] ss:$8 sps:$4 sm:$0xff]  }
 0xbd2   :  { %4050 = vmatprep.subr.bf16.mxu1 %v5169_v49  ;;  %4091 = vmatprep.subr.bf16.mxu0 %v5172_v28  ;;  %v5182_v49 = vld [vmem:[#allocation19 + $0x360] ss:$8 sps:$4 sm:$0xff]   ;;  %v5187_v28 = vld [vmem:[#allocation19 + $0x254] ss:$8 sps:$4 sm:$0xff]  }
 0xbd5   :  { %4051 = vmatpush2.bf16.msra.mxu1 %v5167_v39  ;;  %4092 = vmatpush2.bf16.msra.mxu0 %v5170_v46  ;;  %v5190_v39 = vld [vmem:[#allocation19 + $0x354] ss:$8 sps:$4 sm:$0xff]   ;;  %v5185_v46 = vld [vmem:[#allocation19 + $0x250] ss:$8 sps:$4 sm:$0xff]  }
 0xbd6   :  { %4102 = vmatprep.subr.bf16.mxu1 %v5175_v43  ;;  %4143 = vmatprep.subr.bf16.mxu0 %v5178_v50  ;;  %v5188_v43 = vld [vmem:[#allocation19 + $0x350] ss:$8 sps:$4 sm:$0xff]   ;;  %v5193_v50 = vld [vmem:[#allocation19 + $0x244] ss:$8 sps:$4 sm:$0xff]  }
 0xc18   :  { %v3038_v48 = vpop.f32.mrf.mxu1  ;;  %v3079_v0 = vpop.f32.mrf.mxu0 }
 0xc19   :  { %v3039_v59 = vadd.f32 %v3038_v48, %v2327_v11  ;;  %v3080_v60 = vadd.f32 %v3079_v0, %v2335_v12  ;;  %v5194_v11 = vld [vmem:[#allocation19 + $0x340] ss:$8 sps:$4 sm:$0xff]   ;;  %v5199_v12 = vld [vmem:[#allocation19 + $0x234] ss:$8 sps:$4 sm:$0xff]   ;;  %v2342_v48 = vsub.s32 4, %v5880_v56  ;;  %v2350_v0 = vsub.s32 6, %v5880_v56 }
 0xc1a   :  { %v3040_v62 = vpop.f32.mrf.mxu1  ;;  %v3081_v14 = vpop.f32.mrf.mxu0 }
 0xc1b   :  { %v4604_v15 = vmul.f32 -1.702, %v3039_v59  ;;  %v4606_v1 = vmul.f32 -1.702, %v3080_v60  ;;  %v3041_v16 = vadd.f32 %v3040_v62, %v2331_v13  ;;  %v3082_v18 = vadd.f32 %v3081_v14, %v2339_v63  ;;  %v5202_v13 = vld [vmem:[#allocation19 + $0x334] ss:$8 sps:$4 sm:$0xff]  }
 0xc1c   :  { %v3042_v19 = vpop.f32.mrf.mxu1  ;;  %v3083_v20 = vpop.f32.mrf.mxu0  ;;  %v5197_v63 = vld [vmem:[#allocation19 + $0x230] ss:$8 sps:$4 sm:$0xff]   ;;  %v5208_v62 = vld [vmem:[#allocation19 + $0x324] ss:$8 sps:$4 sm:$0xff]   ;;  %v2346_v14 = vsub.s32 5, %v5880_v56 }
 0xc1d   :  { %v3184_v61 = vmul.f32 1.442695, %v4604_v15  ;;  %v3188_v21 = vmul.f32 1.442695, %v4606_v1  ;;  %v4605_v22 = vmul.f32 -1.702, %v3041_v16  ;;  %v2343_v1 = vrot.slane %v6027_v51, %v2342_v48 }
 0xc1e   :  { %v4607_v30 = vmul.f32 -1.702, %v3082_v18  ;;  %v3043_v31 = vpop.f32.mrf.mxu1  ;;  %v3084_v32 = vpop.f32.mrf.mxu0  ;;  %v2354_v15 = vsub.s32 7, %v5880_v56  ;;  %v5206_v19 = vld [vmem:[#allocation19 + $0x320] ss:$8 sps:$4 sm:$0xff]  }
 0xc1f   :  { %5292 = vpow2.f32 %v3184_v61  ;;  %v3186_v34 = vmul.f32 1.442695, %v4605_v22  ;;  %v5211_v20 = vld [vmem:[#allocation19 + $0x214] ss:$8 sps:$4 sm:$0xff]   ;;  %v2347_v61 = vrot.slane %v6027_v51, %v2346_v14 }
 0xc20   :  { %5294 = vpow2.f32 %v3188_v21  ;;  %v3190_v35 = vmul.f32 1.442695, %v4607_v30  ;;  %v2355_v21 = vrot.slane %v6027_v51, %v2354_v15  ;;  %v5214_v22 = vld [vmem:[#allocation19 + $0x314] ss:$8 sps:$4 sm:$0xff]  }
 0xc21   :  { %5296 = vpow2.f32 %v3186_v34  ;;  %v5209_v34 = vld [vmem:[#allocation19 + $0x210] ss:$8 sps:$4 sm:$0xff]   ;;  %v5250_v15 = vld [vmem:[#allocation19 + $0x3b4] ss:$8 sps:$4 sm:$0xff]  }
 0xc22   :  { %5298 = vpow2.f32 %v3190_v35 }
 0xc2c   :  { %v5293_v36 = vpop.eup %5292 }
 0xc2d   :  { %v5295_v7 = vpop.eup %5294  ;;  %v3200_v33 = vadd.f32 1.0, %v5293_v36 }
 0xc2e   :  { %v5297_v24 = vpop.eup %5296  ;;  %v3202_v23 = vadd.f32 1.0, %v5295_v7  ;;  %v5212_v7 = vld [vmem:[#allocation19 + $0x310] ss:$8 sps:$4 sm:$0xff]  }
 0xc2f   :  { %v5299_v25 = vpop.eup %5298  ;;  %5300 = vrcp.f32 %v3200_v33  ;;  %v3201_v26 = vadd.f32 1.0, %v5297_v24  ;;  %v5217_v33 = vld [vmem:[#allocation19 + $0x204] ss:$8 sps:$4 sm:$0xff]  }
 0xc30   :  { %5302 = vrcp.f32 %v3202_v23  ;;  %v3203_v17 = vadd.f32 1.0, %v5299_v25 }
 0xc31   :  { %5304 = vrcp.f32 %v3201_v26  ;;  %v5220_v26 = vld [vmem:[#allocation19 + $0x304] ss:$8 sps:$4 sm:$0xff]  }
 0xc32   :  { %5306 = vrcp.f32 %v3203_v17 }
 0xc3c   :  { %v5301_v29 = vpop.eup %5300 }
 0xc3d   :  { %v5303_v37 = vpop.eup %5302  ;;  %v3224_v8 = vmul.f32 %v5301_v29, %v3039_v59  ;;  %v5200_v59 = vld [vmem:[#allocation19 + $0x330] ss:$8 sps:$4 sm:$0xff]  }
 0xc3e   :  { %v5305_v38 = vpop.eup %5304  ;;  %v3226_v6 = vmul.f32 %v5303_v37, %v3080_v60  ;;  %v5205_v60 = vld [vmem:[#allocation19 + $0x224] ss:$8 sps:$4 sm:$0xff]   ;;  %v5215_v37 = vld [vmem:[#allocation19 + $0x200] ss:$8 sps:$4 sm:$0xff]  }
 0xc3f   :  { %v5307_v5 = vpop.eup %5306  ;;  %v3225_v3 = vmul.f32 %v5305_v38, %v3041_v16  ;;  %v3232_v42 = vpack.c.bf16 %v3224_v8, %v3224_v8  ;;  %v2351_v16 = vrot.slane %v6027_v51, %v2350_v0 }
 0xc40   :  { %v3227_v4 = vmul.f32 %v5307_v5, %v3082_v18  ;;  %v3234_v10 = vpack.c.bf16 %v3226_v6, %v3226_v6  ;;  %v5203_v18 = vld [vmem:[#allocation19 + $0x220] ss:$8 sps:$4 sm:$0xff]  }
 0xc41   :  { %v3233_v40 = vpack.c.bf16 %v3225_v3, %v3225_v3 }
 0xc42   :  { %v3235_v44 = vpack.c.bf16 %v3227_v4, %v3227_v4 }
 0xc43   :  { %4052 = vmatprep.mubr.bf16.mxu1 %v3233_v40  ;;  %v5218_v40 = vld [vmem:[#allocation19 + $0x300] ss:$8 sps:$4 sm:$0xff]  }
 0xc44   :  { %4093 = vmatprep.mubr.bf16.mxu0 %v3235_v44  ;;  %4053 = vmatmul.mubr.bf16.vlgmr.msra.gmra.mxu1 %v3232_v42  ;;  %v5226_v44 = vld [vmem:[#allocation19 + $0x3f4] ss:$8 sps:$4 sm:$0xff]  }
 0xc45   :  { %4094 = vmatmul.mubr.bf16.vlgmr.msra.gmra.mxu0 %v3234_v10  ;;  %4103 = vmatpush1.bf16.msra.mxu1 %v5173_v41  ;;  %v5223_v41 = vld [vmem:[#allocation19 + $0x2f4] ss:$8 sps:$4 sm:$0xff]   ;;  %v5224_v10 = vld [vmem:[#allocation19 + $0x3f0] ss:$8 sps:$4 sm:$0xff]  }
 0xc46   :  { %4144 = vmatpush1.bf16.msra.mxu0 %v5176_v45  ;;  %4104 = vmatprep.subr.bf16.mxu1 %v5181_v9  ;;  %v5221_v9 = vld [vmem:[#allocation19 + $0x2f0] ss:$8 sps:$4 sm:$0xff]  }
 0xc47   :  { %4145 = vmatprep.subr.bf16.mxu0 %v5184_v52  ;;  %v5229_v52 = vld [vmem:[#allocation19 + $0x2e4] ss:$8 sps:$4 sm:$0xff]  }
 0xc49   :  { %4105 = vmatpush1.bf16.msra.mxu1 %v5179_v55  ;;  %v5232_v55 = vld [vmem:[#allocation19 + $0x3e4] ss:$8 sps:$4 sm:$0xff]  }
 0xc4a   :  { %4146 = vmatpush1.bf16.msra.mxu0 %v5182_v49  ;;  %4106 = vmatprep.subr.bf16.mxu1 %v5187_v28  ;;  %v5227_v49 = vld [vmem:[#allocation19 + $0x2e0] ss:$8 sps:$4 sm:$0xff]  }
 0xc4b   :  { %4147 = vmatprep.subr.bf16.mxu0 %v5190_v39  ;;  %v5230_v28 = vld [vmem:[#allocation19 + $0x3e0] ss:$8 sps:$4 sm:$0xff]   ;;  %v5235_v39 = vld [vmem:[#allocation19 + $0x2d4] ss:$8 sps:$4 sm:$0xff]  }
 0xc4d   :  { %4107 = vmatpush1.bf16.msra.mxu1 %v5185_v46  ;;  %v5238_v46 = vld [vmem:[#allocation19 + $0x3d4] ss:$8 sps:$4 sm:$0xff]  }
 0xc4e   :  { %4148 = vmatpush1.bf16.msra.mxu0 %v5188_v43  ;;  %4108 = vmatprep.subr.bf16.mxu1 %v5193_v50  ;;  %v5233_v43 = vld [vmem:[#allocation19 + $0x2d0] ss:$8 sps:$4 sm:$0xff]  }
 0xc4f   :  { %4149 = vmatprep.subr.bf16.mxu0 %v5196_v53  ;;  %v5236_v50 = vld [vmem:[#allocation19 + $0x3d0] ss:$8 sps:$4 sm:$0xff]   ;;  %v5241_v53 = vld [vmem:[#allocation19 + $0x2c4] ss:$8 sps:$4 sm:$0xff]  }
 0xc51   :  { %4109 = vmatpush1.bf16.msra.mxu1 %v5191_v58  ;;  %v5244_v58 = vld [vmem:[#allocation19 + $0x3c4] ss:$8 sps:$4 sm:$0xff]  }
 0xc52   :  { %4150 = vmatpush1.bf16.msra.mxu0 %v5194_v11  ;;  %4110 = vmatprep.subr.bf16.mxu1 %v5199_v12 }
 0xc53   :  { %4151 = vmatprep.subr.bf16.mxu0 %v5202_v13 }
 0xc55   :  { %4111 = vmatpush1.bf16.msra.mxu1 %v5197_v63  ;;  %v5239_v63 = vld [vmem:[#allocation19 + $0x2c0] ss:$8 sps:$4 sm:$0xff]  }
 0xc56   :  { %4152 = vmatpush1.bf16.msra.mxu0 %v5200_v59  ;;  %4112 = vmatprep.subr.bf16.mxu1 %v5205_v60  ;;  %v5242_v59 = vld [vmem:[#allocation19 + $0x3c0] ss:$8 sps:$4 sm:$0xff]   ;;  %v5247_v60 = vld [vmem:[#allocation19 + $0x2b4] ss:$8 sps:$4 sm:$0xff]  }
 0xc57   :  { %4153 = vmatprep.subr.bf16.mxu0 %v5208_v62 }
 0xc58   :  { %v3120_v30 = vpop.f32.mrf.mxu1  ;;  %v3161_v31 = vpop.f32.mrf.mxu0 }
 0xc59   :  { %v6044_v32 = vadd.f32 %v3120_v30, %v2343_v1  ;;  %v6046_v56 = vadd.f32 %v3161_v31, %v2351_v16  ;;  %4113 = vmatpush1.bf16.msra.mxu1 %v5203_v18  ;;  %v5245_v16 = vld [vmem:[#allocation19 + $0x2b0] ss:$8 sps:$4 sm:$0xff]   ;;  %v5262_v30 = vld [vmem:[#allocation19 + $0x394] ss:$8 sps:$4 sm:$0xff]  }
 0xc5a   :  { %4154 = vmatpush1.bf16.msra.mxu0 %v5206_v19  ;;  %v3122_v35 = vpop.f32.mrf.mxu1  ;;  %v3163_v36 = vpop.f32.mrf.mxu0  ;;  %4114 = vmatprep.subr.bf16.mxu1 %v5211_v20  ;;  %v5248_v18 = vld [vmem:[#allocation19 + $0x3b0] ss:$8 sps:$4 sm:$0xff]   ;;  %v5253_v19 = vld [vmem:[#allocation19 + $0x2a4] ss:$8 sps:$4 sm:$0xff]  }
 0xc5b   :  { %v4608_v24 = vmul.f32 -1.702, %v6044_v32  ;;  %v4610_v23 = vmul.f32 -1.702, %v6046_v56  ;;  %v6050_v51 = vadd.f32 %v3122_v35, %v2347_v61  ;;  %v6052_v25 = vadd.f32 %v3163_v36, %v2355_v21  ;;  %4155 = vmatprep.subr.bf16.mxu0 %v5214_v22  ;;  %v5256_v20 = vld [vmem:[#allocation19 + $0x3a4] ss:$8 sps:$4 sm:$0xff]  }
 0xc5c   :  { %v3124_v17 = vpop.f32.mrf.mxu1  ;;  %v3165_v29 = vpop.f32.mrf.mxu0  ;;  %v5251_v61 = vld [vmem:[#allocation19 + $0x2a0] ss:$8 sps:$4 sm:$0xff]   ;;  %v5259_v22 = vld [vmem:[#allocation19 + $0x294] ss:$8 sps:$4 sm:$0xff]   ;;  %v5257_v31 = vld [vmem:[#allocation19 + $0x290] ss:$8 sps:$4 sm:$0xff]  }
 0xc5d   :  { %v3192_v38 = vmul.f32 1.442695, %v4608_v24  ;;  %v3196_v8 = vmul.f32 1.442695, %v4610_v23  ;;  %v4609_v5 = vmul.f32 -1.702, %v6050_v51  ;;  %4115 = vmatpush1.bf16.msra.mxu1 %v5209_v34 }
 0xc5e   :  { %v4611_v6 = vmul.f32 -1.702, %v6052_v25  ;;  %4156 = vmatpush1.bf16.msra.mxu0 %v5212_v7  ;;  %v3125_v3 = vpop.f32.mrf.mxu1  ;;  %v3166_v4 = vpop.f32.mrf.mxu0  ;;  %4116 = vmatprep.subr.bf16.mxu1 %v5217_v33  ;;  %v5254_v21 = vld [vmem:[#allocation19 + $0x3a0] ss:$8 sps:$4 sm:$0xff]   ;;  %v5260_v34 = vld [vmem:[#allocation19 + $0x390] ss:$8 sps:$4 sm:$0xff]  }
 0xc5f   :  { %5308 = vpow2.f32 %v3192_v38  ;;  %v3194_v42 = vmul.f32 1.442695, %v4609_v5  ;;  %4157 = vmatprep.subr.bf16.mxu0 %v5220_v26  ;;  %v5265_v35 = vld [vmem:[#allocation19 + $0x284] ss:$8 sps:$4 sm:$0xff]   ;;  %v5263_v24 = vld [vmem:[#allocation19 + $0x280] ss:$8 sps:$4 sm:$0xff]  }
 0xc60   :  { %5310 = vpow2.f32 %v3196_v8  ;;  %v3198_v45 = vmul.f32 1.442695, %v4611_v6  ;;  %v5268_v36 = vld [vmem:[#allocation19 + $0x384] ss:$8 sps:$4 sm:$0xff]   ;;  %v5266_v17 = vld [vmem:[#allocation19 + $0x380] ss:$8 sps:$4 sm:$0xff]  }
 0xc61   :  { %5312 = vpow2.f32 %v3194_v42  ;;  %4117 = vmatpush1.bf16.msra.mxu1 %v5215_v37 }
 0xc62   :  { %5314 = vpow2.f32 %v3198_v45  ;;  %4158 = vmatpush1.bf16.msra.mxu0 %v5218_v40  ;;  %4118 = vmatprep.subr.bf16.mxu1 %v5223_v41 }
 0xc63   :  { %4159 = vmatprep.subr.bf16.mxu0 %v5226_v44 }
 0xc65   :  { %4119 = vmatpush2.bf16.msra.mxu1 %v5221_v9  ;;  %v3368_v9 = vld [vmem:[#allocation20] sm:$0x3] }
 0xc66   :  { %4160 = vmatpush2.bf16.msra.mxu0 %v5224_v10  ;;  %4120 = vmatprep.subr.bf16.mxu1 %v5229_v52  ;;  %v3377_v10 = vrot.slane %v3368_v9, %v5889_v2 }
 0xc67   :  { %4161 = vmatprep.subr.bf16.mxu0 %v5232_v55 }
 0xc69   :  { %4121 = vmatpush2.bf16.msra.mxu1 %v5227_v49 }
 0xc6a   :  { %4162 = vmatpush2.bf16.msra.mxu0 %v5230_v28  ;;  %4122 = vmatprep.subr.bf16.mxu1 %v5235_v39 }
 0xc6b   :  { %4163 = vmatprep.subr.bf16.mxu0 %v5238_v46 }
 0xc6c   :  { %v5309_v11 = vpop.eup %5308 }
 0xc6d   :  { %v5311_v12 = vpop.eup %5310  ;;  %v3204_v13 = vadd.f32 1.0, %v5309_v11  ;;  %4123 = vmatpush2.bf16.msra.mxu1 %v5233_v43 }
 0xc6e   :  { %v5313_v48 = vpop.eup %5312  ;;  %v3206_v0 = vadd.f32 1.0, %v5311_v12  ;;  %4164 = vmatpush2.bf16.msra.mxu0 %v5236_v50  ;;  %4124 = vmatprep.subr.bf16.mxu1 %v5241_v53 }
 0xc6f   :  { %v5315_v62 = vpop.eup %5314  ;;  %5316 = vrcp.f32 %v3204_v13  ;;  %v3205_v14 = vadd.f32 1.0, %v5313_v48  ;;  %4165 = vmatprep.subr.bf16.mxu0 %v5244_v58 }
 0xc70   :  { %5318 = vrcp.f32 %v3206_v0  ;;  %v3207_v1 = vadd.f32 1.0, %v5315_v62 }
 0xc71   :  { %5320 = vrcp.f32 %v3205_v14  ;;  %4125 = vmatpush2.bf16.msra.mxu1 %v5239_v63 }
 0xc72   :  { %5322 = vrcp.f32 %v3207_v1  ;;  %4166 = vmatpush2.bf16.msra.mxu0 %v5242_v59  ;;  %4126 = vmatprep.subr.bf16.mxu1 %v5247_v60 }
 0xc73   :  { %4167 = vmatprep.subr.bf16.mxu0 %v5250_v15  ;;  %v5269_v15 = vld [vmem:[%s6090_s15] ss:$8 sps:$4 sm:$0xff]  }
 0xc75   :  { %4127 = vmatpush2.bf16.msra.mxu1 %v5245_v16 }
 0xc76   :  { %4168 = vmatpush2.bf16.msra.mxu0 %v5248_v18  ;;  %4128 = vmatprep.subr.bf16.mxu1 %v5253_v19 }
 0xc77   :  { %4169 = vmatprep.subr.bf16.mxu0 %v5256_v20 }
 0xc79   :  { %4129 = vmatpush2.bf16.msra.mxu1 %v5251_v61 }
 0xc7a   :  { %4170 = vmatpush2.bf16.msra.mxu0 %v5254_v21  ;;  %4130 = vmatprep.subr.bf16.mxu1 %v5259_v22 }
 0xc7b   :  { %4171 = vmatprep.subr.bf16.mxu0 %v5262_v30 }
 0xc7c   :  { %v5317_v7 = vpop.eup %5316 }
 0xc7d   :  { %v5319_v33 = vpop.eup %5318  ;;  %4131 = vmatpush2.bf16.msra.mxu1 %v5257_v31  ;;  %v3228_v26 = vmul.f32 %v5317_v7, %v6044_v32 }
 0xc7e   :  { %v5321_v23 = vpop.eup %5320  ;;  %4172 = vmatpush2.bf16.msra.mxu0 %v5260_v34  ;;  %4132 = vmatprep.subr.bf16.mxu1 %v5265_v35  ;;  %v3230_v37 = vmul.f32 %v5319_v33, %v6046_v56 }
 0xc7f   :  { %v5323_v29 = vpop.eup %5322  ;;  %v3229_v38 = vmul.f32 %v5321_v23, %v6050_v51  ;;  %4173 = vmatprep.subr.bf16.mxu0 %v5268_v36  ;;  %v3236_v6 = vpack.c.bf16 %v3228_v26, %v3228_v26 }
 0xc80   :  { %v3231_v8 = vmul.f32 %v5323_v29, %v6052_v25  ;;  %v3238_v4 = vpack.c.bf16 %v3230_v37, %v3230_v37  ;;  %v3373_v25 = vrot.slane %v3368_v9, %v5883_v57 }
 0xc81   :  { %v3237_v5 = vpack.c.bf16 %v3229_v38, %v3229_v38  ;;  %4133 = vmatpush2.bf16.msra.mxu1 %v5263_v24 }
 0xc82   :  { %v3239_v3 = vpack.c.bf16 %v3231_v8, %v3231_v8  ;;  %4174 = vmatpush2.bf16.msra.mxu0 %v5266_v17 }
 0xc83   :  { %4134 = vmatprep.mubr.bf16.mxu1 %v3237_v5 }
 0xc84   :  { %4175 = vmatprep.mubr.bf16.mxu0 %v3239_v3  ;;  %4135 = vmatmul.mubr.bf16.vlgmr.msra.gmra.mxu1 %v3236_v6 }
 0xc85   :  { %4176 = vmatmul.mubr.bf16.vlgmr.msra.gmra.mxu0 %v3238_v4 }
 0xd04   :  { %v4054_v32 = vpop.f32.mrf.mxu1 }
 0xd05   :  { %v4095_v40 = vpop.f32.mrf.mxu0  ;;  %v4055_v52 = vadd.f32 %v4054_v32, %v3373_v25 }
 0xd06   :  { %v4056_v41 = vpop.f32.mrf.mxu1 }
 0xd07   :  { %v4097_v42 = vpop.f32.mrf.mxu0  ;;  %v4057_v55 = vadd.f32 %v4056_v41, %v3377_v10  ;;  %v4096_v49 = vadd.f32 %v4095_v40, %v4055_v52 }
 0xd08   :  { %v4058_v56 = vpop.f32.mrf.mxu1 }
 0xd09   :  { %v4099_v44 = vpop.f32.mrf.mxu0  ;;  %v4098_v39 = vadd.f32 %v4097_v42, %v4057_v55 }
 0xd0a   :  { %v4059_v51 = vpop.f32.mrf.mxu1 }
 0xd0b   :  { %v4100_v45 = vpop.f32.mrf.mxu0 }
 0xd44   :  { %v4136_v28 = vpop.f32.mrf.mxu1 }
 0xd45   :  { %v4137_v46 = vadd.f32 %v4136_v28, %v4096_v49  ;;  %v4177_v43 = vpop.f32.mrf.mxu0 }
 0xd46   :  { %v4138_v50 = vpop.f32.mrf.mxu1 }
 0xd47   :  { %v4178_v53 = vadd.f32 %v4177_v43, %v4137_v46  ;;  %v4139_v58 = vadd.f32 %v4138_v50, %v4098_v39  ;;  %v4179_v11 = vpop.f32.mrf.mxu0 }
 0xd48   :  { %v4140_v12 = vpop.f32.mrf.mxu1 }
 0xd49   :  { %v4184_v13 = vadd.f32 %v4178_v53, %v6002_v54  ;;  %v4180_v63 = vadd.f32 %v4179_v11, %v4139_v58  ;;  %v4181_v48 = vpop.f32.mrf.mxu0  ;;  %v5271_v54 = vld [vmem:[%s6090_s15 + $0x4] ss:$8 sps:$4 sm:$0xff]   ;;  %s5640_s15 = smov [#allocation22]  }
 0xd4a   :  { %v4141_v0 = vpop.f32.mrf.mxu1  ;;  %4242 = vmatprep.subr.bf16.mxu1 %v5271_v54  ;;  %s4277_s22 = sshll.u32 %s5640_s15, 4  ;;  %s4278_s22 = int_to_ptr.vmem [resolvable:$true] %s4277_s22 }
 0xd4b   :  { %v4185_v57 = vadd.f32 %v4180_v63, %v5998_v47  ;;  %v4182_v2 = vpop.f32.mrf.mxu0  ;;  %v4186_v59 = vadd.f32 %v4184_v13, %v5827_v27  ;;  %4243 = vmatpush1.bf16.xpose.msra.mxu1 %v5269_v15  ;;  %s5582_s3 = scalar_lea.vmem %s4278_s22, 128  ;;  %p5587_p5 = scmp.lt.s32.totalorder %s4278_s22, %s4278_s22 }
 0xd4c   :  { %p5583_p4 = scmp.ne.s32.totalorder %s4278_s22, %s5582_s3  ;;  %p5588_p6 = scmp.lt.s32.totalorder %s5582_s3, %s5582_s3 }
 0xd4d   :  { %v4188_v60 = vmul.f32 %v4186_v59, %v4186_v59  ;;  %v4187_v62 = vadd.f32 %v4185_v57, %v5827_v27 }
 0xd4e   :  { %p5589_p7 = por %p5588_p6, %p5587_p5 }
 0xd4f   :  { %4189 = vadd.xlane.f32.xlu1 %v4188_v60  ;;  %v4201_v14 = vmul.f32 %v4187_v62, %v4187_v62 }
 0xd50   :  { %p5590_p8 = pnand %p5589_p7, %p5583_p4 }
 0xd51   :  { %4202 = vadd.xlane.f32.xlu0 %v4201_v14 }
 0xdd8   :  { %v4190_v47 = vpop.xlane.xlu1 %4189 }
 0xdd9   :  { %5324 = vrsqrt.f32 %v4190_v47  ;;  %vm4193_vm8 = vcmp.eq.f32.partialorder %v4190_v47, inf  ;;  %v4196_v19 = vand.u32 2147483648, %v4190_v47  ;;  %vm4195_vm9 = vcmp.eq.f32.partialorder %v4190_v47, 0.0 }
 0xdda   :  { %v4203_v1 = vpop.xlane.xlu0 %4202 }
 0xddb   :  { %5326 = vrsqrt.f32 %v4203_v1  ;;  %vm4206_vm10 = vcmp.eq.f32.partialorder %v4203_v1, inf  ;;  %v4209_v22 = vand.u32 2147483648, %v4203_v1  ;;  %vm4208_vm11 = vcmp.eq.f32.partialorder %v4203_v1, 0.0 }
 0xde6   :  { %v5325_v16 = vpop.eup %5324 }
 0xde7   :  { %v4192_v18 = vmul.f32 %v5325_v16, %v4190_v47 }
 0xde8   :  { %v5327_v27 = vpop.eup %5326 }
 0xde9   :  { %v4194_v20 = vsel %vm4193_vm8, %v4190_v47, %v4192_v18  ;;  %v4205_v61 = vmul.f32 %v5327_v27, %v4203_v1 }
 0xdea   :  { %v4197_v21 = vsel %vm4195_vm9, %v4196_v19, %v4194_v20 }
 0xdeb   :  { %v4198_v30 = vmax.f32 %v4197_v21, 1e-12  ;;  %v4207_v31 = vsel %vm4206_vm10, %v4203_v1, %v4205_v61 }
 0xdec   :  { %v4210_v34 = vsel %vm4208_vm11, %v4209_v22, %v4207_v31 }
 0xded   :  { %5328 = vrcp.f32 %v4198_v30  ;;  %v4211_v35 = vmax.f32 %v4210_v34, 1e-12 }
 0xdef   :  { %5330 = vrcp.f32 %v4211_v35 }
 0xdfa   :  { %v5329_v36 = vpop.eup %5328 }
 0xdfb   :  { %v4200_v33 = vmul.f32 %v5329_v36, %v4186_v59 }
 0xdfc   :  { %v5331_v7 = vpop.eup %5330 }
 0xdfd   :  { %v4213_v24 = vmul.f32 %v5331_v7, %v4187_v62  ;;  %v4214_v26 = vpack.c.bf16 %v4200_v33, %v4200_v33 }
 0xdff   :  { %v4215_v23 = vpack.c.bf16 %v4213_v24, %v4213_v24 }
 0xe01   :  { %4260 = vmatprep.mubr.bf16.mxu1 %v4215_v23 }
 0xe02   :  { %4261 = vmatmul.mubr.bf16.vlgmr.msra.gmra.mxu1 %v4214_v26 }
 0xec2   :  { %v4262_v17 = vpop.f32.mrf.mxu1 }
 0xec3   :  { %v4268_v29 = vmul.f32 16.0, %v4262_v17 }
 0xec4   :  { %v4264_v37 = vpop.f32.mrf.mxu1 }
 0xec5   :  { %4270 = vst.msk [vmem:[#allocation22] sm:$0xff] %vm4269_vm12, %v4268_v29 }
 0xec6   :  { %v4265_v38 = vpop.f32.mrf.mxu1 }
 0xec7   :  { %5593 = shalt.err (!%p5590_p8)
}
 0xec8   :  { %4280 = dma.vmem_to_hbm [thread:$0]  %s4278_s22, 128, %s6091_s16, [#allocation4]   ;;  %v4266_v8 = vpop.f32.mrf.mxu1 }
 0xec9   :  { %5616 = dma.done.wait [#allocation4], 128  }
 0xeca   :  { %5617 = vsyncadd [#allocation4], 4294967168 }
 0xecb   :  { %4284 = vsyncpa [#allocation3], 1 }
 0xecc   :  { %4285 = vsyncpa [#allocation6], 1 }
 0xecd   :  { %4286 = vsyncpa [#allocation9], 1 }
 0xece   :  { %4287 = vsyncpa [#allocation12], 1 }
 0xecf   :  { %4288 = vsyncpa [#allocation15], 1 }
 0xed0   :  { %4289 = vsyncpa [#allocation18], 1 }
 0xed1   :  { %4290 = vsyncpa [#allocation21], 1 }
 0xed2   :  { %4291 = vsyncpa [#allocation4], 1 }

</bundles_post_ra>
